<compile_context>
chip_gen: v7x
topology: tpu7x:2x2x1
jax: 0.10.0
libtpu: 0.0.40
codegen_flags: <defaults>
</compile_context>

<pallas_src>
import functools
import math

import jax
import jax.numpy as jnp
from jax.experimental import pallas as pl
from jax.experimental.pallas import tpu as pltpu

# ----------------------------- synthetic config ------------------------------
CTX_DIM = 32          # clip_model.visual.conv1.out_channels
VIS_DIM = 16          # clip_model.visual.output_dim
SEQ_LEN = 8           # visual token sequence length (1 cls + patches)
BATCH = 2
N_CTX_VISION = 4      # cfg.TRAINER.VPT.N_CTX_VISION
LAYERS = 4            # clip_model.visual.transformer.layers
BOTTOM_LIMIT = 2      # cfg.TRAINER.TOPDOWN_SECOVPT.BOTTOMLIMIT - 1
TOP_LAYERS = LAYERS - BOTTOM_LIMIT
CLASS_PROMPT_NUM = 3  # cfg.TRAINER.SELECTED_COVPT.CPN (clipped by #classnames)
N_CLASSES = 5
NUM_HEADS = 4
HEAD_DIM = CTX_DIM // NUM_HEADS
MLP_DIM = 4 * CTX_DIM
CAVPT_CTX_LEN = 10    # hard-coded `10` in CAVPT ctx_vectors
QK_DIM = 32           # hard-coded `32` in Attention q/k mlps
LN_EPS = 1e-5

# lane-dense padded dims
DP = 128              # ctx_dim padded to full vreg lane width
VP = 128              # vis_dim padded
MLP_P = MLP_DIM       # = 128 here (already lane-dense)
P_PAD = ((CLASS_PROMPT_NUM + 7) // 8) * 8   # class-prompt rows -> full sublane group
L_BOT = SEQ_LEN + N_CTX_VISION
L_TOP = SEQ_LEN + CLASS_PROMPT_NUM
L_CT = SEQ_LEN + CAVPT_CTX_LEN
assert CTX_DIM <= DP and VIS_DIM <= VP and MLP_P <= DP and N_CLASSES <= DP

MM_DTYPE = jnp.bfloat16
# TODO(synk): the PyTorch module forces the CAVPT extractor to fp16 (.half());
#             here all matmuls use bf16 operands with f32 MXU accumulation, and
#             LayerNorm / softmax / QuickGELU run in f32.


# ------------------------- fully fused forward kernel ------------------------
def make_vptd_kernel(nb: int):
    """Fused forward kernel processing `nb` batch elements per grid step.

    nb == 1     : grid=(B,), "parallel"  -> one batch element per TensorCore (v7x).
    nb == BATCH : grid=(1,), batch folded into sublane rows -> shared projection
                  matmuls, block-diagonal attention masks (single-TC v5e/v6e).
    """
    scale = 1.0 / math.sqrt(HEAD_DIM)
    qk_scale = 1.0 / math.sqrt(QK_DIM)

    def kernel(x_ref, tf_ref, vctx_ref, cctx_ref,
               rb_w_ref, rb_w1_ref, rb_w2_ref, rb_vec_ref,
               cv_w_ref, cv_vec_ref,
               xout_ref, logits_ref):
        lane = jax.lax.broadcasted_iota(jnp.int32, (1, DP), 1)
        ln_mask = (lane < CTX_DIM).astype(jnp.float32)
        # Per-head lane masks (bf16): full-width masked matmuls instead of 8-lane
        # slices + concat -> no sub-vreg lane extraction / XLU relayout.
        head_masks = [((lane >= h * HEAD_DIM) & (lane < (h + 1) * HEAD_DIM)
                       ).astype(MM_DTYPE) for h in range(NUM_HEADS)]

        def batch_bias(rows_q, rows_k):
            """Additive block-diagonal mask: 0 within a batch element, -1e30 across."""
            if nb == 1:
                return None
            qi = jax.lax.broadcasted_iota(jnp.int32, (nb * rows_q, nb * rows_k), 0)
            ki = jax.lax.broadcasted_iota(jnp.int32, (nb * rows_q, nb * rows_k), 1)
            qb = jnp.zeros_like(qi)
            kb = jnp.zeros_like(ki)
            for b in range(1, nb):           # avoid integer div; nb is tiny
                qb = qb + (qi >= b * rows_q).astype(jnp.int32)
                kb = kb + (ki >= b * rows_k).astype(jnp.int32)
            return jnp.where(qb == kb, 0.0, -1e30).astype(jnp.float32)

        # Hoisted out of the layer loops (JAX does not CSE broadcast/iota).
        bias_bot = batch_bias(L_BOT, L_BOT)
        bias_top = batch_bias(L_TOP, L_TOP)
        bias_cav = batch_bias(P_PAD, L_CT)

        def softmax(s):
            m = jnp.max(s, axis=-1, keepdims=True)
            e = jnp.exp(s - m)
            return e * pl.reciprocal(jnp.sum(e, axis=-1, keepdims=True), approx=True)

        def ln(t, w, b):
            t = t * ln_mask   # robust: don't rely on padded lanes being exactly zero
            mu = jnp.sum(t, axis=-1, keepdims=True) * (1.0 / CTX_DIM)
            d = (t - mu) * ln_mask
            var = jnp.sum(d * d, axis=-1, keepdims=True) * (1.0 / CTX_DIM)
            return d * jax.lax.rsqrt(var + LN_EPS) * w + b

        def mm(a_bf, b_bf):      # MXU matmul, bf16 operands, f32 accumulation
            return jnp.dot(a_bf, b_bf, preferred_element_type=jnp.float32)

        def mm_t(a_bf, b_bf):    # a @ b.T (contract last dims)
            return jax.lax.dot_general(a_bf, b_bf, (((1,), (1,)), ((), ())),
                                       preferred_element_type=jnp.float32)

        def resblock(x, layer, bias):
            # x: (rows, DP) f32
            vec = rb_vec_ref[layer]                                # (10, DP) f32
            ln1w, ln1b = vec[0:1], vec[1:2]
            bq, bk, bv, bo = vec[2:3], vec[3:4], vec[4:5], vec[5:6]
            ln2w, ln2b = vec[6:7], vec[7:8]
            b1, b2 = vec[8:9, :MLP_P], vec[9:10]
            w = rb_w_ref[layer]                                    # (DP, 4*DP) bf16

            # ---- multi-head self-attention: fused QKV, masked per-head matmuls ----
            xn_b = ln(x, ln1w, ln1b).astype(MM_DTYPE)
            qkv = mm(xn_b, w[:, 0:3 * DP])                         # (rows, 3*DP) f32
            q_b = (qkv[:, 0 * DP:1 * DP] + bq).astype(MM_DTYPE)    # casts hoisted
            k_b = (qkv[:, 1 * DP:2 * DP] + bk).astype(MM_DTYPE)
            v_b = (qkv[:, 2 * DP:3 * DP] + bv).astype(MM_DTYPE)
            attn = jnp.zeros((x.shape[0], DP), jnp.float32)
            for hm in head_masks:
                s = mm_t(q_b * hm, k_b) * scale                    # (rows, rows)
                if bias is not None:
                    s = s + bias
                p = softmax(s).astype(MM_DTYPE)
                attn = attn + mm(p, v_b * hm)                      # lands in head lanes
            # full (DP,DP) out-projection (padded rows of Wo are zero)
            x = x + mm(attn.astype(MM_DTYPE), w[:, 3 * DP:4 * DP]) + bo

            # ---- MLP (QuickGELU, as in CLIP) ----
            xn2_b = ln(x, ln2w, ln2b).astype(MM_DTYPE)
            h1 = mm(xn2_b, rb_w1_ref[layer]) + b1                  # (rows, MLP_P)
            h1 = h1 * jax.nn.sigmoid(1.702 * h1)
            return x + mm(h1.astype(MM_DTYPE), rb_w2_ref[layer]) + b2

        def cavpt(x, i, tf_b):
            # class_token = cat([x_b, ctx[i]]) per batch; q = meta_net(text_feature)
            ctx_i = cctx_ref[i]                                    # (10, DP) f32
            ct = jnp.concatenate(
                [piece for b in range(nb)
                 for piece in (x[b * SEQ_LEN:(b + 1) * SEQ_LEN], ctx_i)], axis=0)
            vec = cv_vec_ref[i]                                    # (5, DP) f32
            bm, ln1w, ln1b = vec[0:1], vec[1:2], vec[2:3]
            ln2w, ln2b = vec[3:4], vec[4:5]
            w = cv_w_ref[i]                                        # (DP, 5*DP) bf16

            cp = mm(tf_b, w[:, 0:DP]) + bm                         # meta_net
            cp_b = cp.astype(MM_DTYPE)
            ct_b = ct.astype(MM_DTYPE)
            q = mm(cp_b, w[:, 1 * DP:2 * DP]).astype(MM_DTYPE)     # qmlp (no bias)
            kk = mm(ct_b, w[:, 2 * DP:3 * DP]).astype(MM_DTYPE)    # kmlp (no bias)
            u = mm_t(q, kk) * qk_scale
            if bias_cav is not None:
                u = u + bias_cav
            attn = softmax(u).astype(MM_DTYPE)                     # (nb*P_PAD, nb*L_CT)
            out = mm(attn, ct_b)                                   # attn @ class_token
            out = mm(out.astype(MM_DTYPE), w[:, 3 * DP:4 * DP])    # vmlp (no bias)
            logits = mm(ln(out, ln1w, ln1b).astype(MM_DTYPE),
                        w[:, 4 * DP:5 * DP])                       # classifier
            cprompt = ln(out + cp, ln2w, ln2b)
            return cprompt, logits

        # --------------------------------- forward ---------------------------------
        x = jnp.concatenate([x_ref[b] for b in range(nb)], axis=0)          # (nb*SEQ, DP)
        tf_b = jnp.concatenate([tf_ref[b] for b in range(nb)], axis=0
                               ).astype(MM_DTYPE)                            # (nb*P_PAD, VP)

        # bottom layers: append shared VPT prompt tokens, resblock, drop them.
        for i in range(BOTTOM_LIMIT):
            vctx_i = vctx_ref[i]                                             # (n_ctx, DP)
            xe = jnp.concatenate(
                [piece for b in range(nb)
                 for piece in (x[b * SEQ_LEN:(b + 1) * SEQ_LEN], vctx_i)], axis=0)
            xe = resblock(xe, i, bias_bot)
            x = jnp.concatenate(
                [xe[b * L_BOT:b * L_BOT + SEQ_LEN] for b in range(nb)], axis=0)

        # top layers: CAVPT extractor, append class prompts, resblock, drop them.
        for i in range(TOP_LAYERS):
            cprompt, logits = cavpt(x, i, tf_b)
            for b in range(nb):                                    # full-tile (8,128) stores
                logits_ref[i, b] = logits[b * P_PAD:(b + 1) * P_PAD]
            xe = jnp.concatenate(
                [piece for b in range(nb)
                 for piece in (x[b * SEQ_LEN:(b + 1) * SEQ_LEN],
                               cprompt[b * P_PAD:b * P_PAD + CLASS_PROMPT_NUM])], axis=0)
            xe = resblock(xe, BOTTOM_LIMIT + i, bias_top)
            if CLASS_PROMPT_NUM != 0:
                x = jnp.concatenate(
                    [xe[b * L_TOP:b * L_TOP + SEQ_LEN] for b in range(nb)], axis=0)
            else:
                x = xe

        for b in range(nb):
            xout_ref[b] = x[b * SEQ_LEN:(b + 1) * SEQ_LEN]

    return kernel


# --------------------------- parameter slab packing ---------------------------
def pack_params(params):
    """Pre-pack/pad all parameters into a few lane-dense (bf16) slabs.

    Call this ONCE at init time — NOT per forward call.  (The per-call
    pad/concat/stack of ~1 MB of weights cost as much as the kernel itself.)
    """
    def pad2(w, r, c):
        return jnp.pad(w, ((0, r - w.shape[0]), (0, c - w.shape[1]))).astype(MM_DTYPE)

    def padv(v):
        v = jnp.asarray(v, jnp.float32).reshape(-1)
        return jnp.pad(v, (0, DP - v.shape[0]))

    rb_w, rb_w1, rb_w2, rb_vec = [], [], [], []
    for (ln1w, ln1b, wq, bq, wk, bk, wv, bv, wo, bo,
         ln2w, ln2b, w1, b1, w2, b2) in params["resblocks"]:
        rb_w.append(jnp.concatenate([pad2(wq, DP, DP), pad2(wk, DP, DP),
                                     pad2(wv, DP, DP), pad2(wo, DP, DP)], axis=1))
        rb_w1.append(pad2(w1, DP, MLP_P))
        rb_w2.append(pad2(w2, MLP_P, DP))
        rb_vec.append(jnp.stack([padv(ln1w), padv(ln1b), padv(bq), padv(bk),
                                 padv(bv), padv(bo), padv(ln2w), padv(ln2b),
                                 padv(b1), padv(b2)]))

    cv_w, cv_vec = [], []
    for (wm, bm, wq, wk, wv, ln1w, ln1b, wc, ln2w, ln2b) in params["cavpt"]:
        cv_w.append(jnp.concatenate([pad2(wm, VP, DP), pad2(wq, DP, DP),
                                     pad2(wk, DP, DP), pad2(wv, DP, DP),
                                     pad2(wc, DP, DP)], axis=1))
        cv_vec.append(jnp.stack([padv(bm), padv(ln1w), padv(ln1b),
                                 padv(ln2w), padv(ln2b)]))

    padc = lambda c: jnp.pad(c, ((0, 0), (0, 0), (0, DP - CTX_DIM)))
    return dict(vctx=padc(params["vpt_ctx"]), cctx=padc(params["cavpt_ctx"]),
                rb_w=jnp.stack(rb_w), rb_w1=jnp.stack(rb_w1),
                rb_w2=jnp.stack(rb_w2), rb_vec=jnp.stack(rb_vec),
                cv_w=jnp.stack(cv_w), cv_vec=jnp.stack(cv_vec))


# ----------------------- full Transformer_VPTD forward -----------------------
def transformer_vptd_forward(x_lbd, text_feature_bpv, packed, *, nb):
    """x_lbd: (L, B, D) sequence-first (PyTorch layout); text_feature: (B, P, vis_dim).

    `nb` (static) = batch elements per grid step.  nb=1 -> grid=(B,) parallel
    (dual-TC v7x); nb=B -> grid=(1,) with batch folded into rows (v5e/v6e).
    """
    L0, B, D = x_lbd.shape
    P = text_feature_bpv.shape[1]
    assert (L0, D, P) == (SEQ_LEN, CTX_DIM, CLASS_PROMPT_NUM)
    assert B % nb == 0

    x_p = jnp.pad(jnp.transpose(x_lbd, (1, 0, 2)),
                  ((0, 0), (0, 0), (0, DP - CTX_DIM)))              # (B, L0, DP)
    tf_p = jnp.pad(text_feature_bpv,
                   ((0, 0), (0, P_PAD - P), (0, VP - VIS_DIM)))     # (B, P_PAD, VP)

    def full(a):   # grid-invariant weight slab (index map constant across grid)
        return pl.BlockSpec(a.shape, lambda g, _nd=a.ndim: (0,) * _nd)

    in_specs = [
        pl.BlockSpec((nb, SEQ_LEN, DP), lambda g: (g, 0, 0)),
        pl.BlockSpec((nb, P_PAD, VP), lambda g: (g, 0, 0)),
        full(packed["vctx"]), full(packed["cctx"]),
        full(packed["rb_w"]), full(packed["rb_w1"]), full(packed["rb_w2"]),
        full(packed["rb_vec"]), full(packed["cv_w"]), full(packed["cv_vec"]),
    ]
    out_shapes = (jax.ShapeDtypeStruct((B, SEQ_LEN, DP), jnp.float32),
                  jax.ShapeDtypeStruct((TOP_LAYERS, B, P_PAD, DP), jnp.float32))
    out_specs = (pl.BlockSpec((nb, SEQ_LEN, DP), lambda g: (g, 0, 0)),
                 pl.BlockSpec((TOP_LAYERS, nb, P_PAD, DP), lambda g: (0, g, 0, 0)))

    xo, lo = pl.pallas_call(
        make_vptd_kernel(nb),
        out_shape=out_shapes,
        grid=(B // nb,),
        in_specs=in_specs,
        out_specs=out_specs,
        compiler_params=pltpu.CompilerParams(
            dimension_semantics=("parallel",)),
    )(x_p, tf_p, packed["vctx"], packed["cctx"], packed["rb_w"], packed["rb_w1"],
      packed["rb_w2"], packed["rb_vec"], packed["cv_w"], packed["cv_vec"])

    x_out = jnp.transpose(xo[..., :CTX_DIM], (1, 0, 2))             # (L, B, D)
    logits = lo[:, :, :P, :N_CLASSES]                               # (TOP, B, P, C)
    layer_logits = [jnp.transpose(logits[i], (1, 0, 2))[None]       # (1, P, B, C)
                    for i in range(TOP_LAYERS)]
    return x_out, layer_logits


def default_batch_per_step(batch):
    """Fold batch into rows (nb=batch, grid=1) on single-TC v5e/v6e; keep the
    parallel batch grid (nb=1, one element per TensorCore) on dual-TC chips."""
    try:
        kind = jax.devices()[0].device_kind.lower()
    except Exception:
        return 1
    single_tc = any(t in kind for t in
                    ("v5 lite", "v5e", "v5litepod", "v6 lite", "v6e"))
    return batch if single_tc else 1


# ------------------------- deterministic parameter init ----------------------
def init_params(key):
    keys = iter(jax.random.split(key, 128))

    def nrm(shape, std=0.02):
        return jax.random.normal(next(keys), shape, dtype=jnp.float32) * std

    ones = lambda s: jnp.ones(s, jnp.float32)
    zeros = lambda s: jnp.zeros(s, jnp.float32)

    resblocks = []
    for _ in range(LAYERS):
        resblocks.append((
            ones((1, CTX_DIM)), zeros((1, CTX_DIM)),          # ln_1
            nrm((CTX_DIM, CTX_DIM)), nrm((1, CTX_DIM)),       # Wq, bq
            nrm((CTX_DIM, CTX_DIM)), nrm((1, CTX_DIM)),       # Wk, bk
            nrm((CTX_DIM, CTX_DIM)), nrm((1, CTX_DIM)),       # Wv, bv
            nrm((CTX_DIM, CTX_DIM)), nrm((1, CTX_DIM)),       # out_proj
            ones((1, CTX_DIM)), zeros((1, CTX_DIM)),          # ln_2
            nrm((CTX_DIM, MLP_DIM)), nrm((1, MLP_DIM)),       # mlp c_fc
            nrm((MLP_DIM, CTX_DIM)), nrm((1, CTX_DIM)),       # mlp c_proj
        ))

    cavpt = []
    for _ in range(TOP_LAYERS):
        cavpt.append((
            nrm((VIS_DIM, CTX_DIM)), nrm((1, CTX_DIM)),       # meta_net W, b
            nrm((CTX_DIM, QK_DIM)),                           # qmlp (no bias)
            nrm((CTX_DIM, QK_DIM)),                           # kmlp (no bias)
            nrm((CTX_DIM, CTX_DIM)),                          # vmlp (no bias)
            ones((1, CTX_DIM)), zeros((1, CTX_DIM)),          # lns
            nrm((CTX_DIM, N_CLASSES)),                        # classifier (no bias)
            ones((1, CTX_DIM)), zeros((1, CTX_DIM)),          # lns2
        ))

    return {
        "vpt_ctx": nrm((BOTTOM_LIMIT, N_CTX_VISION, CTX_DIM)),
        "cavpt_ctx": nrm((TOP_LAYERS, CAVPT_CTX_LEN, CTX_DIM)),
        "resblocks": resblocks,
        "cavpt": cavpt,
    }


# ----------------------------------- main ------------------------------------
if __name__ == "__main__":
    key = jax.random.PRNGKey(0)
    kx, kt, kp = jax.random.split(key, 3)
    x = jax.random.normal(kx, (SEQ_LEN, BATCH, CTX_DIM), jnp.float32)          # (L, B, D)
    text_feature = jax.random.normal(kt, (BATCH, CLASS_PROMPT_NUM, VIS_DIM),
                                     jnp.float32)                              # (B, P, vis)
    params = init_params(kp)

    # Weight packing hoisted out of the per-call path: done exactly once here.
    packed = pack_params(params)

    nb = default_batch_per_step(BATCH)
    fwd = jax.jit(functools.partial(transformer_vptd_forward, nb=nb))
    out_x, layer_logits = fwd(x, text_feature, packed)
    out_x = jax.block_until_ready(out_x)
    layer_logits = [jax.block_until_ready(l) for l in layer_logits]

    assert out_x.shape == (SEQ_LEN, BATCH, CTX_DIM)
    assert len(layer_logits) == TOP_LAYERS
    assert all(l.shape == (1, CLASS_PROMPT_NUM, BATCH, N_CLASSES) for l in layer_logits)

    # Portability / correctness check: the alternate batch-mapping path (the one
    # the other chip generations would pick) must compile everywhere and agree.
    nb_alt = BATCH if nb == 1 else 1
    fwd_alt = jax.jit(functools.partial(transformer_vptd_forward, nb=nb_alt))
    out_x2, layer_logits2 = fwd_alt(x, text_feature, packed)
    out_x2 = jax.block_until_ready(out_x2)
    layer_logits2 = [jax.block_until_ready(l) for l in layer_logits2]
    assert bool(jnp.allclose(out_x, out_x2, rtol=2e-2, atol=2e-2))
    for a, b in zip(layer_logits, layer_logits2):
        assert bool(jnp.allclose(a, b, rtol=2e-2, atol=2e-2))

    print("KERNEL_OK")
</pallas_src>

<mosaic_0001>
module attributes {stable_mosaic.version = 11 : i64} {
  func.func @kernel(%arg0: i32, %arg1: memref<1x8x128xf32, #tpu.memory_space<vmem>>, %arg2: memref<1x8x128xf32, #tpu.memory_space<vmem>>, %arg3: memref<2x4x128xf32, #tpu.memory_space<vmem>>, %arg4: memref<2x10x128xf32, #tpu.memory_space<vmem>>, %arg5: memref<4x128x512xbf16, #tpu.memory_space<vmem>>, %arg6: memref<4x128x128xbf16, #tpu.memory_space<vmem>>, %arg7: memref<4x128x128xbf16, #tpu.memory_space<vmem>>, %arg8: memref<4x10x128xf32, #tpu.memory_space<vmem>>, %arg9: memref<2x128x640xbf16, #tpu.memory_space<vmem>>, %arg10: memref<2x5x128xf32, #tpu.memory_space<vmem>>, %arg11: memref<1x8x128xf32, #tpu.memory_space<vmem>>, %arg12: memref<2x1x8x128xf32, #tpu.memory_space<vmem>>) attributes {dimension_semantics = [#tpu.dimension_semantics<parallel>], iteration_bounds = array<i64: 2>, scalar_prefetch = 0 : i64, scratch_operands = 0 : i64, tpu.core_type = #tpu.core_type<tc>, window_params = [{transform_indices = @transform_0, window_bounds = array<i64: 1, 8, 128>}, {transform_indices = @transform_1, window_bounds = array<i64: 1, 8, 128>}, {pipeline_mode = #tpu.pipeline_mode<synchronous>, transform_indices = @transform_2, window_bounds = array<i64: 2, 4, 128>}, {pipeline_mode = #tpu.pipeline_mode<synchronous>, transform_indices = @transform_3, window_bounds = array<i64: 2, 10, 128>}, {pipeline_mode = #tpu.pipeline_mode<synchronous>, transform_indices = @transform_4, window_bounds = array<i64: 4, 128, 512>}, {pipeline_mode = #tpu.pipeline_mode<synchronous>, transform_indices = @transform_5, window_bounds = array<i64: 4, 128, 128>}, {pipeline_mode = #tpu.pipeline_mode<synchronous>, transform_indices = @transform_6, window_bounds = array<i64: 4, 128, 128>}, {pipeline_mode = #tpu.pipeline_mode<synchronous>, transform_indices = @transform_7, window_bounds = array<i64: 4, 10, 128>}, {pipeline_mode = #tpu.pipeline_mode<synchronous>, transform_indices = @transform_8, window_bounds = array<i64: 2, 128, 640>}, {pipeline_mode = #tpu.pipeline_mode<synchronous>, transform_indices = @transform_9, window_bounds = array<i64: 2, 5, 128>}, {transform_indices = @transform_10, window_bounds = array<i64: 1, 8, 128>}, {transform_indices = @transform_11, window_bounds = array<i64: 2, 1, 8, 128>}]} {
    %0 = tpu.iota {dimensions = array<i32: 1>} : vector<1x128xi32>
    %c32_i32 = arith.constant 32 : i32
    %1 = vector.broadcast %c32_i32 : i32 to vector<1x128xi32>
    %2 = arith.cmpi slt, %0, %1 : vector<1x128xi32>
    %3 = arith.extui %2 : vector<1x128xi1> to vector<1x128xi32>
    %4 = arith.sitofp %3 : vector<1x128xi32> to vector<1x128xf32>
    %c0_i32 = arith.constant 0 : i32
    %5 = vector.broadcast %c0_i32 : i32 to vector<1x128xi32>
    %6 = arith.cmpi sge, %0, %5 : vector<1x128xi32>
    %c8_i32 = arith.constant 8 : i32
    %7 = vector.broadcast %c8_i32 : i32 to vector<1x128xi32>
    %8 = arith.cmpi slt, %0, %7 : vector<1x128xi32>
    %9 = arith.andi %6, %8 : vector<1x128xi1>
    %10 = arith.extui %9 : vector<1x128xi1> to vector<1x128xi32>
    %11 = arith.sitofp %10 : vector<1x128xi32> to vector<1x128xf32>
    %12 = arith.truncf %11 : vector<1x128xf32> to vector<1x128xbf16>
    %c8_i32_0 = arith.constant 8 : i32
    %13 = vector.broadcast %c8_i32_0 : i32 to vector<1x128xi32>
    %14 = arith.cmpi sge, %0, %13 : vector<1x128xi32>
    %c16_i32 = arith.constant 16 : i32
    %15 = vector.broadcast %c16_i32 : i32 to vector<1x128xi32>
    %16 = arith.cmpi slt, %0, %15 : vector<1x128xi32>
    %17 = arith.andi %14, %16 : vector<1x128xi1>
    %18 = arith.extui %17 : vector<1x128xi1> to vector<1x128xi32>
    %19 = arith.sitofp %18 : vector<1x128xi32> to vector<1x128xf32>
    %20 = arith.truncf %19 : vector<1x128xf32> to vector<1x128xbf16>
    %c16_i32_1 = arith.constant 16 : i32
    %21 = vector.broadcast %c16_i32_1 : i32 to vector<1x128xi32>
    %22 = arith.cmpi sge, %0, %21 : vector<1x128xi32>
    %c24_i32 = arith.constant 24 : i32
    %23 = vector.broadcast %c24_i32 : i32 to vector<1x128xi32>
    %24 = arith.cmpi slt, %0, %23 : vector<1x128xi32>
    %25 = arith.andi %22, %24 : vector<1x128xi1>
    %26 = arith.extui %25 : vector<1x128xi1> to vector<1x128xi32>
    %27 = arith.sitofp %26 : vector<1x128xi32> to vector<1x128xf32>
    %28 = arith.truncf %27 : vector<1x128xf32> to vector<1x128xbf16>
    %c24_i32_2 = arith.constant 24 : i32
    %29 = vector.broadcast %c24_i32_2 : i32 to vector<1x128xi32>
    %30 = arith.cmpi sge, %0, %29 : vector<1x128xi32>
    %c32_i32_3 = arith.constant 32 : i32
    %31 = vector.broadcast %c32_i32_3 : i32 to vector<1x128xi32>
    %32 = arith.cmpi slt, %0, %31 : vector<1x128xi32>
    %33 = arith.andi %30, %32 : vector<1x128xi1>
    %34 = arith.extui %33 : vector<1x128xi1> to vector<1x128xi32>
    %35 = arith.sitofp %34 : vector<1x128xi32> to vector<1x128xf32>
    %36 = arith.truncf %35 : vector<1x128xf32> to vector<1x128xbf16>
    %c0 = arith.constant 0 : index
    %c0_4 = arith.constant 0 : index
    %c0_5 = arith.constant 0 : index
    %37 = vector.load %arg1[%c0, %c0_4, %c0_5] : memref<1x8x128xf32, #tpu.memory_space<vmem>>, vector<1x8x128xf32>
    %38 = vector.shape_cast %37 : vector<1x8x128xf32> to vector<8x128xf32>
    %c0_6 = arith.constant 0 : index
    %c0_7 = arith.constant 0 : index
    %c0_8 = arith.constant 0 : index
    %39 = vector.load %arg2[%c0_6, %c0_7, %c0_8] : memref<1x8x128xf32, #tpu.memory_space<vmem>>, vector<1x8x128xf32>
    %40 = vector.shape_cast %39 : vector<1x8x128xf32> to vector<8x128xf32>
    %41 = arith.truncf %40 : vector<8x128xf32> to vector<8x128xbf16>
    %c0_9 = arith.constant 0 : index
    %c0_10 = arith.constant 0 : index
    %c0_11 = arith.constant 0 : index
    %42 = vector.load %arg3[%c0_9, %c0_10, %c0_11] : memref<2x4x128xf32, #tpu.memory_space<vmem>>, vector<1x4x128xf32>
    %43 = vector.shape_cast %42 : vector<1x4x128xf32> to vector<4x128xf32>
    %44 = tpu.concatenate %38, %43 in 0 : vector<8x128xf32>, vector<4x128xf32> -> vector<12x128xf32>
    %c0_12 = arith.constant 0 : index
    %c0_13 = arith.constant 0 : index
    %c0_14 = arith.constant 0 : index
    %45 = vector.load %arg8[%c0_12, %c0_13, %c0_14] : memref<4x10x128xf32, #tpu.memory_space<vmem>>, vector<1x10x128xf32>
    %46 = vector.shape_cast %45 : vector<1x10x128xf32> to vector<10x128xf32>
    %47 = vector.extract_strided_slice %46 {offsets = [0, 0], sizes = [1, 128], strides = [1, 1]} : vector<10x128xf32> to vector<1x128xf32>
    %48 = vector.extract_strided_slice %46 {offsets = [1, 0], sizes = [1, 128], strides = [1, 1]} : vector<10x128xf32> to vector<1x128xf32>
    %49 = vector.extract_strided_slice %46 {offsets = [2, 0], sizes = [1, 128], strides = [1, 1]} : vector<10x128xf32> to vector<1x128xf32>
    %50 = vector.extract_strided_slice %46 {offsets = [3, 0], sizes = [1, 128], strides = [1, 1]} : vector<10x128xf32> to vector<1x128xf32>
    %51 = vector.extract_strided_slice %46 {offsets = [4, 0], sizes = [1, 128], strides = [1, 1]} : vector<10x128xf32> to vector<1x128xf32>
    %52 = vector.extract_strided_slice %46 {offsets = [5, 0], sizes = [1, 128], strides = [1, 1]} : vector<10x128xf32> to vector<1x128xf32>
    %53 = vector.extract_strided_slice %46 {offsets = [6, 0], sizes = [1, 128], strides = [1, 1]} : vector<10x128xf32> to vector<1x128xf32>
    %54 = vector.extract_strided_slice %46 {offsets = [7, 0], sizes = [1, 128], strides = [1, 1]} : vector<10x128xf32> to vector<1x128xf32>
    %55 = vector.extract_strided_slice %46 {offsets = [8, 0], sizes = [1, 128], strides = [1, 1]} : vector<10x128xf32> to vector<1x128xf32>
    %56 = vector.extract_strided_slice %46 {offsets = [9, 0], sizes = [1, 128], strides = [1, 1]} : vector<10x128xf32> to vector<1x128xf32>
    %c0_15 = arith.constant 0 : index
    %c0_16 = arith.constant 0 : index
    %c0_17 = arith.constant 0 : index
    %57 = vector.load %arg5[%c0_15, %c0_16, %c0_17] : memref<4x128x512xbf16, #tpu.memory_space<vmem>>, vector<1x128x512xbf16>
    %58 = vector.shape_cast %57 : vector<1x128x512xbf16> to vector<128x512xbf16>
    %59 = vector.broadcast %4 : vector<1x128xf32> to vector<12x128xf32>
    %60 = arith.mulf %44, %59 : vector<12x128xf32>
    %cst = arith.constant dense<0.000000e+00> : vector<12xf32>
    %61 = vector.multi_reduction <add>, %60, %cst [1] : vector<12x128xf32> to vector<12xf32>
    %62 = vector.shape_cast %61 : vector<12xf32> to vector<12x1xf32>
    %cst_18 = arith.constant 3.125000e-02 : f32
    %63 = vector.broadcast %cst_18 : f32 to vector<12x1xf32>
    %64 = arith.mulf %62, %63 : vector<12x1xf32>
    %65 = vector.broadcast %64 : vector<12x1xf32> to vector<12x128xf32>
    %66 = arith.subf %60, %65 : vector<12x128xf32>
    %67 = vector.broadcast %4 : vector<1x128xf32> to vector<12x128xf32>
    %68 = arith.mulf %66, %67 : vector<12x128xf32>
    %69 = arith.mulf %68, %68 : vector<12x128xf32>
    %cst_19 = arith.constant dense<0.000000e+00> : vector<12xf32>
    %70 = vector.multi_reduction <add>, %69, %cst_19 [1] : vector<12x128xf32> to vector<12xf32>
    %71 = vector.shape_cast %70 : vector<12xf32> to vector<12x1xf32>
    %cst_20 = arith.constant 3.125000e-02 : f32
    %72 = vector.broadcast %cst_20 : f32 to vector<12x1xf32>
    %73 = arith.mulf %71, %72 : vector<12x1xf32>
    %cst_21 = arith.constant 9.99999974E-6 : f32
    %74 = vector.broadcast %cst_21 : f32 to vector<12x1xf32>
    %75 = arith.addf %73, %74 : vector<12x1xf32>
    %76 = math.rsqrt %75 : vector<12x1xf32>
    %77 = vector.broadcast %76 : vector<12x1xf32> to vector<12x128xf32>
    %78 = arith.mulf %68, %77 : vector<12x128xf32>
    %79 = vector.broadcast %47 : vector<1x128xf32> to vector<12x128xf32>
    %80 = arith.mulf %78, %79 : vector<12x128xf32>
    %81 = vector.broadcast %48 : vector<1x128xf32> to vector<12x128xf32>
    %82 = arith.addf %80, %81 : vector<12x128xf32>
    %83 = arith.truncf %82 : vector<12x128xf32> to vector<12x128xbf16>
    %84 = vector.extract_strided_slice %58 {offsets = [0, 0], sizes = [128, 384], strides = [1, 1]} : vector<128x512xbf16> to vector<128x384xbf16>
    %cst_22 = arith.constant dense<0.000000e+00> : vector<12x384xf32>
    %85 = tpu.matmul %83, %84, %cst_22 {dimension_numbers = #tpu.dot_dimension_numbers<[1], [0], [0], [1], [0, 0, 1, 1], [], []>} : vector<12x128xbf16>, vector<128x384xbf16>, vector<12x384xf32> -> vector<12x384xf32>
    %86 = vector.extract_strided_slice %85 {offsets = [0, 0], sizes = [12, 128], strides = [1, 1]} : vector<12x384xf32> to vector<12x128xf32>
    %87 = vector.broadcast %49 : vector<1x128xf32> to vector<12x128xf32>
    %88 = arith.addf %86, %87 : vector<12x128xf32>
    %89 = arith.truncf %88 : vector<12x128xf32> to vector<12x128xbf16>
    %90 = vector.extract_strided_slice %85 {offsets = [0, 128], sizes = [12, 128], strides = [1, 1]} : vector<12x384xf32> to vector<12x128xf32>
    %91 = vector.broadcast %50 : vector<1x128xf32> to vector<12x128xf32>
    %92 = arith.addf %90, %91 : vector<12x128xf32>
    %93 = arith.truncf %92 : vector<12x128xf32> to vector<12x128xbf16>
    %94 = vector.extract_strided_slice %85 {offsets = [0, 256], sizes = [12, 128], strides = [1, 1]} : vector<12x384xf32> to vector<12x128xf32>
    %95 = vector.broadcast %51 : vector<1x128xf32> to vector<12x128xf32>
    %96 = arith.addf %94, %95 : vector<12x128xf32>
    %97 = arith.truncf %96 : vector<12x128xf32> to vector<12x128xbf16>
    %cst_23 = arith.constant 0.000000e+00 : f32
    %98 = vector.broadcast %cst_23 : f32 to vector<12x128xf32>
    %99 = vector.broadcast %12 : vector<1x128xbf16> to vector<12x128xbf16>
    %100 = arith.mulf %89, %99 : vector<12x128xbf16>
    %cst_24 = arith.constant dense<0.000000e+00> : vector<12x12xf32>
    %101 = tpu.matmul %100, %93, %cst_24 {dimension_numbers = #tpu.dot_dimension_numbers<[1], [1], [0], [0], [0, 0, 1, 0], [], []>} : vector<12x128xbf16>, vector<12x128xbf16>, vector<12x12xf32> -> vector<12x12xf32>
    %cst_25 = arith.constant 0.353553385 : f32
    %102 = vector.broadcast %cst_25 : f32 to vector<12x12xf32>
    %103 = arith.mulf %101, %102 : vector<12x12xf32>
    %cst_26 = arith.constant dense<0xFF800000> : vector<12xf32>
    %104 = vector.multi_reduction <maximumf>, %103, %cst_26 [1] : vector<12x12xf32> to vector<12xf32>
    %105 = vector.shape_cast %104 : vector<12xf32> to vector<12x1xf32>
    %106 = vector.broadcast %105 : vector<12x1xf32> to vector<12x12xf32>
    %107 = arith.subf %103, %106 : vector<12x12xf32>
    %108 = math.exp %107 : vector<12x12xf32>
    %cst_27 = arith.constant dense<0.000000e+00> : vector<12xf32>
    %109 = vector.multi_reduction <add>, %108, %cst_27 [1] : vector<12x12xf32> to vector<12xf32>
    %110 = vector.shape_cast %109 : vector<12xf32> to vector<12x1xf32>
    %111 = tpu.reciprocal %110 {approx = true} : vector<12x1xf32> -> vector<12x1xf32>
    %112 = vector.broadcast %111 : vector<12x1xf32> to vector<12x12xf32>
    %113 = arith.mulf %108, %112 : vector<12x12xf32>
    %114 = arith.truncf %113 : vector<12x12xf32> to vector<12x12xbf16>
    %115 = vector.broadcast %12 : vector<1x128xbf16> to vector<12x128xbf16>
    %116 = arith.mulf %97, %115 : vector<12x128xbf16>
    %cst_28 = arith.constant dense<0.000000e+00> : vector<12x128xf32>
    %117 = tpu.matmul %114, %116, %cst_28 {dimension_numbers = #tpu.dot_dimension_numbers<[1], [0], [0], [1], [0, 0, 1, 1], [], []>} : vector<12x12xbf16>, vector<12x128xbf16>, vector<12x128xf32> -> vector<12x128xf32>
    %118 = arith.addf %98, %117 : vector<12x128xf32>
    %119 = vector.broadcast %20 : vector<1x128xbf16> to vector<12x128xbf16>
    %120 = arith.mulf %89, %119 : vector<12x128xbf16>
    %cst_29 = arith.constant dense<0.000000e+00> : vector<12x12xf32>
    %121 = tpu.matmul %120, %93, %cst_29 {dimension_numbers = #tpu.dot_dimension_numbers<[1], [1], [0], [0], [0, 0, 1, 0], [], []>} : vector<12x128xbf16>, vector<12x128xbf16>, vector<12x12xf32> -> vector<12x12xf32>
    %cst_30 = arith.constant 0.353553385 : f32
    %122 = vector.broadcast %cst_30 : f32 to vector<12x12xf32>
    %123 = arith.mulf %121, %122 : vector<12x12xf32>
    %cst_31 = arith.constant dense<0xFF800000> : vector<12xf32>
    %124 = vector.multi_reduction <maximumf>, %123, %cst_31 [1] : vector<12x12xf32> to vector<12xf32>
    %125 = vector.shape_cast %124 : vector<12xf32> to vector<12x1xf32>
    %126 = vector.broadcast %125 : vector<12x1xf32> to vector<12x12xf32>
    %127 = arith.subf %123, %126 : vector<12x12xf32>
    %128 = math.exp %127 : vector<12x12xf32>
    %cst_32 = arith.constant dense<0.000000e+00> : vector<12xf32>
    %129 = vector.multi_reduction <add>, %128, %cst_32 [1] : vector<12x12xf32> to vector<12xf32>
    %130 = vector.shape_cast %129 : vector<12xf32> to vector<12x1xf32>
    %131 = tpu.reciprocal %130 {approx = true} : vector<12x1xf32> -> vector<12x1xf32>
    %132 = vector.broadcast %131 : vector<12x1xf32> to vector<12x12xf32>
    %133 = arith.mulf %128, %132 : vector<12x12xf32>
    %134 = arith.truncf %133 : vector<12x12xf32> to vector<12x12xbf16>
    %135 = vector.broadcast %20 : vector<1x128xbf16> to vector<12x128xbf16>
    %136 = arith.mulf %97, %135 : vector<12x128xbf16>
    %cst_33 = arith.constant dense<0.000000e+00> : vector<12x128xf32>
    %137 = tpu.matmul %134, %136, %cst_33 {dimension_numbers = #tpu.dot_dimension_numbers<[1], [0], [0], [1], [0, 0, 1, 1], [], []>} : vector<12x12xbf16>, vector<12x128xbf16>, vector<12x128xf32> -> vector<12x128xf32>
    %138 = arith.addf %118, %137 : vector<12x128xf32>
    %139 = vector.broadcast %28 : vector<1x128xbf16> to vector<12x128xbf16>
    %140 = arith.mulf %89, %139 : vector<12x128xbf16>
    %cst_34 = arith.constant dense<0.000000e+00> : vector<12x12xf32>
    %141 = tpu.matmul %140, %93, %cst_34 {dimension_numbers = #tpu.dot_dimension_numbers<[1], [1], [0], [0], [0, 0, 1, 0], [], []>} : vector<12x128xbf16>, vector<12x128xbf16>, vector<12x12xf32> -> vector<12x12xf32>
    %cst_35 = arith.constant 0.353553385 : f32
    %142 = vector.broadcast %cst_35 : f32 to vector<12x12xf32>
    %143 = arith.mulf %141, %142 : vector<12x12xf32>
    %cst_36 = arith.constant dense<0xFF800000> : vector<12xf32>
    %144 = vector.multi_reduction <maximumf>, %143, %cst_36 [1] : vector<12x12xf32> to vector<12xf32>
    %145 = vector.shape_cast %144 : vector<12xf32> to vector<12x1xf32>
    %146 = vector.broadcast %145 : vector<12x1xf32> to vector<12x12xf32>
    %147 = arith.subf %143, %146 : vector<12x12xf32>
    %148 = math.exp %147 : vector<12x12xf32>
    %cst_37 = arith.constant dense<0.000000e+00> : vector<12xf32>
    %149 = vector.multi_reduction <add>, %148, %cst_37 [1] : vector<12x12xf32> to vector<12xf32>
    %150 = vector.shape_cast %149 : vector<12xf32> to vector<12x1xf32>
    %151 = tpu.reciprocal %150 {approx = true} : vector<12x1xf32> -> vector<12x1xf32>
    %152 = vector.broadcast %151 : vector<12x1xf32> to vector<12x12xf32>
    %153 = arith.mulf %148, %152 : vector<12x12xf32>
    %154 = arith.truncf %153 : vector<12x12xf32> to vector<12x12xbf16>
    %155 = vector.broadcast %28 : vector<1x128xbf16> to vector<12x128xbf16>
    %156 = arith.mulf %97, %155 : vector<12x128xbf16>
    %cst_38 = arith.constant dense<0.000000e+00> : vector<12x128xf32>
    %157 = tpu.matmul %154, %156, %cst_38 {dimension_numbers = #tpu.dot_dimension_numbers<[1], [0], [0], [1], [0, 0, 1, 1], [], []>} : vector<12x12xbf16>, vector<12x128xbf16>, vector<12x128xf32> -> vector<12x128xf32>
    %158 = arith.addf %138, %157 : vector<12x128xf32>
    %159 = vector.broadcast %36 : vector<1x128xbf16> to vector<12x128xbf16>
    %160 = arith.mulf %89, %159 : vector<12x128xbf16>
    %cst_39 = arith.constant dense<0.000000e+00> : vector<12x12xf32>
    %161 = tpu.matmul %160, %93, %cst_39 {dimension_numbers = #tpu.dot_dimension_numbers<[1], [1], [0], [0], [0, 0, 1, 0], [], []>} : vector<12x128xbf16>, vector<12x128xbf16>, vector<12x12xf32> -> vector<12x12xf32>
    %cst_40 = arith.constant 0.353553385 : f32
    %162 = vector.broadcast %cst_40 : f32 to vector<12x12xf32>
    %163 = arith.mulf %161, %162 : vector<12x12xf32>
    %cst_41 = arith.constant dense<0xFF800000> : vector<12xf32>
    %164 = vector.multi_reduction <maximumf>, %163, %cst_41 [1] : vector<12x12xf32> to vector<12xf32>
    %165 = vector.shape_cast %164 : vector<12xf32> to vector<12x1xf32>
    %166 = vector.broadcast %165 : vector<12x1xf32> to vector<12x12xf32>
    %167 = arith.subf %163, %166 : vector<12x12xf32>
    %168 = math.exp %167 : vector<12x12xf32>
    %cst_42 = arith.constant dense<0.000000e+00> : vector<12xf32>
    %169 = vector.multi_reduction <add>, %168, %cst_42 [1] : vector<12x12xf32> to vector<12xf32>
    %170 = vector.shape_cast %169 : vector<12xf32> to vector<12x1xf32>
    %171 = tpu.reciprocal %170 {approx = true} : vector<12x1xf32> -> vector<12x1xf32>
    %172 = vector.broadcast %171 : vector<12x1xf32> to vector<12x12xf32>
    %173 = arith.mulf %168, %172 : vector<12x12xf32>
    %174 = arith.truncf %173 : vector<12x12xf32> to vector<12x12xbf16>
    %175 = vector.broadcast %36 : vector<1x128xbf16> to vector<12x128xbf16>
    %176 = arith.mulf %97, %175 : vector<12x128xbf16>
    %cst_43 = arith.constant dense<0.000000e+00> : vector<12x128xf32>
    %177 = tpu.matmul %174, %176, %cst_43 {dimension_numbers = #tpu.dot_dimension_numbers<[1], [0], [0], [1], [0, 0, 1, 1], [], []>} : vector<12x12xbf16>, vector<12x128xbf16>, vector<12x128xf32> -> vector<12x128xf32>
    %178 = arith.addf %158, %177 : vector<12x128xf32>
    %179 = arith.truncf %178 : vector<12x128xf32> to vector<12x128xbf16>
    %180 = vector.extract_strided_slice %58 {offsets = [0, 384], sizes = [128, 128], strides = [1, 1]} : vector<128x512xbf16> to vector<128x128xbf16>
    %cst_44 = arith.constant dense<0.000000e+00> : vector<12x128xf32>
    %181 = tpu.matmul %179, %180, %cst_44 {dimension_numbers = #tpu.dot_dimension_numbers<[1], [0], [0], [1], [0, 0, 1, 1], [], []>} : vector<12x128xbf16>, vector<128x128xbf16>, vector<12x128xf32> -> vector<12x128xf32>
    %182 = arith.addf %44, %181 : vector<12x128xf32>
    %183 = vector.broadcast %52 : vector<1x128xf32> to vector<12x128xf32>
    %184 = arith.addf %182, %183 : vector<12x128xf32>
    %185 = vector.broadcast %4 : vector<1x128xf32> to vector<12x128xf32>
    %186 = arith.mulf %184, %185 : vector<12x128xf32>
    %cst_45 = arith.constant dense<0.000000e+00> : vector<12xf32>
    %187 = vector.multi_reduction <add>, %186, %cst_45 [1] : vector<12x128xf32> to vector<12xf32>
    %188 = vector.shape_cast %187 : vector<12xf32> to vector<12x1xf32>
    %cst_46 = arith.constant 3.125000e-02 : f32
    %189 = vector.broadcast %cst_46 : f32 to vector<12x1xf32>
    %190 = arith.mulf %188, %189 : vector<12x1xf32>
    %191 = vector.broadcast %190 : vector<12x1xf32> to vector<12x128xf32>
    %192 = arith.subf %186, %191 : vector<12x128xf32>
    %193 = vector.broadcast %4 : vector<1x128xf32> to vector<12x128xf32>
    %194 = arith.mulf %192, %193 : vector<12x128xf32>
    %195 = arith.mulf %194, %194 : vector<12x128xf32>
    %cst_47 = arith.constant dense<0.000000e+00> : vector<12xf32>
    %196 = vector.multi_reduction <add>, %195, %cst_47 [1] : vector<12x128xf32> to vector<12xf32>
    %197 = vector.shape_cast %196 : vector<12xf32> to vector<12x1xf32>
    %cst_48 = arith.constant 3.125000e-02 : f32
    %198 = vector.broadcast %cst_48 : f32 to vector<12x1xf32>
    %199 = arith.mulf %197, %198 : vector<12x1xf32>
    %cst_49 = arith.constant 9.99999974E-6 : f32
    %200 = vector.broadcast %cst_49 : f32 to vector<12x1xf32>
    %201 = arith.addf %199, %200 : vector<12x1xf32>
    %202 = math.rsqrt %201 : vector<12x1xf32>
    %203 = vector.broadcast %202 : vector<12x1xf32> to vector<12x128xf32>
    %204 = arith.mulf %194, %203 : vector<12x128xf32>
    %205 = vector.broadcast %53 : vector<1x128xf32> to vector<12x128xf32>
    %206 = arith.mulf %204, %205 : vector<12x128xf32>
    %207 = vector.broadcast %54 : vector<1x128xf32> to vector<12x128xf32>
    %208 = arith.addf %206, %207 : vector<12x128xf32>
    %209 = arith.truncf %208 : vector<12x128xf32> to vector<12x128xbf16>
    %c0_50 = arith.constant 0 : index
    %c0_51 = arith.constant 0 : index
    %c0_52 = arith.constant 0 : index
    %210 = vector.load %arg6[%c0_50, %c0_51, %c0_52] : memref<4x128x128xbf16, #tpu.memory_space<vmem>>, vector<1x128x128xbf16>
    %211 = vector.shape_cast %210 : vector<1x128x128xbf16> to vector<128x128xbf16>
    %cst_53 = arith.constant dense<0.000000e+00> : vector<12x128xf32>
    %212 = tpu.matmul %209, %211, %cst_53 {dimension_numbers = #tpu.dot_dimension_numbers<[1], [0], [0], [1], [0, 0, 1, 1], [], []>} : vector<12x128xbf16>, vector<128x128xbf16>, vector<12x128xf32> -> vector<12x128xf32>
    %213 = vector.broadcast %55 : vector<1x128xf32> to vector<12x128xf32>
    %214 = arith.addf %212, %213 : vector<12x128xf32>
    %cst_54 = arith.constant 1.702000e+00 : f32
    %215 = vector.broadcast %cst_54 : f32 to vector<12x128xf32>
    %216 = arith.mulf %215, %214 : vector<12x128xf32>
    %217 = arith.negf %216 : vector<12x128xf32>
    %218 = math.exp %217 : vector<12x128xf32>
    %cst_55 = arith.constant 1.000000e+00 : f32
    %219 = vector.broadcast %cst_55 : f32 to vector<12x128xf32>
    %220 = arith.addf %219, %218 : vector<12x128xf32>
    %221 = arith.divf %219, %220 : vector<12x128xf32>
    %222 = arith.mulf %214, %221 : vector<12x128xf32>
    %223 = arith.truncf %222 : vector<12x128xf32> to vector<12x128xbf16>
    %c0_56 = arith.constant 0 : index
    %c0_57 = arith.constant 0 : index
    %c0_58 = arith.constant 0 : index
    %224 = vector.load %arg7[%c0_56, %c0_57, %c0_58] : memref<4x128x128xbf16, #tpu.memory_space<vmem>>, vector<1x128x128xbf16>
    %225 = vector.shape_cast %224 : vector<1x128x128xbf16> to vector<128x128xbf16>
    %cst_59 = arith.constant dense<0.000000e+00> : vector<12x128xf32>
    %226 = tpu.matmul %223, %225, %cst_59 {dimension_numbers = #tpu.dot_dimension_numbers<[1], [0], [0], [1], [0, 0, 1, 1], [], []>} : vector<12x128xbf16>, vector<128x128xbf16>, vector<12x128xf32> -> vector<12x128xf32>
    %227 = arith.addf %184, %226 : vector<12x128xf32>
    %228 = vector.broadcast %56 : vector<1x128xf32> to vector<12x128xf32>
    %229 = arith.addf %227, %228 : vector<12x128xf32>
    %230 = vector.extract_strided_slice %229 {offsets = [0, 0], sizes = [8, 128], strides = [1, 1]} : vector<12x128xf32> to vector<8x128xf32>
    %c1 = arith.constant 1 : index
    %c0_60 = arith.constant 0 : index
    %c0_61 = arith.constant 0 : index
    %231 = vector.load %arg3[%c1, %c0_60, %c0_61] : memref<2x4x128xf32, #tpu.memory_space<vmem>>, vector<1x4x128xf32>
    %232 = vector.shape_cast %231 : vector<1x4x128xf32> to vector<4x128xf32>
    %233 = tpu.concatenate %230, %232 in 0 : vector<8x128xf32>, vector<4x128xf32> -> vector<12x128xf32>
    %c1_62 = arith.constant 1 : index
    %c0_63 = arith.constant 0 : index
    %c0_64 = arith.constant 0 : index
    %234 = vector.load %arg8[%c1_62, %c0_63, %c0_64] : memref<4x10x128xf32, #tpu.memory_space<vmem>>, vector<1x10x128xf32>
    %235 = vector.shape_cast %234 : vector<1x10x128xf32> to vector<10x128xf32>
    %236 = vector.extract_strided_slice %235 {offsets = [0, 0], sizes = [1, 128], strides = [1, 1]} : vector<10x128xf32> to vector<1x128xf32>
    %237 = vector.extract_strided_slice %235 {offsets = [1, 0], sizes = [1, 128], strides = [1, 1]} : vector<10x128xf32> to vector<1x128xf32>
    %238 = vector.extract_strided_slice %235 {offsets = [2, 0], sizes = [1, 128], strides = [1, 1]} : vector<10x128xf32> to vector<1x128xf32>
    %239 = vector.extract_strided_slice %235 {offsets = [3, 0], sizes = [1, 128], strides = [1, 1]} : vector<10x128xf32> to vector<1x128xf32>
    %240 = vector.extract_strided_slice %235 {offsets = [4, 0], sizes = [1, 128], strides = [1, 1]} : vector<10x128xf32> to vector<1x128xf32>
    %241 = vector.extract_strided_slice %235 {offsets = [5, 0], sizes = [1, 128], strides = [1, 1]} : vector<10x128xf32> to vector<1x128xf32>
    %242 = vector.extract_strided_slice %235 {offsets = [6, 0], sizes = [1, 128], strides = [1, 1]} : vector<10x128xf32> to vector<1x128xf32>
    %243 = vector.extract_strided_slice %235 {offsets = [7, 0], sizes = [1, 128], strides = [1, 1]} : vector<10x128xf32> to vector<1x128xf32>
    %244 = vector.extract_strided_slice %235 {offsets = [8, 0], sizes = [1, 128], strides = [1, 1]} : vector<10x128xf32> to vector<1x128xf32>
    %245 = vector.extract_strided_slice %235 {offsets = [9, 0], sizes = [1, 128], strides = [1, 1]} : vector<10x128xf32> to vector<1x128xf32>
    %c1_65 = arith.constant 1 : index
    %c0_66 = arith.constant 0 : index
    %c0_67 = arith.constant 0 : index
    %246 = vector.load %arg5[%c1_65, %c0_66, %c0_67] : memref<4x128x512xbf16, #tpu.memory_space<vmem>>, vector<1x128x512xbf16>
    %247 = vector.shape_cast %246 : vector<1x128x512xbf16> to vector<128x512xbf16>
    %248 = vector.broadcast %4 : vector<1x128xf32> to vector<12x128xf32>
    %249 = arith.mulf %233, %248 : vector<12x128xf32>
    %cst_68 = arith.constant dense<0.000000e+00> : vector<12xf32>
    %250 = vector.multi_reduction <add>, %249, %cst_68 [1] : vector<12x128xf32> to vector<12xf32>
    %251 = vector.shape_cast %250 : vector<12xf32> to vector<12x1xf32>
    %cst_69 = arith.constant 3.125000e-02 : f32
    %252 = vector.broadcast %cst_69 : f32 to vector<12x1xf32>
    %253 = arith.mulf %251, %252 : vector<12x1xf32>
    %254 = vector.broadcast %253 : vector<12x1xf32> to vector<12x128xf32>
    %255 = arith.subf %249, %254 : vector<12x128xf32>
    %256 = vector.broadcast %4 : vector<1x128xf32> to vector<12x128xf32>
    %257 = arith.mulf %255, %256 : vector<12x128xf32>
    %258 = arith.mulf %257, %257 : vector<12x128xf32>
    %cst_70 = arith.constant dense<0.000000e+00> : vector<12xf32>
    %259 = vector.multi_reduction <add>, %258, %cst_70 [1] : vector<12x128xf32> to vector<12xf32>
    %260 = vector.shape_cast %259 : vector<12xf32> to vector<12x1xf32>
    %cst_71 = arith.constant 3.125000e-02 : f32
    %261 = vector.broadcast %cst_71 : f32 to vector<12x1xf32>
    %262 = arith.mulf %260, %261 : vector<12x1xf32>
    %cst_72 = arith.constant 9.99999974E-6 : f32
    %263 = vector.broadcast %cst_72 : f32 to vector<12x1xf32>
    %264 = arith.addf %262, %263 : vector<12x1xf32>
    %265 = math.rsqrt %264 : vector<12x1xf32>
    %266 = vector.broadcast %265 : vector<12x1xf32> to vector<12x128xf32>
    %267 = arith.mulf %257, %266 : vector<12x128xf32>
    %268 = vector.broadcast %236 : vector<1x128xf32> to vector<12x128xf32>
    %269 = arith.mulf %267, %268 : vector<12x128xf32>
    %270 = vector.broadcast %237 : vector<1x128xf32> to vector<12x128xf32>
    %271 = arith.addf %269, %270 : vector<12x128xf32>
    %272 = arith.truncf %271 : vector<12x128xf32> to vector<12x128xbf16>
    %273 = vector.extract_strided_slice %247 {offsets = [0, 0], sizes = [128, 384], strides = [1, 1]} : vector<128x512xbf16> to vector<128x384xbf16>
    %cst_73 = arith.constant dense<0.000000e+00> : vector<12x384xf32>
    %274 = tpu.matmul %272, %273, %cst_73 {dimension_numbers = #tpu.dot_dimension_numbers<[1], [0], [0], [1], [0, 0, 1, 1], [], []>} : vector<12x128xbf16>, vector<128x384xbf16>, vector<12x384xf32> -> vector<12x384xf32>
    %275 = vector.extract_strided_slice %274 {offsets = [0, 0], sizes = [12, 128], strides = [1, 1]} : vector<12x384xf32> to vector<12x128xf32>
    %276 = vector.broadcast %238 : vector<1x128xf32> to vector<12x128xf32>
    %277 = arith.addf %275, %276 : vector<12x128xf32>
    %278 = arith.truncf %277 : vector<12x128xf32> to vector<12x128xbf16>
    %279 = vector.extract_strided_slice %274 {offsets = [0, 128], sizes = [12, 128], strides = [1, 1]} : vector<12x384xf32> to vector<12x128xf32>
    %280 = vector.broadcast %239 : vector<1x128xf32> to vector<12x128xf32>
    %281 = arith.addf %279, %280 : vector<12x128xf32>
    %282 = arith.truncf %281 : vector<12x128xf32> to vector<12x128xbf16>
    %283 = vector.extract_strided_slice %274 {offsets = [0, 256], sizes = [12, 128], strides = [1, 1]} : vector<12x384xf32> to vector<12x128xf32>
    %284 = vector.broadcast %240 : vector<1x128xf32> to vector<12x128xf32>
    %285 = arith.addf %283, %284 : vector<12x128xf32>
    %286 = arith.truncf %285 : vector<12x128xf32> to vector<12x128xbf16>
    %cst_74 = arith.constant 0.000000e+00 : f32
    %287 = vector.broadcast %cst_74 : f32 to vector<12x128xf32>
    %288 = vector.broadcast %12 : vector<1x128xbf16> to vector<12x128xbf16>
    %289 = arith.mulf %278, %288 : vector<12x128xbf16>
    %cst_75 = arith.constant dense<0.000000e+00> : vector<12x12xf32>
    %290 = tpu.matmul %289, %282, %cst_75 {dimension_numbers = #tpu.dot_dimension_numbers<[1], [1], [0], [0], [0, 0, 1, 0], [], []>} : vector<12x128xbf16>, vector<12x128xbf16>, vector<12x12xf32> -> vector<12x12xf32>
    %cst_76 = arith.constant 0.353553385 : f32
    %291 = vector.broadcast %cst_76 : f32 to vector<12x12xf32>
    %292 = arith.mulf %290, %291 : vector<12x12xf32>
    %cst_77 = arith.constant dense<0xFF800000> : vector<12xf32>
    %293 = vector.multi_reduction <maximumf>, %292, %cst_77 [1] : vector<12x12xf32> to vector<12xf32>
    %294 = vector.shape_cast %293 : vector<12xf32> to vector<12x1xf32>
    %295 = vector.broadcast %294 : vector<12x1xf32> to vector<12x12xf32>
    %296 = arith.subf %292, %295 : vector<12x12xf32>
    %297 = math.exp %296 : vector<12x12xf32>
    %cst_78 = arith.constant dense<0.000000e+00> : vector<12xf32>
    %298 = vector.multi_reduction <add>, %297, %cst_78 [1] : vector<12x12xf32> to vector<12xf32>
    %299 = vector.shape_cast %298 : vector<12xf32> to vector<12x1xf32>
    %300 = tpu.reciprocal %299 {approx = true} : vector<12x1xf32> -> vector<12x1xf32>
    %301 = vector.broadcast %300 : vector<12x1xf32> to vector<12x12xf32>
    %302 = arith.mulf %297, %301 : vector<12x12xf32>
    %303 = arith.truncf %302 : vector<12x12xf32> to vector<12x12xbf16>
    %304 = vector.broadcast %12 : vector<1x128xbf16> to vector<12x128xbf16>
    %305 = arith.mulf %286, %304 : vector<12x128xbf16>
    %cst_79 = arith.constant dense<0.000000e+00> : vector<12x128xf32>
    %306 = tpu.matmul %303, %305, %cst_79 {dimension_numbers = #tpu.dot_dimension_numbers<[1], [0], [0], [1], [0, 0, 1, 1], [], []>} : vector<12x12xbf16>, vector<12x128xbf16>, vector<12x128xf32> -> vector<12x128xf32>
    %307 = arith.addf %287, %306 : vector<12x128xf32>
    %308 = vector.broadcast %20 : vector<1x128xbf16> to vector<12x128xbf16>
    %309 = arith.mulf %278, %308 : vector<12x128xbf16>
    %cst_80 = arith.constant dense<0.000000e+00> : vector<12x12xf32>
    %310 = tpu.matmul %309, %282, %cst_80 {dimension_numbers = #tpu.dot_dimension_numbers<[1], [1], [0], [0], [0, 0, 1, 0], [], []>} : vector<12x128xbf16>, vector<12x128xbf16>, vector<12x12xf32> -> vector<12x12xf32>
    %cst_81 = arith.constant 0.353553385 : f32
    %311 = vector.broadcast %cst_81 : f32 to vector<12x12xf32>
    %312 = arith.mulf %310, %311 : vector<12x12xf32>
    %cst_82 = arith.constant dense<0xFF800000> : vector<12xf32>
    %313 = vector.multi_reduction <maximumf>, %312, %cst_82 [1] : vector<12x12xf32> to vector<12xf32>
    %314 = vector.shape_cast %313 : vector<12xf32> to vector<12x1xf32>
    %315 = vector.broadcast %314 : vector<12x1xf32> to vector<12x12xf32>
    %316 = arith.subf %312, %315 : vector<12x12xf32>
    %317 = math.exp %316 : vector<12x12xf32>
    %cst_83 = arith.constant dense<0.000000e+00> : vector<12xf32>
    %318 = vector.multi_reduction <add>, %317, %cst_83 [1] : vector<12x12xf32> to vector<12xf32>
    %319 = vector.shape_cast %318 : vector<12xf32> to vector<12x1xf32>
    %320 = tpu.reciprocal %319 {approx = true} : vector<12x1xf32> -> vector<12x1xf32>
    %321 = vector.broadcast %320 : vector<12x1xf32> to vector<12x12xf32>
    %322 = arith.mulf %317, %321 : vector<12x12xf32>
    %323 = arith.truncf %322 : vector<12x12xf32> to vector<12x12xbf16>
    %324 = vector.broadcast %20 : vector<1x128xbf16> to vector<12x128xbf16>
    %325 = arith.mulf %286, %324 : vector<12x128xbf16>
    %cst_84 = arith.constant dense<0.000000e+00> : vector<12x128xf32>
    %326 = tpu.matmul %323, %325, %cst_84 {dimension_numbers = #tpu.dot_dimension_numbers<[1], [0], [0], [1], [0, 0, 1, 1], [], []>} : vector<12x12xbf16>, vector<12x128xbf16>, vector<12x128xf32> -> vector<12x128xf32>
    %327 = arith.addf %307, %326 : vector<12x128xf32>
    %328 = vector.broadcast %28 : vector<1x128xbf16> to vector<12x128xbf16>
    %329 = arith.mulf %278, %328 : vector<12x128xbf16>
    %cst_85 = arith.constant dense<0.000000e+00> : vector<12x12xf32>
    %330 = tpu.matmul %329, %282, %cst_85 {dimension_numbers = #tpu.dot_dimension_numbers<[1], [1], [0], [0], [0, 0, 1, 0], [], []>} : vector<12x128xbf16>, vector<12x128xbf16>, vector<12x12xf32> -> vector<12x12xf32>
    %cst_86 = arith.constant 0.353553385 : f32
    %331 = vector.broadcast %cst_86 : f32 to vector<12x12xf32>
    %332 = arith.mulf %330, %331 : vector<12x12xf32>
    %cst_87 = arith.constant dense<0xFF800000> : vector<12xf32>
    %333 = vector.multi_reduction <maximumf>, %332, %cst_87 [1] : vector<12x12xf32> to vector<12xf32>
    %334 = vector.shape_cast %333 : vector<12xf32> to vector<12x1xf32>
    %335 = vector.broadcast %334 : vector<12x1xf32> to vector<12x12xf32>
    %336 = arith.subf %332, %335 : vector<12x12xf32>
    %337 = math.exp %336 : vector<12x12xf32>
    %cst_88 = arith.constant dense<0.000000e+00> : vector<12xf32>
    %338 = vector.multi_reduction <add>, %337, %cst_88 [1] : vector<12x12xf32> to vector<12xf32>
    %339 = vector.shape_cast %338 : vector<12xf32> to vector<12x1xf32>
    %340 = tpu.reciprocal %339 {approx = true} : vector<12x1xf32> -> vector<12x1xf32>
    %341 = vector.broadcast %340 : vector<12x1xf32> to vector<12x12xf32>
    %342 = arith.mulf %337, %341 : vector<12x12xf32>
    %343 = arith.truncf %342 : vector<12x12xf32> to vector<12x12xbf16>
    %344 = vector.broadcast %28 : vector<1x128xbf16> to vector<12x128xbf16>
    %345 = arith.mulf %286, %344 : vector<12x128xbf16>
    %cst_89 = arith.constant dense<0.000000e+00> : vector<12x128xf32>
    %346 = tpu.matmul %343, %345, %cst_89 {dimension_numbers = #tpu.dot_dimension_numbers<[1], [0], [0], [1], [0, 0, 1, 1], [], []>} : vector<12x12xbf16>, vector<12x128xbf16>, vector<12x128xf32> -> vector<12x128xf32>
    %347 = arith.addf %327, %346 : vector<12x128xf32>
    %348 = vector.broadcast %36 : vector<1x128xbf16> to vector<12x128xbf16>
    %349 = arith.mulf %278, %348 : vector<12x128xbf16>
    %cst_90 = arith.constant dense<0.000000e+00> : vector<12x12xf32>
    %350 = tpu.matmul %349, %282, %cst_90 {dimension_numbers = #tpu.dot_dimension_numbers<[1], [1], [0], [0], [0, 0, 1, 0], [], []>} : vector<12x128xbf16>, vector<12x128xbf16>, vector<12x12xf32> -> vector<12x12xf32>
    %cst_91 = arith.constant 0.353553385 : f32
    %351 = vector.broadcast %cst_91 : f32 to vector<12x12xf32>
    %352 = arith.mulf %350, %351 : vector<12x12xf32>
    %cst_92 = arith.constant dense<0xFF800000> : vector<12xf32>
    %353 = vector.multi_reduction <maximumf>, %352, %cst_92 [1] : vector<12x12xf32> to vector<12xf32>
    %354 = vector.shape_cast %353 : vector<12xf32> to vector<12x1xf32>
    %355 = vector.broadcast %354 : vector<12x1xf32> to vector<12x12xf32>
    %356 = arith.subf %352, %355 : vector<12x12xf32>
    %357 = math.exp %356 : vector<12x12xf32>
    %cst_93 = arith.constant dense<0.000000e+00> : vector<12xf32>
    %358 = vector.multi_reduction <add>, %357, %cst_93 [1] : vector<12x12xf32> to vector<12xf32>
    %359 = vector.shape_cast %358 : vector<12xf32> to vector<12x1xf32>
    %360 = tpu.reciprocal %359 {approx = true} : vector<12x1xf32> -> vector<12x1xf32>
    %361 = vector.broadcast %360 : vector<12x1xf32> to vector<12x12xf32>
    %362 = arith.mulf %357, %361 : vector<12x12xf32>
    %363 = arith.truncf %362 : vector<12x12xf32> to vector<12x12xbf16>
    %364 = vector.broadcast %36 : vector<1x128xbf16> to vector<12x128xbf16>
    %365 = arith.mulf %286, %364 : vector<12x128xbf16>
    %cst_94 = arith.constant dense<0.000000e+00> : vector<12x128xf32>
    %366 = tpu.matmul %363, %365, %cst_94 {dimension_numbers = #tpu.dot_dimension_numbers<[1], [0], [0], [1], [0, 0, 1, 1], [], []>} : vector<12x12xbf16>, vector<12x128xbf16>, vector<12x128xf32> -> vector<12x128xf32>
    %367 = arith.addf %347, %366 : vector<12x128xf32>
    %368 = arith.truncf %367 : vector<12x128xf32> to vector<12x128xbf16>
    %369 = vector.extract_strided_slice %247 {offsets = [0, 384], sizes = [128, 128], strides = [1, 1]} : vector<128x512xbf16> to vector<128x128xbf16>
    %cst_95 = arith.constant dense<0.000000e+00> : vector<12x128xf32>
    %370 = tpu.matmul %368, %369, %cst_95 {dimension_numbers = #tpu.dot_dimension_numbers<[1], [0], [0], [1], [0, 0, 1, 1], [], []>} : vector<12x128xbf16>, vector<128x128xbf16>, vector<12x128xf32> -> vector<12x128xf32>
    %371 = arith.addf %233, %370 : vector<12x128xf32>
    %372 = vector.broadcast %241 : vector<1x128xf32> to vector<12x128xf32>
    %373 = arith.addf %371, %372 : vector<12x128xf32>
    %374 = vector.broadcast %4 : vector<1x128xf32> to vector<12x128xf32>
    %375 = arith.mulf %373, %374 : vector<12x128xf32>
    %cst_96 = arith.constant dense<0.000000e+00> : vector<12xf32>
    %376 = vector.multi_reduction <add>, %375, %cst_96 [1] : vector<12x128xf32> to vector<12xf32>
    %377 = vector.shape_cast %376 : vector<12xf32> to vector<12x1xf32>
    %cst_97 = arith.constant 3.125000e-02 : f32
    %378 = vector.broadcast %cst_97 : f32 to vector<12x1xf32>
    %379 = arith.mulf %377, %378 : vector<12x1xf32>
    %380 = vector.broadcast %379 : vector<12x1xf32> to vector<12x128xf32>
    %381 = arith.subf %375, %380 : vector<12x128xf32>
    %382 = vector.broadcast %4 : vector<1x128xf32> to vector<12x128xf32>
    %383 = arith.mulf %381, %382 : vector<12x128xf32>
    %384 = arith.mulf %383, %383 : vector<12x128xf32>
    %cst_98 = arith.constant dense<0.000000e+00> : vector<12xf32>
    %385 = vector.multi_reduction <add>, %384, %cst_98 [1] : vector<12x128xf32> to vector<12xf32>
    %386 = vector.shape_cast %385 : vector<12xf32> to vector<12x1xf32>
    %cst_99 = arith.constant 3.125000e-02 : f32
    %387 = vector.broadcast %cst_99 : f32 to vector<12x1xf32>
    %388 = arith.mulf %386, %387 : vector<12x1xf32>
    %cst_100 = arith.constant 9.99999974E-6 : f32
    %389 = vector.broadcast %cst_100 : f32 to vector<12x1xf32>
    %390 = arith.addf %388, %389 : vector<12x1xf32>
    %391 = math.rsqrt %390 : vector<12x1xf32>
    %392 = vector.broadcast %391 : vector<12x1xf32> to vector<12x128xf32>
    %393 = arith.mulf %383, %392 : vector<12x128xf32>
    %394 = vector.broadcast %242 : vector<1x128xf32> to vector<12x128xf32>
    %395 = arith.mulf %393, %394 : vector<12x128xf32>
    %396 = vector.broadcast %243 : vector<1x128xf32> to vector<12x128xf32>
    %397 = arith.addf %395, %396 : vector<12x128xf32>
    %398 = arith.truncf %397 : vector<12x128xf32> to vector<12x128xbf16>
    %c1_101 = arith.constant 1 : index
    %c0_102 = arith.constant 0 : index
    %c0_103 = arith.constant 0 : index
    %399 = vector.load %arg6[%c1_101, %c0_102, %c0_103] : memref<4x128x128xbf16, #tpu.memory_space<vmem>>, vector<1x128x128xbf16>
    %400 = vector.shape_cast %399 : vector<1x128x128xbf16> to vector<128x128xbf16>
    %cst_104 = arith.constant dense<0.000000e+00> : vector<12x128xf32>
    %401 = tpu.matmul %398, %400, %cst_104 {dimension_numbers = #tpu.dot_dimension_numbers<[1], [0], [0], [1], [0, 0, 1, 1], [], []>} : vector<12x128xbf16>, vector<128x128xbf16>, vector<12x128xf32> -> vector<12x128xf32>
    %402 = vector.broadcast %244 : vector<1x128xf32> to vector<12x128xf32>
    %403 = arith.addf %401, %402 : vector<12x128xf32>
    %cst_105 = arith.constant 1.702000e+00 : f32
    %404 = vector.broadcast %cst_105 : f32 to vector<12x128xf32>
    %405 = arith.mulf %404, %403 : vector<12x128xf32>
    %406 = arith.negf %405 : vector<12x128xf32>
    %407 = math.exp %406 : vector<12x128xf32>
    %cst_106 = arith.constant 1.000000e+00 : f32
    %408 = vector.broadcast %cst_106 : f32 to vector<12x128xf32>
    %409 = arith.addf %408, %407 : vector<12x128xf32>
    %410 = arith.divf %408, %409 : vector<12x128xf32>
    %411 = arith.mulf %403, %410 : vector<12x128xf32>
    %412 = arith.truncf %411 : vector<12x128xf32> to vector<12x128xbf16>
    %c1_107 = arith.constant 1 : index
    %c0_108 = arith.constant 0 : index
    %c0_109 = arith.constant 0 : index
    %413 = vector.load %arg7[%c1_107, %c0_108, %c0_109] : memref<4x128x128xbf16, #tpu.memory_space<vmem>>, vector<1x128x128xbf16>
    %414 = vector.shape_cast %413 : vector<1x128x128xbf16> to vector<128x128xbf16>
    %cst_110 = arith.constant dense<0.000000e+00> : vector<12x128xf32>
    %415 = tpu.matmul %412, %414, %cst_110 {dimension_numbers = #tpu.dot_dimension_numbers<[1], [0], [0], [1], [0, 0, 1, 1], [], []>} : vector<12x128xbf16>, vector<128x128xbf16>, vector<12x128xf32> -> vector<12x128xf32>
    %416 = arith.addf %373, %415 : vector<12x128xf32>
    %417 = vector.broadcast %245 : vector<1x128xf32> to vector<12x128xf32>
    %418 = arith.addf %416, %417 : vector<12x128xf32>
    %419 = vector.extract_strided_slice %418 {offsets = [0, 0], sizes = [8, 128], strides = [1, 1]} : vector<12x128xf32> to vector<8x128xf32>
    %c0_111 = arith.constant 0 : index
    %c0_112 = arith.constant 0 : index
    %c0_113 = arith.constant 0 : index
    %420 = vector.load %arg4[%c0_111, %c0_112, %c0_113] : memref<2x10x128xf32, #tpu.memory_space<vmem>>, vector<1x10x128xf32>
    %421 = vector.shape_cast %420 : vector<1x10x128xf32> to vector<10x128xf32>
    %422 = tpu.concatenate %419, %421 in 0 : vector<8x128xf32>, vector<10x128xf32> -> vector<18x128xf32>
    %c0_114 = arith.constant 0 : index
    %c0_115 = arith.constant 0 : index
    %c0_116 = arith.constant 0 : index
    %423 = vector.load %arg10[%c0_114, %c0_115, %c0_116] : memref<2x5x128xf32, #tpu.memory_space<vmem>>, vector<1x5x128xf32>
    %424 = vector.shape_cast %423 : vector<1x5x128xf32> to vector<5x128xf32>
    %425 = vector.extract_strided_slice %424 {offsets = [0, 0], sizes = [1, 128], strides = [1, 1]} : vector<5x128xf32> to vector<1x128xf32>
    %426 = vector.extract_strided_slice %424 {offsets = [1, 0], sizes = [1, 128], strides = [1, 1]} : vector<5x128xf32> to vector<1x128xf32>
    %427 = vector.extract_strided_slice %424 {offsets = [2, 0], sizes = [1, 128], strides = [1, 1]} : vector<5x128xf32> to vector<1x128xf32>
    %428 = vector.extract_strided_slice %424 {offsets = [3, 0], sizes = [1, 128], strides = [1, 1]} : vector<5x128xf32> to vector<1x128xf32>
    %429 = vector.extract_strided_slice %424 {offsets = [4, 0], sizes = [1, 128], strides = [1, 1]} : vector<5x128xf32> to vector<1x128xf32>
    %c0_117 = arith.constant 0 : index
    %c0_118 = arith.constant 0 : index
    %c0_119 = arith.constant 0 : index
    %430 = vector.load %arg9[%c0_117, %c0_118, %c0_119] : memref<2x128x640xbf16, #tpu.memory_space<vmem>>, vector<1x128x640xbf16>
    %431 = vector.shape_cast %430 : vector<1x128x640xbf16> to vector<128x640xbf16>
    %432 = vector.extract_strided_slice %431 {offsets = [0, 0], sizes = [128, 128], strides = [1, 1]} : vector<128x640xbf16> to vector<128x128xbf16>
    %cst_120 = arith.constant dense<0.000000e+00> : vector<8x128xf32>
    %433 = tpu.matmul %41, %432, %cst_120 {dimension_numbers = #tpu.dot_dimension_numbers<[1], [0], [0], [1], [0, 0, 1, 1], [], []>} : vector<8x128xbf16>, vector<128x128xbf16>, vector<8x128xf32> -> vector<8x128xf32>
    %434 = vector.broadcast %425 : vector<1x128xf32> to vector<8x128xf32>
    %435 = arith.addf %433, %434 : vector<8x128xf32>
    %436 = arith.truncf %435 : vector<8x128xf32> to vector<8x128xbf16>
    %437 = arith.truncf %422 : vector<18x128xf32> to vector<18x128xbf16>
    %438 = vector.extract_strided_slice %431 {offsets = [0, 128], sizes = [128, 128], strides = [1, 1]} : vector<128x640xbf16> to vector<128x128xbf16>
    %cst_121 = arith.constant dense<0.000000e+00> : vector<8x128xf32>
    %439 = tpu.matmul %436, %438, %cst_121 {dimension_numbers = #tpu.dot_dimension_numbers<[1], [0], [0], [1], [0, 0, 1, 1], [], []>} : vector<8x128xbf16>, vector<128x128xbf16>, vector<8x128xf32> -> vector<8x128xf32>
    %440 = arith.truncf %439 : vector<8x128xf32> to vector<8x128xbf16>
    %441 = vector.extract_strided_slice %431 {offsets = [0, 256], sizes = [128, 128], strides = [1, 1]} : vector<128x640xbf16> to vector<128x128xbf16>
    %cst_122 = arith.constant dense<0.000000e+00> : vector<18x128xf32>
    %442 = tpu.matmul %437, %441, %cst_122 {dimension_numbers = #tpu.dot_dimension_numbers<[1], [0], [0], [1], [0, 0, 1, 1], [], []>} : vector<18x128xbf16>, vector<128x128xbf16>, vector<18x128xf32> -> vector<18x128xf32>
    %443 = arith.truncf %442 : vector<18x128xf32> to vector<18x128xbf16>
    %cst_123 = arith.constant dense<0.000000e+00> : vector<8x18xf32>
    %444 = tpu.matmul %440, %443, %cst_123 {dimension_numbers = #tpu.dot_dimension_numbers<[1], [1], [0], [0], [0, 0, 1, 0], [], []>} : vector<8x128xbf16>, vector<18x128xbf16>, vector<8x18xf32> -> vector<8x18xf32>
    %cst_124 = arith.constant 0.176776692 : f32
    %445 = vector.broadcast %cst_124 : f32 to vector<8x18xf32>
    %446 = arith.mulf %444, %445 : vector<8x18xf32>
    %cst_125 = arith.constant dense<0xFF800000> : vector<8xf32>
    %447 = vector.multi_reduction <maximumf>, %446, %cst_125 [1] : vector<8x18xf32> to vector<8xf32>
    %448 = vector.shape_cast %447 : vector<8xf32> to vector<8x1xf32>
    %449 = vector.broadcast %448 : vector<8x1xf32> to vector<8x18xf32>
    %450 = arith.subf %446, %449 : vector<8x18xf32>
    %451 = math.exp %450 : vector<8x18xf32>
    %cst_126 = arith.constant dense<0.000000e+00> : vector<8xf32>
    %452 = vector.multi_reduction <add>, %451, %cst_126 [1] : vector<8x18xf32> to vector<8xf32>
    %453 = vector.shape_cast %452 : vector<8xf32> to vector<8x1xf32>
    %454 = tpu.reciprocal %453 {approx = true} : vector<8x1xf32> -> vector<8x1xf32>
    %455 = vector.broadcast %454 : vector<8x1xf32> to vector<8x18xf32>
    %456 = arith.mulf %451, %455 : vector<8x18xf32>
    %457 = arith.truncf %456 : vector<8x18xf32> to vector<8x18xbf16>
    %cst_127 = arith.constant dense<0.000000e+00> : vector<8x128xf32>
    %458 = tpu.matmul %457, %437, %cst_127 {dimension_numbers = #tpu.dot_dimension_numbers<[1], [0], [0], [1], [0, 0, 1, 1], [], []>} : vector<8x18xbf16>, vector<18x128xbf16>, vector<8x128xf32> -> vector<8x128xf32>
    %459 = arith.truncf %458 : vector<8x128xf32> to vector<8x128xbf16>
    %460 = vector.extract_strided_slice %431 {offsets = [0, 384], sizes = [128, 128], strides = [1, 1]} : vector<128x640xbf16> to vector<128x128xbf16>
    %cst_128 = arith.constant dense<0.000000e+00> : vector<8x128xf32>
    %461 = tpu.matmul %459, %460, %cst_128 {dimension_numbers = #tpu.dot_dimension_numbers<[1], [0], [0], [1], [0, 0, 1, 1], [], []>} : vector<8x128xbf16>, vector<128x128xbf16>, vector<8x128xf32> -> vector<8x128xf32>
    %462 = vector.broadcast %4 : vector<1x128xf32> to vector<8x128xf32>
    %463 = arith.mulf %461, %462 : vector<8x128xf32>
    %cst_129 = arith.constant dense<0.000000e+00> : vector<8xf32>
    %464 = vector.multi_reduction <add>, %463, %cst_129 [1] : vector<8x128xf32> to vector<8xf32>
    %465 = vector.shape_cast %464 : vector<8xf32> to vector<8x1xf32>
    %cst_130 = arith.constant 3.125000e-02 : f32
    %466 = vector.broadcast %cst_130 : f32 to vector<8x1xf32>
    %467 = arith.mulf %465, %466 : vector<8x1xf32>
    %468 = vector.broadcast %467 : vector<8x1xf32> to vector<8x128xf32>
    %469 = arith.subf %463, %468 : vector<8x128xf32>
    %470 = vector.broadcast %4 : vector<1x128xf32> to vector<8x128xf32>
    %471 = arith.mulf %469, %470 : vector<8x128xf32>
    %472 = arith.mulf %471, %471 : vector<8x128xf32>
    %cst_131 = arith.constant dense<0.000000e+00> : vector<8xf32>
    %473 = vector.multi_reduction <add>, %472, %cst_131 [1] : vector<8x128xf32> to vector<8xf32>
    %474 = vector.shape_cast %473 : vector<8xf32> to vector<8x1xf32>
    %cst_132 = arith.constant 3.125000e-02 : f32
    %475 = vector.broadcast %cst_132 : f32 to vector<8x1xf32>
    %476 = arith.mulf %474, %475 : vector<8x1xf32>
    %cst_133 = arith.constant 9.99999974E-6 : f32
    %477 = vector.broadcast %cst_133 : f32 to vector<8x1xf32>
    %478 = arith.addf %476, %477 : vector<8x1xf32>
    %479 = math.rsqrt %478 : vector<8x1xf32>
    %480 = vector.broadcast %479 : vector<8x1xf32> to vector<8x128xf32>
    %481 = arith.mulf %471, %480 : vector<8x128xf32>
    %482 = vector.broadcast %426 : vector<1x128xf32> to vector<8x128xf32>
    %483 = arith.mulf %481, %482 : vector<8x128xf32>
    %484 = vector.broadcast %427 : vector<1x128xf32> to vector<8x128xf32>
    %485 = arith.addf %483, %484 : vector<8x128xf32>
    %486 = arith.truncf %485 : vector<8x128xf32> to vector<8x128xbf16>
    %487 = vector.extract_strided_slice %431 {offsets = [0, 512], sizes = [128, 128], strides = [1, 1]} : vector<128x640xbf16> to vector<128x128xbf16>
    %cst_134 = arith.constant dense<0.000000e+00> : vector<8x128xf32>
    %488 = tpu.matmul %486, %487, %cst_134 {dimension_numbers = #tpu.dot_dimension_numbers<[1], [0], [0], [1], [0, 0, 1, 1], [], []>} : vector<8x128xbf16>, vector<128x128xbf16>, vector<8x128xf32> -> vector<8x128xf32>
    %489 = arith.addf %461, %435 : vector<8x128xf32>
    %490 = vector.broadcast %4 : vector<1x128xf32> to vector<8x128xf32>
    %491 = arith.mulf %489, %490 : vector<8x128xf32>
    %cst_135 = arith.constant dense<0.000000e+00> : vector<8xf32>
    %492 = vector.multi_reduction <add>, %491, %cst_135 [1] : vector<8x128xf32> to vector<8xf32>
    %493 = vector.shape_cast %492 : vector<8xf32> to vector<8x1xf32>
    %cst_136 = arith.constant 3.125000e-02 : f32
    %494 = vector.broadcast %cst_136 : f32 to vector<8x1xf32>
    %495 = arith.mulf %493, %494 : vector<8x1xf32>
    %496 = vector.broadcast %495 : vector<8x1xf32> to vector<8x128xf32>
    %497 = arith.subf %491, %496 : vector<8x128xf32>
    %498 = vector.broadcast %4 : vector<1x128xf32> to vector<8x128xf32>
    %499 = arith.mulf %497, %498 : vector<8x128xf32>
    %500 = arith.mulf %499, %499 : vector<8x128xf32>
    %cst_137 = arith.constant dense<0.000000e+00> : vector<8xf32>
    %501 = vector.multi_reduction <add>, %500, %cst_137 [1] : vector<8x128xf32> to vector<8xf32>
    %502 = vector.shape_cast %501 : vector<8xf32> to vector<8x1xf32>
    %cst_138 = arith.constant 3.125000e-02 : f32
    %503 = vector.broadcast %cst_138 : f32 to vector<8x1xf32>
    %504 = arith.mulf %502, %503 : vector<8x1xf32>
    %cst_139 = arith.constant 9.99999974E-6 : f32
    %505 = vector.broadcast %cst_139 : f32 to vector<8x1xf32>
    %506 = arith.addf %504, %505 : vector<8x1xf32>
    %507 = math.rsqrt %506 : vector<8x1xf32>
    %508 = vector.broadcast %507 : vector<8x1xf32> to vector<8x128xf32>
    %509 = arith.mulf %499, %508 : vector<8x128xf32>
    %510 = vector.broadcast %428 : vector<1x128xf32> to vector<8x128xf32>
    %511 = arith.mulf %509, %510 : vector<8x128xf32>
    %512 = vector.broadcast %429 : vector<1x128xf32> to vector<8x128xf32>
    %513 = arith.addf %511, %512 : vector<8x128xf32>
    %c0_140 = arith.constant 0 : index
    %c0_141 = arith.constant 0 : index
    %c0_142 = arith.constant 0 : index
    %c0_143 = arith.constant 0 : index
    %514 = vector.load %arg12[%c0_140, %c0_141, %c0_142, %c0_143] : memref<2x1x8x128xf32, #tpu.memory_space<vmem>>, vector<1x1x8x128xf32>
    %515 = vector.shape_cast %514 : vector<1x1x8x128xf32> to vector<8x128xf32>
    %516 = vector.shape_cast %488 : vector<8x128xf32> to vector<1x1x8x128xf32>
    tpu.vector_store %arg12[%c0_140, %c0_141, %c0_142, %c0_143], %516 {strides = array<i32>} : memref<2x1x8x128xf32, #tpu.memory_space<vmem>>, vector<1x1x8x128xf32>,
    %517 = vector.extract_strided_slice %513 {offsets = [0, 0], sizes = [3, 128], strides = [1, 1]} : vector<8x128xf32> to vector<3x128xf32>
    %518 = tpu.concatenate %419, %517 in 0 : vector<8x128xf32>, vector<3x128xf32> -> vector<11x128xf32>
    %c2 = arith.constant 2 : index
    %c0_144 = arith.constant 0 : index
    %c0_145 = arith.constant 0 : index
    %519 = vector.load %arg8[%c2, %c0_144, %c0_145] : memref<4x10x128xf32, #tpu.memory_space<vmem>>, vector<1x10x128xf32>
    %520 = vector.shape_cast %519 : vector<1x10x128xf32> to vector<10x128xf32>
    %521 = vector.extract_strided_slice %520 {offsets = [0, 0], sizes = [1, 128], strides = [1, 1]} : vector<10x128xf32> to vector<1x128xf32>
    %522 = vector.extract_strided_slice %520 {offsets = [1, 0], sizes = [1, 128], strides = [1, 1]} : vector<10x128xf32> to vector<1x128xf32>
    %523 = vector.extract_strided_slice %520 {offsets = [2, 0], sizes = [1, 128], strides = [1, 1]} : vector<10x128xf32> to vector<1x128xf32>
    %524 = vector.extract_strided_slice %520 {offsets = [3, 0], sizes = [1, 128], strides = [1, 1]} : vector<10x128xf32> to vector<1x128xf32>
    %525 = vector.extract_strided_slice %520 {offsets = [4, 0], sizes = [1, 128], strides = [1, 1]} : vector<10x128xf32> to vector<1x128xf32>
    %526 = vector.extract_strided_slice %520 {offsets = [5, 0], sizes = [1, 128], strides = [1, 1]} : vector<10x128xf32> to vector<1x128xf32>
    %527 = vector.extract_strided_slice %520 {offsets = [6, 0], sizes = [1, 128], strides = [1, 1]} : vector<10x128xf32> to vector<1x128xf32>
    %528 = vector.extract_strided_slice %520 {offsets = [7, 0], sizes = [1, 128], strides = [1, 1]} : vector<10x128xf32> to vector<1x128xf32>
    %529 = vector.extract_strided_slice %520 {offsets = [8, 0], sizes = [1, 128], strides = [1, 1]} : vector<10x128xf32> to vector<1x128xf32>
    %530 = vector.extract_strided_slice %520 {offsets = [9, 0], sizes = [1, 128], strides = [1, 1]} : vector<10x128xf32> to vector<1x128xf32>
    %c2_146 = arith.constant 2 : index
    %c0_147 = arith.constant 0 : index
    %c0_148 = arith.constant 0 : index
    %531 = vector.load %arg5[%c2_146, %c0_147, %c0_148] : memref<4x128x512xbf16, #tpu.memory_space<vmem>>, vector<1x128x512xbf16>
    %532 = vector.shape_cast %531 : vector<1x128x512xbf16> to vector<128x512xbf16>
    %533 = vector.broadcast %4 : vector<1x128xf32> to vector<11x128xf32>
    %534 = arith.mulf %518, %533 : vector<11x128xf32>
    %cst_149 = arith.constant dense<0.000000e+00> : vector<11xf32>
    %535 = vector.multi_reduction <add>, %534, %cst_149 [1] : vector<11x128xf32> to vector<11xf32>
    %536 = vector.shape_cast %535 : vector<11xf32> to vector<11x1xf32>
    %cst_150 = arith.constant 3.125000e-02 : f32
    %537 = vector.broadcast %cst_150 : f32 to vector<11x1xf32>
    %538 = arith.mulf %536, %537 : vector<11x1xf32>
    %539 = vector.broadcast %538 : vector<11x1xf32> to vector<11x128xf32>
    %540 = arith.subf %534, %539 : vector<11x128xf32>
    %541 = vector.broadcast %4 : vector<1x128xf32> to vector<11x128xf32>
    %542 = arith.mulf %540, %541 : vector<11x128xf32>
    %543 = arith.mulf %542, %542 : vector<11x128xf32>
    %cst_151 = arith.constant dense<0.000000e+00> : vector<11xf32>
    %544 = vector.multi_reduction <add>, %543, %cst_151 [1] : vector<11x128xf32> to vector<11xf32>
    %545 = vector.shape_cast %544 : vector<11xf32> to vector<11x1xf32>
    %cst_152 = arith.constant 3.125000e-02 : f32
    %546 = vector.broadcast %cst_152 : f32 to vector<11x1xf32>
    %547 = arith.mulf %545, %546 : vector<11x1xf32>
    %cst_153 = arith.constant 9.99999974E-6 : f32
    %548 = vector.broadcast %cst_153 : f32 to vector<11x1xf32>
    %549 = arith.addf %547, %548 : vector<11x1xf32>
    %550 = math.rsqrt %549 : vector<11x1xf32>
    %551 = vector.broadcast %550 : vector<11x1xf32> to vector<11x128xf32>
    %552 = arith.mulf %542, %551 : vector<11x128xf32>
    %553 = vector.broadcast %521 : vector<1x128xf32> to vector<11x128xf32>
    %554 = arith.mulf %552, %553 : vector<11x128xf32>
    %555 = vector.broadcast %522 : vector<1x128xf32> to vector<11x128xf32>
    %556 = arith.addf %554, %555 : vector<11x128xf32>
    %557 = arith.truncf %556 : vector<11x128xf32> to vector<11x128xbf16>
    %558 = vector.extract_strided_slice %532 {offsets = [0, 0], sizes = [128, 384], strides = [1, 1]} : vector<128x512xbf16> to vector<128x384xbf16>
    %cst_154 = arith.constant dense<0.000000e+00> : vector<11x384xf32>
    %559 = tpu.matmul %557, %558, %cst_154 {dimension_numbers = #tpu.dot_dimension_numbers<[1], [0], [0], [1], [0, 0, 1, 1], [], []>} : vector<11x128xbf16>, vector<128x384xbf16>, vector<11x384xf32> -> vector<11x384xf32>
    %560 = vector.extract_strided_slice %559 {offsets = [0, 0], sizes = [11, 128], strides = [1, 1]} : vector<11x384xf32> to vector<11x128xf32>
    %561 = vector.broadcast %523 : vector<1x128xf32> to vector<11x128xf32>
    %562 = arith.addf %560, %561 : vector<11x128xf32>
    %563 = arith.truncf %562 : vector<11x128xf32> to vector<11x128xbf16>
    %564 = vector.extract_strided_slice %559 {offsets = [0, 128], sizes = [11, 128], strides = [1, 1]} : vector<11x384xf32> to vector<11x128xf32>
    %565 = vector.broadcast %524 : vector<1x128xf32> to vector<11x128xf32>
    %566 = arith.addf %564, %565 : vector<11x128xf32>
    %567 = arith.truncf %566 : vector<11x128xf32> to vector<11x128xbf16>
    %568 = vector.extract_strided_slice %559 {offsets = [0, 256], sizes = [11, 128], strides = [1, 1]} : vector<11x384xf32> to vector<11x128xf32>
    %569 = vector.broadcast %525 : vector<1x128xf32> to vector<11x128xf32>
    %570 = arith.addf %568, %569 : vector<11x128xf32>
    %571 = arith.truncf %570 : vector<11x128xf32> to vector<11x128xbf16>
    %cst_155 = arith.constant 0.000000e+00 : f32
    %572 = vector.broadcast %cst_155 : f32 to vector<11x128xf32>
    %573 = vector.broadcast %12 : vector<1x128xbf16> to vector<11x128xbf16>
    %574 = arith.mulf %563, %573 : vector<11x128xbf16>
    %cst_156 = arith.constant dense<0.000000e+00> : vector<11x11xf32>
    %575 = tpu.matmul %574, %567, %cst_156 {dimension_numbers = #tpu.dot_dimension_numbers<[1], [1], [0], [0], [0, 0, 1, 0], [], []>} : vector<11x128xbf16>, vector<11x128xbf16>, vector<11x11xf32> -> vector<11x11xf32>
    %cst_157 = arith.constant 0.353553385 : f32
    %576 = vector.broadcast %cst_157 : f32 to vector<11x11xf32>
    %577 = arith.mulf %575, %576 : vector<11x11xf32>
    %cst_158 = arith.constant dense<0xFF800000> : vector<11xf32>
    %578 = vector.multi_reduction <maximumf>, %577, %cst_158 [1] : vector<11x11xf32> to vector<11xf32>
    %579 = vector.shape_cast %578 : vector<11xf32> to vector<11x1xf32>
    %580 = vector.broadcast %579 : vector<11x1xf32> to vector<11x11xf32>
    %581 = arith.subf %577, %580 : vector<11x11xf32>
    %582 = math.exp %581 : vector<11x11xf32>
    %cst_159 = arith.constant dense<0.000000e+00> : vector<11xf32>
    %583 = vector.multi_reduction <add>, %582, %cst_159 [1] : vector<11x11xf32> to vector<11xf32>
    %584 = vector.shape_cast %583 : vector<11xf32> to vector<11x1xf32>
    %585 = tpu.reciprocal %584 {approx = true} : vector<11x1xf32> -> vector<11x1xf32>
    %586 = vector.broadcast %585 : vector<11x1xf32> to vector<11x11xf32>
    %587 = arith.mulf %582, %586 : vector<11x11xf32>
    %588 = arith.truncf %587 : vector<11x11xf32> to vector<11x11xbf16>
    %589 = vector.broadcast %12 : vector<1x128xbf16> to vector<11x128xbf16>
    %590 = arith.mulf %571, %589 : vector<11x128xbf16>
    %cst_160 = arith.constant dense<0.000000e+00> : vector<11x128xf32>
    %591 = tpu.matmul %588, %590, %cst_160 {dimension_numbers = #tpu.dot_dimension_numbers<[1], [0], [0], [1], [0, 0, 1, 1], [], []>} : vector<11x11xbf16>, vector<11x128xbf16>, vector<11x128xf32> -> vector<11x128xf32>
    %592 = arith.addf %572, %591 : vector<11x128xf32>
    %593 = vector.broadcast %20 : vector<1x128xbf16> to vector<11x128xbf16>
    %594 = arith.mulf %563, %593 : vector<11x128xbf16>
    %cst_161 = arith.constant dense<0.000000e+00> : vector<11x11xf32>
    %595 = tpu.matmul %594, %567, %cst_161 {dimension_numbers = #tpu.dot_dimension_numbers<[1], [1], [0], [0], [0, 0, 1, 0], [], []>} : vector<11x128xbf16>, vector<11x128xbf16>, vector<11x11xf32> -> vector<11x11xf32>
    %cst_162 = arith.constant 0.353553385 : f32
    %596 = vector.broadcast %cst_162 : f32 to vector<11x11xf32>
    %597 = arith.mulf %595, %596 : vector<11x11xf32>
    %cst_163 = arith.constant dense<0xFF800000> : vector<11xf32>
    %598 = vector.multi_reduction <maximumf>, %597, %cst_163 [1] : vector<11x11xf32> to vector<11xf32>
    %599 = vector.shape_cast %598 : vector<11xf32> to vector<11x1xf32>
    %600 = vector.broadcast %599 : vector<11x1xf32> to vector<11x11xf32>
    %601 = arith.subf %597, %600 : vector<11x11xf32>
    %602 = math.exp %601 : vector<11x11xf32>
    %cst_164 = arith.constant dense<0.000000e+00> : vector<11xf32>
    %603 = vector.multi_reduction <add>, %602, %cst_164 [1] : vector<11x11xf32> to vector<11xf32>
    %604 = vector.shape_cast %603 : vector<11xf32> to vector<11x1xf32>
    %605 = tpu.reciprocal %604 {approx = true} : vector<11x1xf32> -> vector<11x1xf32>
    %606 = vector.broadcast %605 : vector<11x1xf32> to vector<11x11xf32>
    %607 = arith.mulf %602, %606 : vector<11x11xf32>
    %608 = arith.truncf %607 : vector<11x11xf32> to vector<11x11xbf16>
    %609 = vector.broadcast %20 : vector<1x128xbf16> to vector<11x128xbf16>
    %610 = arith.mulf %571, %609 : vector<11x128xbf16>
    %cst_165 = arith.constant dense<0.000000e+00> : vector<11x128xf32>
    %611 = tpu.matmul %608, %610, %cst_165 {dimension_numbers = #tpu.dot_dimension_numbers<[1], [0], [0], [1], [0, 0, 1, 1], [], []>} : vector<11x11xbf16>, vector<11x128xbf16>, vector<11x128xf32> -> vector<11x128xf32>
    %612 = arith.addf %592, %611 : vector<11x128xf32>
    %613 = vector.broadcast %28 : vector<1x128xbf16> to vector<11x128xbf16>
    %614 = arith.mulf %563, %613 : vector<11x128xbf16>
    %cst_166 = arith.constant dense<0.000000e+00> : vector<11x11xf32>
    %615 = tpu.matmul %614, %567, %cst_166 {dimension_numbers = #tpu.dot_dimension_numbers<[1], [1], [0], [0], [0, 0, 1, 0], [], []>} : vector<11x128xbf16>, vector<11x128xbf16>, vector<11x11xf32> -> vector<11x11xf32>
    %cst_167 = arith.constant 0.353553385 : f32
    %616 = vector.broadcast %cst_167 : f32 to vector<11x11xf32>
    %617 = arith.mulf %615, %616 : vector<11x11xf32>
    %cst_168 = arith.constant dense<0xFF800000> : vector<11xf32>
    %618 = vector.multi_reduction <maximumf>, %617, %cst_168 [1] : vector<11x11xf32> to vector<11xf32>
    %619 = vector.shape_cast %618 : vector<11xf32> to vector<11x1xf32>
    %620 = vector.broadcast %619 : vector<11x1xf32> to vector<11x11xf32>
    %621 = arith.subf %617, %620 : vector<11x11xf32>
    %622 = math.exp %621 : vector<11x11xf32>
    %cst_169 = arith.constant dense<0.000000e+00> : vector<11xf32>
    %623 = vector.multi_reduction <add>, %622, %cst_169 [1] : vector<11x11xf32> to vector<11xf32>
    %624 = vector.shape_cast %623 : vector<11xf32> to vector<11x1xf32>
    %625 = tpu.reciprocal %624 {approx = true} : vector<11x1xf32> -> vector<11x1xf32>
    %626 = vector.broadcast %625 : vector<11x1xf32> to vector<11x11xf32>
    %627 = arith.mulf %622, %626 : vector<11x11xf32>
    %628 = arith.truncf %627 : vector<11x11xf32> to vector<11x11xbf16>
    %629 = vector.broadcast %28 : vector<1x128xbf16> to vector<11x128xbf16>
    %630 = arith.mulf %571, %629 : vector<11x128xbf16>
    %cst_170 = arith.constant dense<0.000000e+00> : vector<11x128xf32>
    %631 = tpu.matmul %628, %630, %cst_170 {dimension_numbers = #tpu.dot_dimension_numbers<[1], [0], [0], [1], [0, 0, 1, 1], [], []>} : vector<11x11xbf16>, vector<11x128xbf16>, vector<11x128xf32> -> vector<11x128xf32>
    %632 = arith.addf %612, %631 : vector<11x128xf32>
    %633 = vector.broadcast %36 : vector<1x128xbf16> to vector<11x128xbf16>
    %634 = arith.mulf %563, %633 : vector<11x128xbf16>
    %cst_171 = arith.constant dense<0.000000e+00> : vector<11x11xf32>
    %635 = tpu.matmul %634, %567, %cst_171 {dimension_numbers = #tpu.dot_dimension_numbers<[1], [1], [0], [0], [0, 0, 1, 0], [], []>} : vector<11x128xbf16>, vector<11x128xbf16>, vector<11x11xf32> -> vector<11x11xf32>
    %cst_172 = arith.constant 0.353553385 : f32
    %636 = vector.broadcast %cst_172 : f32 to vector<11x11xf32>
    %637 = arith.mulf %635, %636 : vector<11x11xf32>
    %cst_173 = arith.constant dense<0xFF800000> : vector<11xf32>
    %638 = vector.multi_reduction <maximumf>, %637, %cst_173 [1] : vector<11x11xf32> to vector<11xf32>
    %639 = vector.shape_cast %638 : vector<11xf32> to vector<11x1xf32>
    %640 = vector.broadcast %639 : vector<11x1xf32> to vector<11x11xf32>
    %641 = arith.subf %637, %640 : vector<11x11xf32>
    %642 = math.exp %641 : vector<11x11xf32>
    %cst_174 = arith.constant dense<0.000000e+00> : vector<11xf32>
    %643 = vector.multi_reduction <add>, %642, %cst_174 [1] : vector<11x11xf32> to vector<11xf32>
    %644 = vector.shape_cast %643 : vector<11xf32> to vector<11x1xf32>
    %645 = tpu.reciprocal %644 {approx = true} : vector<11x1xf32> -> vector<11x1xf32>
    %646 = vector.broadcast %645 : vector<11x1xf32> to vector<11x11xf32>
    %647 = arith.mulf %642, %646 : vector<11x11xf32>
    %648 = arith.truncf %647 : vector<11x11xf32> to vector<11x11xbf16>
    %649 = vector.broadcast %36 : vector<1x128xbf16> to vector<11x128xbf16>
    %650 = arith.mulf %571, %649 : vector<11x128xbf16>
    %cst_175 = arith.constant dense<0.000000e+00> : vector<11x128xf32>
    %651 = tpu.matmul %648, %650, %cst_175 {dimension_numbers = #tpu.dot_dimension_numbers<[1], [0], [0], [1], [0, 0, 1, 1], [], []>} : vector<11x11xbf16>, vector<11x128xbf16>, vector<11x128xf32> -> vector<11x128xf32>
    %652 = arith.addf %632, %651 : vector<11x128xf32>
    %653 = arith.truncf %652 : vector<11x128xf32> to vector<11x128xbf16>
    %654 = vector.extract_strided_slice %532 {offsets = [0, 384], sizes = [128, 128], strides = [1, 1]} : vector<128x512xbf16> to vector<128x128xbf16>
    %cst_176 = arith.constant dense<0.000000e+00> : vector<11x128xf32>
    %655 = tpu.matmul %653, %654, %cst_176 {dimension_numbers = #tpu.dot_dimension_numbers<[1], [0], [0], [1], [0, 0, 1, 1], [], []>} : vector<11x128xbf16>, vector<128x128xbf16>, vector<11x128xf32> -> vector<11x128xf32>
    %656 = arith.addf %518, %655 : vector<11x128xf32>
    %657 = vector.broadcast %526 : vector<1x128xf32> to vector<11x128xf32>
    %658 = arith.addf %656, %657 : vector<11x128xf32>
    %659 = vector.broadcast %4 : vector<1x128xf32> to vector<11x128xf32>
    %660 = arith.mulf %658, %659 : vector<11x128xf32>
    %cst_177 = arith.constant dense<0.000000e+00> : vector<11xf32>
    %661 = vector.multi_reduction <add>, %660, %cst_177 [1] : vector<11x128xf32> to vector<11xf32>
    %662 = vector.shape_cast %661 : vector<11xf32> to vector<11x1xf32>
    %cst_178 = arith.constant 3.125000e-02 : f32
    %663 = vector.broadcast %cst_178 : f32 to vector<11x1xf32>
    %664 = arith.mulf %662, %663 : vector<11x1xf32>
    %665 = vector.broadcast %664 : vector<11x1xf32> to vector<11x128xf32>
    %666 = arith.subf %660, %665 : vector<11x128xf32>
    %667 = vector.broadcast %4 : vector<1x128xf32> to vector<11x128xf32>
    %668 = arith.mulf %666, %667 : vector<11x128xf32>
    %669 = arith.mulf %668, %668 : vector<11x128xf32>
    %cst_179 = arith.constant dense<0.000000e+00> : vector<11xf32>
    %670 = vector.multi_reduction <add>, %669, %cst_179 [1] : vector<11x128xf32> to vector<11xf32>
    %671 = vector.shape_cast %670 : vector<11xf32> to vector<11x1xf32>
    %cst_180 = arith.constant 3.125000e-02 : f32
    %672 = vector.broadcast %cst_180 : f32 to vector<11x1xf32>
    %673 = arith.mulf %671, %672 : vector<11x1xf32>
    %cst_181 = arith.constant 9.99999974E-6 : f32
    %674 = vector.broadcast %cst_181 : f32 to vector<11x1xf32>
    %675 = arith.addf %673, %674 : vector<11x1xf32>
    %676 = math.rsqrt %675 : vector<11x1xf32>
    %677 = vector.broadcast %676 : vector<11x1xf32> to vector<11x128xf32>
    %678 = arith.mulf %668, %677 : vector<11x128xf32>
    %679 = vector.broadcast %527 : vector<1x128xf32> to vector<11x128xf32>
    %680 = arith.mulf %678, %679 : vector<11x128xf32>
    %681 = vector.broadcast %528 : vector<1x128xf32> to vector<11x128xf32>
    %682 = arith.addf %680, %681 : vector<11x128xf32>
    %683 = arith.truncf %682 : vector<11x128xf32> to vector<11x128xbf16>
    %c2_182 = arith.constant 2 : index
    %c0_183 = arith.constant 0 : index
    %c0_184 = arith.constant 0 : index
    %684 = vector.load %arg6[%c2_182, %c0_183, %c0_184] : memref<4x128x128xbf16, #tpu.memory_space<vmem>>, vector<1x128x128xbf16>
    %685 = vector.shape_cast %684 : vector<1x128x128xbf16> to vector<128x128xbf16>
    %cst_185 = arith.constant dense<0.000000e+00> : vector<11x128xf32>
    %686 = tpu.matmul %683, %685, %cst_185 {dimension_numbers = #tpu.dot_dimension_numbers<[1], [0], [0], [1], [0, 0, 1, 1], [], []>} : vector<11x128xbf16>, vector<128x128xbf16>, vector<11x128xf32> -> vector<11x128xf32>
    %687 = vector.broadcast %529 : vector<1x128xf32> to vector<11x128xf32>
    %688 = arith.addf %686, %687 : vector<11x128xf32>
    %cst_186 = arith.constant 1.702000e+00 : f32
    %689 = vector.broadcast %cst_186 : f32 to vector<11x128xf32>
    %690 = arith.mulf %689, %688 : vector<11x128xf32>
    %691 = arith.negf %690 : vector<11x128xf32>
    %692 = math.exp %691 : vector<11x128xf32>
    %cst_187 = arith.constant 1.000000e+00 : f32
    %693 = vector.broadcast %cst_187 : f32 to vector<11x128xf32>
    %694 = arith.addf %693, %692 : vector<11x128xf32>
    %695 = arith.divf %693, %694 : vector<11x128xf32>
    %696 = arith.mulf %688, %695 : vector<11x128xf32>
    %697 = arith.truncf %696 : vector<11x128xf32> to vector<11x128xbf16>
    %c2_188 = arith.constant 2 : index
    %c0_189 = arith.constant 0 : index
    %c0_190 = arith.constant 0 : index
    %698 = vector.load %arg7[%c2_188, %c0_189, %c0_190] : memref<4x128x128xbf16, #tpu.memory_space<vmem>>, vector<1x128x128xbf16>
    %699 = vector.shape_cast %698 : vector<1x128x128xbf16> to vector<128x128xbf16>
    %cst_191 = arith.constant dense<0.000000e+00> : vector<11x128xf32>
    %700 = tpu.matmul %697, %699, %cst_191 {dimension_numbers = #tpu.dot_dimension_numbers<[1], [0], [0], [1], [0, 0, 1, 1], [], []>} : vector<11x128xbf16>, vector<128x128xbf16>, vector<11x128xf32> -> vector<11x128xf32>
    %701 = arith.addf %658, %700 : vector<11x128xf32>
    %702 = vector.broadcast %530 : vector<1x128xf32> to vector<11x128xf32>
    %703 = arith.addf %701, %702 : vector<11x128xf32>
    %704 = vector.extract_strided_slice %703 {offsets = [0, 0], sizes = [8, 128], strides = [1, 1]} : vector<11x128xf32> to vector<8x128xf32>
    %c1_192 = arith.constant 1 : index
    %c0_193 = arith.constant 0 : index
    %c0_194 = arith.constant 0 : index
    %705 = vector.load %arg4[%c1_192, %c0_193, %c0_194] : memref<2x10x128xf32, #tpu.memory_space<vmem>>, vector<1x10x128xf32>
    %706 = vector.shape_cast %705 : vector<1x10x128xf32> to vector<10x128xf32>
    %707 = tpu.concatenate %704, %706 in 0 : vector<8x128xf32>, vector<10x128xf32> -> vector<18x128xf32>
    %c1_195 = arith.constant 1 : index
    %c0_196 = arith.constant 0 : index
    %c0_197 = arith.constant 0 : index
    %708 = vector.load %arg10[%c1_195, %c0_196, %c0_197] : memref<2x5x128xf32, #tpu.memory_space<vmem>>, vector<1x5x128xf32>
    %709 = vector.shape_cast %708 : vector<1x5x128xf32> to vector<5x128xf32>
    %710 = vector.extract_strided_slice %709 {offsets = [0, 0], sizes = [1, 128], strides = [1, 1]} : vector<5x128xf32> to vector<1x128xf32>
    %711 = vector.extract_strided_slice %709 {offsets = [1, 0], sizes = [1, 128], strides = [1, 1]} : vector<5x128xf32> to vector<1x128xf32>
    %712 = vector.extract_strided_slice %709 {offsets = [2, 0], sizes = [1, 128], strides = [1, 1]} : vector<5x128xf32> to vector<1x128xf32>
    %713 = vector.extract_strided_slice %709 {offsets = [3, 0], sizes = [1, 128], strides = [1, 1]} : vector<5x128xf32> to vector<1x128xf32>
    %714 = vector.extract_strided_slice %709 {offsets = [4, 0], sizes = [1, 128], strides = [1, 1]} : vector<5x128xf32> to vector<1x128xf32>
    %c1_198 = arith.constant 1 : index
    %c0_199 = arith.constant 0 : index
    %c0_200 = arith.constant 0 : index
    %715 = vector.load %arg9[%c1_198, %c0_199, %c0_200] : memref<2x128x640xbf16, #tpu.memory_space<vmem>>, vector<1x128x640xbf16>
    %716 = vector.shape_cast %715 : vector<1x128x640xbf16> to vector<128x640xbf16>
    %717 = vector.extract_strided_slice %716 {offsets = [0, 0], sizes = [128, 128], strides = [1, 1]} : vector<128x640xbf16> to vector<128x128xbf16>
    %cst_201 = arith.constant dense<0.000000e+00> : vector<8x128xf32>
    %718 = tpu.matmul %41, %717, %cst_201 {dimension_numbers = #tpu.dot_dimension_numbers<[1], [0], [0], [1], [0, 0, 1, 1], [], []>} : vector<8x128xbf16>, vector<128x128xbf16>, vector<8x128xf32> -> vector<8x128xf32>
    %719 = vector.broadcast %710 : vector<1x128xf32> to vector<8x128xf32>
    %720 = arith.addf %718, %719 : vector<8x128xf32>
    %721 = arith.truncf %720 : vector<8x128xf32> to vector<8x128xbf16>
    %722 = arith.truncf %707 : vector<18x128xf32> to vector<18x128xbf16>
    %723 = vector.extract_strided_slice %716 {offsets = [0, 128], sizes = [128, 128], strides = [1, 1]} : vector<128x640xbf16> to vector<128x128xbf16>
    %cst_202 = arith.constant dense<0.000000e+00> : vector<8x128xf32>
    %724 = tpu.matmul %721, %723, %cst_202 {dimension_numbers = #tpu.dot_dimension_numbers<[1], [0], [0], [1], [0, 0, 1, 1], [], []>} : vector<8x128xbf16>, vector<128x128xbf16>, vector<8x128xf32> -> vector<8x128xf32>
    %725 = arith.truncf %724 : vector<8x128xf32> to vector<8x128xbf16>
    %726 = vector.extract_strided_slice %716 {offsets = [0, 256], sizes = [128, 128], strides = [1, 1]} : vector<128x640xbf16> to vector<128x128xbf16>
    %cst_203 = arith.constant dense<0.000000e+00> : vector<18x128xf32>
    %727 = tpu.matmul %722, %726, %cst_203 {dimension_numbers = #tpu.dot_dimension_numbers<[1], [0], [0], [1], [0, 0, 1, 1], [], []>} : vector<18x128xbf16>, vector<128x128xbf16>, vector<18x128xf32> -> vector<18x128xf32>
    %728 = arith.truncf %727 : vector<18x128xf32> to vector<18x128xbf16>
    %cst_204 = arith.constant dense<0.000000e+00> : vector<8x18xf32>
    %729 = tpu.matmul %725, %728, %cst_204 {dimension_numbers = #tpu.dot_dimension_numbers<[1], [1], [0], [0], [0, 0, 1, 0], [], []>} : vector<8x128xbf16>, vector<18x128xbf16>, vector<8x18xf32> -> vector<8x18xf32>
    %cst_205 = arith.constant 0.176776692 : f32
    %730 = vector.broadcast %cst_205 : f32 to vector<8x18xf32>
    %731 = arith.mulf %729, %730 : vector<8x18xf32>
    %cst_206 = arith.constant dense<0xFF800000> : vector<8xf32>
    %732 = vector.multi_reduction <maximumf>, %731, %cst_206 [1] : vector<8x18xf32> to vector<8xf32>
    %733 = vector.shape_cast %732 : vector<8xf32> to vector<8x1xf32>
    %734 = vector.broadcast %733 : vector<8x1xf32> to vector<8x18xf32>
    %735 = arith.subf %731, %734 : vector<8x18xf32>
    %736 = math.exp %735 : vector<8x18xf32>
    %cst_207 = arith.constant dense<0.000000e+00> : vector<8xf32>
    %737 = vector.multi_reduction <add>, %736, %cst_207 [1] : vector<8x18xf32> to vector<8xf32>
    %738 = vector.shape_cast %737 : vector<8xf32> to vector<8x1xf32>
    %739 = tpu.reciprocal %738 {approx = true} : vector<8x1xf32> -> vector<8x1xf32>
    %740 = vector.broadcast %739 : vector<8x1xf32> to vector<8x18xf32>
    %741 = arith.mulf %736, %740 : vector<8x18xf32>
    %742 = arith.truncf %741 : vector<8x18xf32> to vector<8x18xbf16>
    %cst_208 = arith.constant dense<0.000000e+00> : vector<8x128xf32>
    %743 = tpu.matmul %742, %722, %cst_208 {dimension_numbers = #tpu.dot_dimension_numbers<[1], [0], [0], [1], [0, 0, 1, 1], [], []>} : vector<8x18xbf16>, vector<18x128xbf16>, vector<8x128xf32> -> vector<8x128xf32>
    %744 = arith.truncf %743 : vector<8x128xf32> to vector<8x128xbf16>
    %745 = vector.extract_strided_slice %716 {offsets = [0, 384], sizes = [128, 128], strides = [1, 1]} : vector<128x640xbf16> to vector<128x128xbf16>
    %cst_209 = arith.constant dense<0.000000e+00> : vector<8x128xf32>
    %746 = tpu.matmul %744, %745, %cst_209 {dimension_numbers = #tpu.dot_dimension_numbers<[1], [0], [0], [1], [0, 0, 1, 1], [], []>} : vector<8x128xbf16>, vector<128x128xbf16>, vector<8x128xf32> -> vector<8x128xf32>
    %747 = vector.broadcast %4 : vector<1x128xf32> to vector<8x128xf32>
    %748 = arith.mulf %746, %747 : vector<8x128xf32>
    %cst_210 = arith.constant dense<0.000000e+00> : vector<8xf32>
    %749 = vector.multi_reduction <add>, %748, %cst_210 [1] : vector<8x128xf32> to vector<8xf32>
    %750 = vector.shape_cast %749 : vector<8xf32> to vector<8x1xf32>
    %cst_211 = arith.constant 3.125000e-02 : f32
    %751 = vector.broadcast %cst_211 : f32 to vector<8x1xf32>
    %752 = arith.mulf %750, %751 : vector<8x1xf32>
    %753 = vector.broadcast %752 : vector<8x1xf32> to vector<8x128xf32>
    %754 = arith.subf %748, %753 : vector<8x128xf32>
    %755 = vector.broadcast %4 : vector<1x128xf32> to vector<8x128xf32>
    %756 = arith.mulf %754, %755 : vector<8x128xf32>
    %757 = arith.mulf %756, %756 : vector<8x128xf32>
    %cst_212 = arith.constant dense<0.000000e+00> : vector<8xf32>
    %758 = vector.multi_reduction <add>, %757, %cst_212 [1] : vector<8x128xf32> to vector<8xf32>
    %759 = vector.shape_cast %758 : vector<8xf32> to vector<8x1xf32>
    %cst_213 = arith.constant 3.125000e-02 : f32
    %760 = vector.broadcast %cst_213 : f32 to vector<8x1xf32>
    %761 = arith.mulf %759, %760 : vector<8x1xf32>
    %cst_214 = arith.constant 9.99999974E-6 : f32
    %762 = vector.broadcast %cst_214 : f32 to vector<8x1xf32>
    %763 = arith.addf %761, %762 : vector<8x1xf32>
    %764 = math.rsqrt %763 : vector<8x1xf32>
    %765 = vector.broadcast %764 : vector<8x1xf32> to vector<8x128xf32>
    %766 = arith.mulf %756, %765 : vector<8x128xf32>
    %767 = vector.broadcast %711 : vector<1x128xf32> to vector<8x128xf32>
    %768 = arith.mulf %766, %767 : vector<8x128xf32>
    %769 = vector.broadcast %712 : vector<1x128xf32> to vector<8x128xf32>
    %770 = arith.addf %768, %769 : vector<8x128xf32>
    %771 = arith.truncf %770 : vector<8x128xf32> to vector<8x128xbf16>
    %772 = vector.extract_strided_slice %716 {offsets = [0, 512], sizes = [128, 128], strides = [1, 1]} : vector<128x640xbf16> to vector<128x128xbf16>
    %cst_215 = arith.constant dense<0.000000e+00> : vector<8x128xf32>
    %773 = tpu.matmul %771, %772, %cst_215 {dimension_numbers = #tpu.dot_dimension_numbers<[1], [0], [0], [1], [0, 0, 1, 1], [], []>} : vector<8x128xbf16>, vector<128x128xbf16>, vector<8x128xf32> -> vector<8x128xf32>
    %774 = arith.addf %746, %720 : vector<8x128xf32>
    %775 = vector.broadcast %4 : vector<1x128xf32> to vector<8x128xf32>
    %776 = arith.mulf %774, %775 : vector<8x128xf32>
    %cst_216 = arith.constant dense<0.000000e+00> : vector<8xf32>
    %777 = vector.multi_reduction <add>, %776, %cst_216 [1] : vector<8x128xf32> to vector<8xf32>
    %778 = vector.shape_cast %777 : vector<8xf32> to vector<8x1xf32>
    %cst_217 = arith.constant 3.125000e-02 : f32
    %779 = vector.broadcast %cst_217 : f32 to vector<8x1xf32>
    %780 = arith.mulf %778, %779 : vector<8x1xf32>
    %781 = vector.broadcast %780 : vector<8x1xf32> to vector<8x128xf32>
    %782 = arith.subf %776, %781 : vector<8x128xf32>
    %783 = vector.broadcast %4 : vector<1x128xf32> to vector<8x128xf32>
    %784 = arith.mulf %782, %783 : vector<8x128xf32>
    %785 = arith.mulf %784, %784 : vector<8x128xf32>
    %cst_218 = arith.constant dense<0.000000e+00> : vector<8xf32>
    %786 = vector.multi_reduction <add>, %785, %cst_218 [1] : vector<8x128xf32> to vector<8xf32>
    %787 = vector.shape_cast %786 : vector<8xf32> to vector<8x1xf32>
    %cst_219 = arith.constant 3.125000e-02 : f32
    %788 = vector.broadcast %cst_219 : f32 to vector<8x1xf32>
    %789 = arith.mulf %787, %788 : vector<8x1xf32>
    %cst_220 = arith.constant 9.99999974E-6 : f32
    %790 = vector.broadcast %cst_220 : f32 to vector<8x1xf32>
    %791 = arith.addf %789, %790 : vector<8x1xf32>
    %792 = math.rsqrt %791 : vector<8x1xf32>
    %793 = vector.broadcast %792 : vector<8x1xf32> to vector<8x128xf32>
    %794 = arith.mulf %784, %793 : vector<8x128xf32>
    %795 = vector.broadcast %713 : vector<1x128xf32> to vector<8x128xf32>
    %796 = arith.mulf %794, %795 : vector<8x128xf32>
    %797 = vector.broadcast %714 : vector<1x128xf32> to vector<8x128xf32>
    %798 = arith.addf %796, %797 : vector<8x128xf32>
    %c1_221 = arith.constant 1 : index
    %c0_222 = arith.constant 0 : index
    %c0_223 = arith.constant 0 : index
    %c0_224 = arith.constant 0 : index
    %799 = vector.load %arg12[%c1_221, %c0_222, %c0_223, %c0_224] : memref<2x1x8x128xf32, #tpu.memory_space<vmem>>, vector<1x1x8x128xf32>
    %800 = vector.shape_cast %799 : vector<1x1x8x128xf32> to vector<8x128xf32>
    %801 = vector.shape_cast %773 : vector<8x128xf32> to vector<1x1x8x128xf32>
    tpu.vector_store %arg12[%c1_221, %c0_222, %c0_223, %c0_224], %801 {strides = array<i32>} : memref<2x1x8x128xf32, #tpu.memory_space<vmem>>, vector<1x1x8x128xf32>,
    %802 = vector.extract_strided_slice %798 {offsets = [0, 0], sizes = [3, 128], strides = [1, 1]} : vector<8x128xf32> to vector<3x128xf32>
    %803 = tpu.concatenate %704, %802 in 0 : vector<8x128xf32>, vector<3x128xf32> -> vector<11x128xf32>
    %c3 = arith.constant 3 : index
    %c0_225 = arith.constant 0 : index
    %c0_226 = arith.constant 0 : index
    %804 = vector.load %arg8[%c3, %c0_225, %c0_226] : memref<4x10x128xf32, #tpu.memory_space<vmem>>, vector<1x10x128xf32>
    %805 = vector.shape_cast %804 : vector<1x10x128xf32> to vector<10x128xf32>
    %806 = vector.extract_strided_slice %805 {offsets = [0, 0], sizes = [1, 128], strides = [1, 1]} : vector<10x128xf32> to vector<1x128xf32>
    %807 = vector.extract_strided_slice %805 {offsets = [1, 0], sizes = [1, 128], strides = [1, 1]} : vector<10x128xf32> to vector<1x128xf32>
    %808 = vector.extract_strided_slice %805 {offsets = [2, 0], sizes = [1, 128], strides = [1, 1]} : vector<10x128xf32> to vector<1x128xf32>
    %809 = vector.extract_strided_slice %805 {offsets = [3, 0], sizes = [1, 128], strides = [1, 1]} : vector<10x128xf32> to vector<1x128xf32>
    %810 = vector.extract_strided_slice %805 {offsets = [4, 0], sizes = [1, 128], strides = [1, 1]} : vector<10x128xf32> to vector<1x128xf32>
    %811 = vector.extract_strided_slice %805 {offsets = [5, 0], sizes = [1, 128], strides = [1, 1]} : vector<10x128xf32> to vector<1x128xf32>
    %812 = vector.extract_strided_slice %805 {offsets = [6, 0], sizes = [1, 128], strides = [1, 1]} : vector<10x128xf32> to vector<1x128xf32>
    %813 = vector.extract_strided_slice %805 {offsets = [7, 0], sizes = [1, 128], strides = [1, 1]} : vector<10x128xf32> to vector<1x128xf32>
    %814 = vector.extract_strided_slice %805 {offsets = [8, 0], sizes = [1, 128], strides = [1, 1]} : vector<10x128xf32> to vector<1x128xf32>
    %815 = vector.extract_strided_slice %805 {offsets = [9, 0], sizes = [1, 128], strides = [1, 1]} : vector<10x128xf32> to vector<1x128xf32>
    %c3_227 = arith.constant 3 : index
    %c0_228 = arith.constant 0 : index
    %c0_229 = arith.constant 0 : index
    %816 = vector.load %arg5[%c3_227, %c0_228, %c0_229] : memref<4x128x512xbf16, #tpu.memory_space<vmem>>, vector<1x128x512xbf16>
    %817 = vector.shape_cast %816 : vector<1x128x512xbf16> to vector<128x512xbf16>
    %818 = vector.broadcast %4 : vector<1x128xf32> to vector<11x128xf32>
    %819 = arith.mulf %803, %818 : vector<11x128xf32>
    %cst_230 = arith.constant dense<0.000000e+00> : vector<11xf32>
    %820 = vector.multi_reduction <add>, %819, %cst_230 [1] : vector<11x128xf32> to vector<11xf32>
    %821 = vector.shape_cast %820 : vector<11xf32> to vector<11x1xf32>
    %cst_231 = arith.constant 3.125000e-02 : f32
    %822 = vector.broadcast %cst_231 : f32 to vector<11x1xf32>
    %823 = arith.mulf %821, %822 : vector<11x1xf32>
    %824 = vector.broadcast %823 : vector<11x1xf32> to vector<11x128xf32>
    %825 = arith.subf %819, %824 : vector<11x128xf32>
    %826 = vector.broadcast %4 : vector<1x128xf32> to vector<11x128xf32>
    %827 = arith.mulf %825, %826 : vector<11x128xf32>
    %828 = arith.mulf %827, %827 : vector<11x128xf32>
    %cst_232 = arith.constant dense<0.000000e+00> : vector<11xf32>
    %829 = vector.multi_reduction <add>, %828, %cst_232 [1] : vector<11x128xf32> to vector<11xf32>
    %830 = vector.shape_cast %829 : vector<11xf32> to vector<11x1xf32>
    %cst_233 = arith.constant 3.125000e-02 : f32
    %831 = vector.broadcast %cst_233 : f32 to vector<11x1xf32>
    %832 = arith.mulf %830, %831 : vector<11x1xf32>
    %cst_234 = arith.constant 9.99999974E-6 : f32
    %833 = vector.broadcast %cst_234 : f32 to vector<11x1xf32>
    %834 = arith.addf %832, %833 : vector<11x1xf32>
    %835 = math.rsqrt %834 : vector<11x1xf32>
    %836 = vector.broadcast %835 : vector<11x1xf32> to vector<11x128xf32>
    %837 = arith.mulf %827, %836 : vector<11x128xf32>
    %838 = vector.broadcast %806 : vector<1x128xf32> to vector<11x128xf32>
    %839 = arith.mulf %837, %838 : vector<11x128xf32>
    %840 = vector.broadcast %807 : vector<1x128xf32> to vector<11x128xf32>
    %841 = arith.addf %839, %840 : vector<11x128xf32>
    %842 = arith.truncf %841 : vector<11x128xf32> to vector<11x128xbf16>
    %843 = vector.extract_strided_slice %817 {offsets = [0, 0], sizes = [128, 384], strides = [1, 1]} : vector<128x512xbf16> to vector<128x384xbf16>
    %cst_235 = arith.constant dense<0.000000e+00> : vector<11x384xf32>
    %844 = tpu.matmul %842, %843, %cst_235 {dimension_numbers = #tpu.dot_dimension_numbers<[1], [0], [0], [1], [0, 0, 1, 1], [], []>} : vector<11x128xbf16>, vector<128x384xbf16>, vector<11x384xf32> -> vector<11x384xf32>
    %845 = vector.extract_strided_slice %844 {offsets = [0, 0], sizes = [11, 128], strides = [1, 1]} : vector<11x384xf32> to vector<11x128xf32>
    %846 = vector.broadcast %808 : vector<1x128xf32> to vector<11x128xf32>
    %847 = arith.addf %845, %846 : vector<11x128xf32>
    %848 = arith.truncf %847 : vector<11x128xf32> to vector<11x128xbf16>
    %849 = vector.extract_strided_slice %844 {offsets = [0, 128], sizes = [11, 128], strides = [1, 1]} : vector<11x384xf32> to vector<11x128xf32>
    %850 = vector.broadcast %809 : vector<1x128xf32> to vector<11x128xf32>
    %851 = arith.addf %849, %850 : vector<11x128xf32>
    %852 = arith.truncf %851 : vector<11x128xf32> to vector<11x128xbf16>
    %853 = vector.extract_strided_slice %844 {offsets = [0, 256], sizes = [11, 128], strides = [1, 1]} : vector<11x384xf32> to vector<11x128xf32>
    %854 = vector.broadcast %810 : vector<1x128xf32> to vector<11x128xf32>
    %855 = arith.addf %853, %854 : vector<11x128xf32>
    %856 = arith.truncf %855 : vector<11x128xf32> to vector<11x128xbf16>
    %cst_236 = arith.constant 0.000000e+00 : f32
    %857 = vector.broadcast %cst_236 : f32 to vector<11x128xf32>
    %858 = vector.broadcast %12 : vector<1x128xbf16> to vector<11x128xbf16>
    %859 = arith.mulf %848, %858 : vector<11x128xbf16>
    %cst_237 = arith.constant dense<0.000000e+00> : vector<11x11xf32>
    %860 = tpu.matmul %859, %852, %cst_237 {dimension_numbers = #tpu.dot_dimension_numbers<[1], [1], [0], [0], [0, 0, 1, 0], [], []>} : vector<11x128xbf16>, vector<11x128xbf16>, vector<11x11xf32> -> vector<11x11xf32>
    %cst_238 = arith.constant 0.353553385 : f32
    %861 = vector.broadcast %cst_238 : f32 to vector<11x11xf32>
    %862 = arith.mulf %860, %861 : vector<11x11xf32>
    %cst_239 = arith.constant dense<0xFF800000> : vector<11xf32>
    %863 = vector.multi_reduction <maximumf>, %862, %cst_239 [1] : vector<11x11xf32> to vector<11xf32>
    %864 = vector.shape_cast %863 : vector<11xf32> to vector<11x1xf32>
    %865 = vector.broadcast %864 : vector<11x1xf32> to vector<11x11xf32>
    %866 = arith.subf %862, %865 : vector<11x11xf32>
    %867 = math.exp %866 : vector<11x11xf32>
    %cst_240 = arith.constant dense<0.000000e+00> : vector<11xf32>
    %868 = vector.multi_reduction <add>, %867, %cst_240 [1] : vector<11x11xf32> to vector<11xf32>
    %869 = vector.shape_cast %868 : vector<11xf32> to vector<11x1xf32>
    %870 = tpu.reciprocal %869 {approx = true} : vector<11x1xf32> -> vector<11x1xf32>
    %871 = vector.broadcast %870 : vector<11x1xf32> to vector<11x11xf32>
    %872 = arith.mulf %867, %871 : vector<11x11xf32>
    %873 = arith.truncf %872 : vector<11x11xf32> to vector<11x11xbf16>
    %874 = vector.broadcast %12 : vector<1x128xbf16> to vector<11x128xbf16>
    %875 = arith.mulf %856, %874 : vector<11x128xbf16>
    %cst_241 = arith.constant dense<0.000000e+00> : vector<11x128xf32>
    %876 = tpu.matmul %873, %875, %cst_241 {dimension_numbers = #tpu.dot_dimension_numbers<[1], [0], [0], [1], [0, 0, 1, 1], [], []>} : vector<11x11xbf16>, vector<11x128xbf16>, vector<11x128xf32> -> vector<11x128xf32>
    %877 = arith.addf %857, %876 : vector<11x128xf32>
    %878 = vector.broadcast %20 : vector<1x128xbf16> to vector<11x128xbf16>
    %879 = arith.mulf %848, %878 : vector<11x128xbf16>
    %cst_242 = arith.constant dense<0.000000e+00> : vector<11x11xf32>
    %880 = tpu.matmul %879, %852, %cst_242 {dimension_numbers = #tpu.dot_dimension_numbers<[1], [1], [0], [0], [0, 0, 1, 0], [], []>} : vector<11x128xbf16>, vector<11x128xbf16>, vector<11x11xf32> -> vector<11x11xf32>
    %cst_243 = arith.constant 0.353553385 : f32
    %881 = vector.broadcast %cst_243 : f32 to vector<11x11xf32>
    %882 = arith.mulf %880, %881 : vector<11x11xf32>
    %cst_244 = arith.constant dense<0xFF800000> : vector<11xf32>
    %883 = vector.multi_reduction <maximumf>, %882, %cst_244 [1] : vector<11x11xf32> to vector<11xf32>
    %884 = vector.shape_cast %883 : vector<11xf32> to vector<11x1xf32>
    %885 = vector.broadcast %884 : vector<11x1xf32> to vector<11x11xf32>
    %886 = arith.subf %882, %885 : vector<11x11xf32>
    %887 = math.exp %886 : vector<11x11xf32>
    %cst_245 = arith.constant dense<0.000000e+00> : vector<11xf32>
    %888 = vector.multi_reduction <add>, %887, %cst_245 [1] : vector<11x11xf32> to vector<11xf32>
    %889 = vector.shape_cast %888 : vector<11xf32> to vector<11x1xf32>
    %890 = tpu.reciprocal %889 {approx = true} : vector<11x1xf32> -> vector<11x1xf32>
    %891 = vector.broadcast %890 : vector<11x1xf32> to vector<11x11xf32>
    %892 = arith.mulf %887, %891 : vector<11x11xf32>
    %893 = arith.truncf %892 : vector<11x11xf32> to vector<11x11xbf16>
    %894 = vector.broadcast %20 : vector<1x128xbf16> to vector<11x128xbf16>
    %895 = arith.mulf %856, %894 : vector<11x128xbf16>
    %cst_246 = arith.constant dense<0.000000e+00> : vector<11x128xf32>
    %896 = tpu.matmul %893, %895, %cst_246 {dimension_numbers = #tpu.dot_dimension_numbers<[1], [0], [0], [1], [0, 0, 1, 1], [], []>} : vector<11x11xbf16>, vector<11x128xbf16>, vector<11x128xf32> -> vector<11x128xf32>
    %897 = arith.addf %877, %896 : vector<11x128xf32>
    %898 = vector.broadcast %28 : vector<1x128xbf16> to vector<11x128xbf16>
    %899 = arith.mulf %848, %898 : vector<11x128xbf16>
    %cst_247 = arith.constant dense<0.000000e+00> : vector<11x11xf32>
    %900 = tpu.matmul %899, %852, %cst_247 {dimension_numbers = #tpu.dot_dimension_numbers<[1], [1], [0], [0], [0, 0, 1, 0], [], []>} : vector<11x128xbf16>, vector<11x128xbf16>, vector<11x11xf32> -> vector<11x11xf32>
    %cst_248 = arith.constant 0.353553385 : f32
    %901 = vector.broadcast %cst_248 : f32 to vector<11x11xf32>
    %902 = arith.mulf %900, %901 : vector<11x11xf32>
    %cst_249 = arith.constant dense<0xFF800000> : vector<11xf32>
    %903 = vector.multi_reduction <maximumf>, %902, %cst_249 [1] : vector<11x11xf32> to vector<11xf32>
    %904 = vector.shape_cast %903 : vector<11xf32> to vector<11x1xf32>
    %905 = vector.broadcast %904 : vector<11x1xf32> to vector<11x11xf32>
    %906 = arith.subf %902, %905 : vector<11x11xf32>
    %907 = math.exp %906 : vector<11x11xf32>
    %cst_250 = arith.constant dense<0.000000e+00> : vector<11xf32>
    %908 = vector.multi_reduction <add>, %907, %cst_250 [1] : vector<11x11xf32> to vector<11xf32>
    %909 = vector.shape_cast %908 : vector<11xf32> to vector<11x1xf32>
    %910 = tpu.reciprocal %909 {approx = true} : vector<11x1xf32> -> vector<11x1xf32>
    %911 = vector.broadcast %910 : vector<11x1xf32> to vector<11x11xf32>
    %912 = arith.mulf %907, %911 : vector<11x11xf32>
    %913 = arith.truncf %912 : vector<11x11xf32> to vector<11x11xbf16>
    %914 = vector.broadcast %28 : vector<1x128xbf16> to vector<11x128xbf16>
    %915 = arith.mulf %856, %914 : vector<11x128xbf16>
    %cst_251 = arith.constant dense<0.000000e+00> : vector<11x128xf32>
    %916 = tpu.matmul %913, %915, %cst_251 {dimension_numbers = #tpu.dot_dimension_numbers<[1], [0], [0], [1], [0, 0, 1, 1], [], []>} : vector<11x11xbf16>, vector<11x128xbf16>, vector<11x128xf32> -> vector<11x128xf32>
    %917 = arith.addf %897, %916 : vector<11x128xf32>
    %918 = vector.broadcast %36 : vector<1x128xbf16> to vector<11x128xbf16>
    %919 = arith.mulf %848, %918 : vector<11x128xbf16>
    %cst_252 = arith.constant dense<0.000000e+00> : vector<11x11xf32>
    %920 = tpu.matmul %919, %852, %cst_252 {dimension_numbers = #tpu.dot_dimension_numbers<[1], [1], [0], [0], [0, 0, 1, 0], [], []>} : vector<11x128xbf16>, vector<11x128xbf16>, vector<11x11xf32> -> vector<11x11xf32>
    %cst_253 = arith.constant 0.353553385 : f32
    %921 = vector.broadcast %cst_253 : f32 to vector<11x11xf32>
    %922 = arith.mulf %920, %921 : vector<11x11xf32>
    %cst_254 = arith.constant dense<0xFF800000> : vector<11xf32>
    %923 = vector.multi_reduction <maximumf>, %922, %cst_254 [1] : vector<11x11xf32> to vector<11xf32>
    %924 = vector.shape_cast %923 : vector<11xf32> to vector<11x1xf32>
    %925 = vector.broadcast %924 : vector<11x1xf32> to vector<11x11xf32>
    %926 = arith.subf %922, %925 : vector<11x11xf32>
    %927 = math.exp %926 : vector<11x11xf32>
    %cst_255 = arith.constant dense<0.000000e+00> : vector<11xf32>
    %928 = vector.multi_reduction <add>, %927, %cst_255 [1] : vector<11x11xf32> to vector<11xf32>
    %929 = vector.shape_cast %928 : vector<11xf32> to vector<11x1xf32>
    %930 = tpu.reciprocal %929 {approx = true} : vector<11x1xf32> -> vector<11x1xf32>
    %931 = vector.broadcast %930 : vector<11x1xf32> to vector<11x11xf32>
    %932 = arith.mulf %927, %931 : vector<11x11xf32>
    %933 = arith.truncf %932 : vector<11x11xf32> to vector<11x11xbf16>
    %934 = vector.broadcast %36 : vector<1x128xbf16> to vector<11x128xbf16>
    %935 = arith.mulf %856, %934 : vector<11x128xbf16>
    %cst_256 = arith.constant dense<0.000000e+00> : vector<11x128xf32>
    %936 = tpu.matmul %933, %935, %cst_256 {dimension_numbers = #tpu.dot_dimension_numbers<[1], [0], [0], [1], [0, 0, 1, 1], [], []>} : vector<11x11xbf16>, vector<11x128xbf16>, vector<11x128xf32> -> vector<11x128xf32>
    %937 = arith.addf %917, %936 : vector<11x128xf32>
    %938 = arith.truncf %937 : vector<11x128xf32> to vector<11x128xbf16>
    %939 = vector.extract_strided_slice %817 {offsets = [0, 384], sizes = [128, 128], strides = [1, 1]} : vector<128x512xbf16> to vector<128x128xbf16>
    %cst_257 = arith.constant dense<0.000000e+00> : vector<11x128xf32>
    %940 = tpu.matmul %938, %939, %cst_257 {dimension_numbers = #tpu.dot_dimension_numbers<[1], [0], [0], [1], [0, 0, 1, 1], [], []>} : vector<11x128xbf16>, vector<128x128xbf16>, vector<11x128xf32> -> vector<11x128xf32>
    %941 = arith.addf %803, %940 : vector<11x128xf32>
    %942 = vector.broadcast %811 : vector<1x128xf32> to vector<11x128xf32>
    %943 = arith.addf %941, %942 : vector<11x128xf32>
    %944 = vector.broadcast %4 : vector<1x128xf32> to vector<11x128xf32>
    %945 = arith.mulf %943, %944 : vector<11x128xf32>
    %cst_258 = arith.constant dense<0.000000e+00> : vector<11xf32>
    %946 = vector.multi_reduction <add>, %945, %cst_258 [1] : vector<11x128xf32> to vector<11xf32>
    %947 = vector.shape_cast %946 : vector<11xf32> to vector<11x1xf32>
    %cst_259 = arith.constant 3.125000e-02 : f32
    %948 = vector.broadcast %cst_259 : f32 to vector<11x1xf32>
    %949 = arith.mulf %947, %948 : vector<11x1xf32>
    %950 = vector.broadcast %949 : vector<11x1xf32> to vector<11x128xf32>
    %951 = arith.subf %945, %950 : vector<11x128xf32>
    %952 = vector.broadcast %4 : vector<1x128xf32> to vector<11x128xf32>
    %953 = arith.mulf %951, %952 : vector<11x128xf32>
    %954 = arith.mulf %953, %953 : vector<11x128xf32>
    %cst_260 = arith.constant dense<0.000000e+00> : vector<11xf32>
    %955 = vector.multi_reduction <add>, %954, %cst_260 [1] : vector<11x128xf32> to vector<11xf32>
    %956 = vector.shape_cast %955 : vector<11xf32> to vector<11x1xf32>
    %cst_261 = arith.constant 3.125000e-02 : f32
    %957 = vector.broadcast %cst_261 : f32 to vector<11x1xf32>
    %958 = arith.mulf %956, %957 : vector<11x1xf32>
    %cst_262 = arith.constant 9.99999974E-6 : f32
    %959 = vector.broadcast %cst_262 : f32 to vector<11x1xf32>
    %960 = arith.addf %958, %959 : vector<11x1xf32>
    %961 = math.rsqrt %960 : vector<11x1xf32>
    %962 = vector.broadcast %961 : vector<11x1xf32> to vector<11x128xf32>
    %963 = arith.mulf %953, %962 : vector<11x128xf32>
    %964 = vector.broadcast %812 : vector<1x128xf32> to vector<11x128xf32>
    %965 = arith.mulf %963, %964 : vector<11x128xf32>
    %966 = vector.broadcast %813 : vector<1x128xf32> to vector<11x128xf32>
    %967 = arith.addf %965, %966 : vector<11x128xf32>
    %968 = arith.truncf %967 : vector<11x128xf32> to vector<11x128xbf16>
    %c3_263 = arith.constant 3 : index
    %c0_264 = arith.constant 0 : index
    %c0_265 = arith.constant 0 : index
    %969 = vector.load %arg6[%c3_263, %c0_264, %c0_265] : memref<4x128x128xbf16, #tpu.memory_space<vmem>>, vector<1x128x128xbf16>
    %970 = vector.shape_cast %969 : vector<1x128x128xbf16> to vector<128x128xbf16>
    %cst_266 = arith.constant dense<0.000000e+00> : vector<11x128xf32>
    %971 = tpu.matmul %968, %970, %cst_266 {dimension_numbers = #tpu.dot_dimension_numbers<[1], [0], [0], [1], [0, 0, 1, 1], [], []>} : vector<11x128xbf16>, vector<128x128xbf16>, vector<11x128xf32> -> vector<11x128xf32>
    %972 = vector.broadcast %814 : vector<1x128xf32> to vector<11x128xf32>
    %973 = arith.addf %971, %972 : vector<11x128xf32>
    %cst_267 = arith.constant 1.702000e+00 : f32
    %974 = vector.broadcast %cst_267 : f32 to vector<11x128xf32>
    %975 = arith.mulf %974, %973 : vector<11x128xf32>
    %976 = arith.negf %975 : vector<11x128xf32>
    %977 = math.exp %976 : vector<11x128xf32>
    %cst_268 = arith.constant 1.000000e+00 : f32
    %978 = vector.broadcast %cst_268 : f32 to vector<11x128xf32>
    %979 = arith.addf %978, %977 : vector<11x128xf32>
    %980 = arith.divf %978, %979 : vector<11x128xf32>
    %981 = arith.mulf %973, %980 : vector<11x128xf32>
    %982 = arith.truncf %981 : vector<11x128xf32> to vector<11x128xbf16>
    %c3_269 = arith.constant 3 : index
    %c0_270 = arith.constant 0 : index
    %c0_271 = arith.constant 0 : index
    %983 = vector.load %arg7[%c3_269, %c0_270, %c0_271] : memref<4x128x128xbf16, #tpu.memory_space<vmem>>, vector<1x128x128xbf16>
    %984 = vector.shape_cast %983 : vector<1x128x128xbf16> to vector<128x128xbf16>
    %cst_272 = arith.constant dense<0.000000e+00> : vector<11x128xf32>
    %985 = tpu.matmul %982, %984, %cst_272 {dimension_numbers = #tpu.dot_dimension_numbers<[1], [0], [0], [1], [0, 0, 1, 1], [], []>} : vector<11x128xbf16>, vector<128x128xbf16>, vector<11x128xf32> -> vector<11x128xf32>
    %986 = arith.addf %943, %985 : vector<11x128xf32>
    %987 = vector.broadcast %815 : vector<1x128xf32> to vector<11x128xf32>
    %988 = arith.addf %986, %987 : vector<11x128xf32>
    %989 = vector.extract_strided_slice %988 {offsets = [0, 0], sizes = [8, 128], strides = [1, 1]} : vector<11x128xf32> to vector<8x128xf32>
    %c0_273 = arith.constant 0 : index
    %c0_274 = arith.constant 0 : index
    %c0_275 = arith.constant 0 : index
    %990 = vector.load %arg11[%c0_273, %c0_274, %c0_275] : memref<1x8x128xf32, #tpu.memory_space<vmem>>, vector<1x8x128xf32>
    %991 = vector.shape_cast %990 : vector<1x8x128xf32> to vector<8x128xf32>
    %992 = vector.shape_cast %989 : vector<8x128xf32> to vector<1x8x128xf32>
    tpu.vector_store %arg11[%c0_273, %c0_274, %c0_275], %992 {strides = array<i32>} : memref<1x8x128xf32, #tpu.memory_space<vmem>>, vector<1x8x128xf32>,
    return
  }
  func.func @transform_0(%arg0: i32) -> (i32, i32, i32) {
    %c0_i32 = arith.constant 0 : i32
    %c0_i32_0 = arith.constant 0 : i32
    %c0_i32_1 = arith.constant 0 : i32
    return %arg0, %c0_i32, %c0_i32_0 : i32, i32, i32
  }
  func.func @transform_1(%arg0: i32) -> (i32, i32, i32) {
    %c0_i32 = arith.constant 0 : i32
    %c0_i32_0 = arith.constant 0 : i32
    %c0_i32_1 = arith.constant 0 : i32
    return %arg0, %c0_i32, %c0_i32_0 : i32, i32, i32
  }
  func.func @transform_2(%arg0: i32) -> (i32, i32, i32) {
    %c0_i32 = arith.constant 0 : i32
    %c0_i32_0 = arith.constant 0 : i32
    %c0_i32_1 = arith.constant 0 : i32
    %c0_i32_2 = arith.constant 0 : i32
    return %c0_i32, %c0_i32_0, %c0_i32_1 : i32, i32, i32
  }
  func.func @transform_3(%arg0: i32) -> (i32, i32, i32) {
    %c0_i32 = arith.constant 0 : i32
    %c0_i32_0 = arith.constant 0 : i32
    %c0_i32_1 = arith.constant 0 : i32
    %c0_i32_2 = arith.constant 0 : i32
    return %c0_i32, %c0_i32_0, %c0_i32_1 : i32, i32, i32
  }
  func.func @transform_4(%arg0: i32) -> (i32, i32, i32) {
    %c0_i32 = arith.constant 0 : i32
    %c0_i32_0 = arith.constant 0 : i32
    %c0_i32_1 = arith.constant 0 : i32
    %c0_i32_2 = arith.constant 0 : i32
    return %c0_i32, %c0_i32_0, %c0_i32_1 : i32, i32, i32
  }
  func.func @transform_5(%arg0: i32) -> (i32, i32, i32) {
    %c0_i32 = arith.constant 0 : i32
    %c0_i32_0 = arith.constant 0 : i32
    %c0_i32_1 = arith.constant 0 : i32
    %c0_i32_2 = arith.constant 0 : i32
    return %c0_i32, %c0_i32_0, %c0_i32_1 : i32, i32, i32
  }
  func.func @transform_6(%arg0: i32) -> (i32, i32, i32) {
    %c0_i32 = arith.constant 0 : i32
    %c0_i32_0 = arith.constant 0 : i32
    %c0_i32_1 = arith.constant 0 : i32
    %c0_i32_2 = arith.constant 0 : i32
    return %c0_i32, %c0_i32_0, %c0_i32_1 : i32, i32, i32
  }
  func.func @transform_7(%arg0: i32) -> (i32, i32, i32) {
    %c0_i32 = arith.constant 0 : i32
    %c0_i32_0 = arith.constant 0 : i32
    %c0_i32_1 = arith.constant 0 : i32
    %c0_i32_2 = arith.constant 0 : i32
    return %c0_i32, %c0_i32_0, %c0_i32_1 : i32, i32, i32
  }
  func.func @transform_8(%arg0: i32) -> (i32, i32, i32) {
    %c0_i32 = arith.constant 0 : i32
    %c0_i32_0 = arith.constant 0 : i32
    %c0_i32_1 = arith.constant 0 : i32
    %c0_i32_2 = arith.constant 0 : i32
    return %c0_i32, %c0_i32_0, %c0_i32_1 : i32, i32, i32
  }
  func.func @transform_9(%arg0: i32) -> (i32, i32, i32) {
    %c0_i32 = arith.constant 0 : i32
    %c0_i32_0 = arith.constant 0 : i32
    %c0_i32_1 = arith.constant 0 : i32
    %c0_i32_2 = arith.constant 0 : i32
    return %c0_i32, %c0_i32_0, %c0_i32_1 : i32, i32, i32
  }
  func.func @transform_10(%arg0: i32) -> (i32, i32, i32) {
    %c0_i32 = arith.constant 0 : i32
    %c0_i32_0 = arith.constant 0 : i32
    %c0_i32_1 = arith.constant 0 : i32
    return %arg0, %c0_i32, %c0_i32_0 : i32, i32, i32
  }
  func.func @transform_11(%arg0: i32) -> (i32, i32, i32, i32) {
    %c0_i32 = arith.constant 0 : i32
    %c0_i32_0 = arith.constant 0 : i32
    %c0_i32_1 = arith.constant 0 : i32
    %c0_i32_2 = arith.constant 0 : i32
    return %c0_i32, %arg0, %c0_i32_0, %c0_i32_1 : i32, i32, i32, i32
  }
}

</mosaic_0001>

<bundles_post_ra>
// kernel: transformer_vptd_forward.1
= control target key start
LH: loop header
LB: loop body
LE: loop exit
PB: predicated region body
PF: predicated region fallthrough
CT: control target
= control target key end

     0   :  { %s10017_s0 = inlined_call_operand.vmem [shape: f32[2,8,128], index: 0, kind: input, shape index: {}]   ;;  %s10018_s1 = inlined_call_operand.vmem [shape: f32[2,8,128], index: 1, kind: input, shape index: {}]   ;;  %s10019_s2 = inlined_call_operand.vmem [shape: f32[2,4,128], index: 2, kind: input, shape index: {}]   ;;  %s10020_s3 = inlined_call_operand.vmem [shape: f32[2,10,128], index: 3, kind: input, shape index: {}]   ;;  %s10021_s4 = inlined_call_operand.hbm [shape: bf16[4,128,512], index: 4, kind: input, shape index: {}]   ;;  %s10022_s5 = inlined_call_operand.vmem [shape: bf16[4,128,128], index: 5, kind: input, shape index: {}]   ;;  %s10023_s6 = inlined_call_operand.hbm [shape: bf16[4,128,128], index: 6, kind: input, shape index: {}]   ;;  %s10024_s7 = inlined_call_operand.vmem [shape: f32[4,10,128], index: 7, kind: input, shape index: {}]   ;;  %s10025_s8 = inlined_call_operand.hbm [shape: bf16[2,128,640], index: 8, kind: input, shape index: {}]   ;;  %s10026_s9 = inlined_call_operand.vmem [shape: f32[2,5,128], index: 9, kind: input, shape index: {}]   ;;  %s10027_s10 = inlined_call_operand.vmem [shape: f32[2,8,128], index: 10, kind: output, shape index: {0}]   ;;  %s10028_s11 = inlined_call_operand.vmem [shape: f32[2,2,8,128], index: 11, kind: output, shape index: {1}]  }
   0x1   :  { %10034 = sst [smem:[#allocation13_spill]] %s10023_s6 }
   0x2   :  { %17 = vsyncpa [#allocation3], 0 }
   0x3   :  { %18 = vsyncpa [#allocation5], 0  ;;  %s8776_s17 = smov 0   ;;  %s8778_s18 = smov 0  }
   0x4   :  { %s8780_s19 = smov 0  }
   0x5 LB: > { %10035 = sst [smem:[#allocation10_spill]] %s8697_s18  ;;  %s8789_s20 = sadd.s32 4294967295, %s8701_s19   ;;  %s8701_s19 = sphi %s8780_s19, %s10049_s19   ;;  %s8697_s18 = sphi %s8778_s18, %s10051_s18   ;;  %s8693_s17 = sphi %s8776_s17, %s10050_s17  }
   0x6   : > { %s8791_s21 = sadd.s32 1, %s8701_s19   ;;  %s277_s23 = sadd.s32 1, %s8697_s18 }
   0x7   : > { %10036 = sst [smem:[#allocation11_spill]] %s8791_s21  ;;  %s274_s22 = ssub.s32 %s8701_s19, %s8791_s21 }
   0x8   : > { %p275_p0 = scmp.eq.s32.totalorder %s274_s22, 0  ;;  %p287_p1 = scmp.ne.s32.totalorder %s8697_s18, %s8693_s17 }
   0x9   : > { %p288_p2 = scmp.eq.s32.totalorder %s8789_s20, 1  ;;  %p6461_p3 = scmp.ge.s32.totalorder %s8701_s19, 1 }
   0xa   : > { %s8799_s24 = scalar_select %p275_p0, %s8697_s18, %s277_s23  }
   0xb   : > { %p8801_p4 = por %p288_p2, %p287_p1  ;;  %p301_p5 = scmp.lt.s32.totalorder %s8701_s19, 3 }
   0xc   : > { %10037 = sst [smem:[#allocation12_spill]] %s8799_s24  ;;  %p10029_p6 = scmp.eq.s32.totalorder %s8789_s20, 0 }
   0xd   : > { %s10038_s25 = scalar_select %p8801_p4, 1, 0 }
   0xe   : > { %p8806_p7 = pnand %p6461_p3, %p301_p5  ;;  %s8703_s27 = smov [#allocation4]  }
   0xf   : > { %s335_s28 = sshll.u32 %s8703_s27, 4  ;;  %s8704_s30 = smov [#allocation2]   ;;  %s336_s28 = int_to_ptr.vmem [resolvable:$true] %s335_s28 }
  0x10   : > { %s10039_s26 = scalar_select %p8806_p7, 1, 0 }
  0x11   : > { %p7956_p8 = pneg %p8806_p7  ;;  %s319_s12 = sshll.u32 %s8704_s30, 4  ;;  %s8818_s12 = int_to_ptr.vmem [resolvable:$true] %s319_s12 }
  0x12   : > { %s10041_s6 = sld [smem:[#allocation13_spill]] }
  0x13   : > { %p8814_p9 = pnand %p10029_p6, %p7956_p8 }
  0x15   : > { %p8828_p11 = pneg %p8814_p9 }
  0x18   : > { %s8587_s15 = scalar_lea.hbm %s10041_s6, 4096 }
  0x19   : > { %p8588_p10 = scmp.ne.s32.totalorder %s10041_s6, %s8587_s15  ;;  %p8594_p0 = scmp.lt.u32.totalorder %s8587_s15, %s10041_s6 }
  0x1b   : > { %p8590_p12 = pnand %p8828_p11, %p8588_p10 }
  0x1d   : > { %p8591_p13 = pneg %p8590_p12 }
  0x1f   : > { %p8596_p1 = pnand %p8594_p0, %p8591_p13 }
  0x21   : > { %8599 = shalt.err (!%p8596_p1)
}
  0x22   : > { %s8600_s30 = scalar_lea.vmem %s336_s28, 4096  ;;  %p8608_p8 = scmp.lt.s32.totalorder %s336_s28, %s336_s28 }
  0x23   : > { %p8601_p2 = scmp.ne.s32.totalorder %s336_s28, %s8600_s30  ;;  %p8609_p6 = scmp.lt.s32.totalorder %s8600_s30, %s8600_s30 }
  0x25   : > { %p8603_p3 = pnand %p8601_p2, %p8828_p11  ;;  %p8610_p4 = por %p8609_p6, %p8608_p8 }
  0x27   : > { %p8604_p5 = pneg %p8603_p3 }
  0x29   : > { %p8611_p7 = pnand %p8610_p4, %p8604_p5 }
  0x2b   : > { %8614 = shalt.err (!%p8611_p7)
}
  0x2c   : > { %s8705_s13 = smov 64   ;;  %s8706_s14 = smov 4  }
  0x2d   : > { %7962 = dma.hbm_to_vmem [thread:$0]  (!%p8814_p9), %s10041_s6, 4096, %s336_s28, [#allocation5], %s8705_s13, %s8705_s13, %s8706_s14  }
  0x2e   : > { %s8615_s27 = scalar_lea.hbm %s10021_s4, 16384 }
  0x2f   : > { %p8616_p10 = scmp.ne.s32.totalorder %s10021_s4, %s8615_s27  ;;  %p8622_p7 = scmp.lt.u32.totalorder %s8615_s27, %s10021_s4 }
  0x31   : > { %p8618_p4 = pnand %p8616_p10, %p8828_p11 }
  0x33   : > { %p8619_p6 = pneg %p8618_p4 }
  0x35   : > { %p8624_p12 = pnand %p8622_p7, %p8619_p6 }
  0x37   : > { %8627 = shalt.err (!%p8624_p12)
}
  0x38   : > { %s8628_s28 = scalar_lea.vmem %s8818_s12, 16384  ;;  %p8636_p2 = scmp.lt.s32.totalorder %s8818_s12, %s8818_s12 }
  0x39   : > { %p8629_p13 = scmp.ne.s32.totalorder %s8818_s12, %s8628_s28  ;;  %p8637_p3 = scmp.lt.s32.totalorder %s8628_s28, %s8628_s28 }
  0x3b   : > { %p8631_p0 = pnand %p8629_p13, %p8828_p11  ;;  %p8638_p5 = por %p8637_p3, %p8636_p2 }
  0x3d   : > { %p8632_p1 = pneg %p8631_p0 }
  0x3f   : > { %p8639_p8 = pnand %p8638_p5, %p8632_p1 }
  0x41   : > { %8642 = shalt.err (!%p8639_p8)
}
  0x42   : > { %s8707_s18 = smov 256   ;;  %s8708_s21 = smov 16  }
  0x43   : > { %7959 = dma.hbm_to_vmem [thread:$0]  (!%p8814_p9), %s10021_s4, 16384, %s8818_s12, [#allocation3], %s8707_s18, %s8707_s18, %s8708_s21  }
  0x44   : > { %s8709_s14 = smov [#allocation6]   ;;  %s8643_s23 = scalar_lea.hbm %s10025_s8, 10240 }
  0x45   : > { %s351_s16 = sshll.u32 %s8709_s14, 4  ;;  %p8644_p10 = scmp.ne.s32.totalorder %s10025_s8, %s8643_s23  ;;  %s352_s16 = int_to_ptr.vmem [resolvable:$true] %s351_s16 }
  0x46   : > { %p8650_p7 = scmp.lt.u32.totalorder %s8643_s23, %s10025_s8 }
  0x47   : > { %p8646_p4 = pnand %p8644_p10, %p8828_p11 }
  0x49   : > { %p8647_p6 = pneg %p8646_p4 }
  0x4b   : > { %p8652_p12 = pnand %p8650_p7, %p8647_p6 }
  0x4d   : > { %8655 = shalt.err (!%p8652_p12)
}
  0x4e   : > { %s8656_s12 = scalar_lea.vmem %s352_s16, 10240  ;;  %p8664_p2 = scmp.lt.s32.totalorder %s352_s16, %s352_s16 }
  0x4f   : > { %p8657_p13 = scmp.ne.s32.totalorder %s352_s16, %s8656_s12  ;;  %p8665_p3 = scmp.lt.s32.totalorder %s8656_s12, %s8656_s12 }
  0x51   : > { %p8659_p0 = pnand %p8657_p13, %p8828_p11  ;;  %p8666_p5 = por %p8665_p3, %p8664_p2 }
  0x53   : > { %p8660_p1 = pneg %p8659_p0 }
  0x55   : > { %p8667_p8 = pnand %p8666_p5, %p8660_p1 }
  0x57   : > { %8670 = shalt.err (!%p8667_p8)
}
  0x58   : > { %s8710_s18 = smov 320   ;;  %s8711_s21 = smov 20  }
  0x59   : > { %7965 = dma.hbm_to_vmem [thread:$0]  (!%p8814_p9), %s10025_s8, 10240, %s352_s16, [#allocation5], %s8710_s18, %s8710_s18, %s8711_s21  }
  0x5a   : > { %p10043_p10 = scmp.ne.s32.totalorder %s10039_s26, 0 }
  0x5b   : > { %p10044_p4 = scmp.eq.s32.totalorder (!%p10043_p10), %s8789_s20, 0 }
  0x5c   : > { %384 = sbr.rel (%p10043_p10) target bundleno = 12467 (0x30b3), region = 60 }
  0x63   : > { %8684 = dma.done.wait (%p10044_p4), [#allocation3], 16384   ;;  %p10045_p11 = pmov %p10044_p4 }
  0x64   : > { %p10046_p6 = pmov %p10044_p4 }
  0x65   : > { %8686 = vsyncadd (%p10045_p11), [#allocation3], 4294950912 }
  0x66   : > { %8688 = dma.done.wait (%p10046_p6), [#allocation5], 14336   ;;  %p10047_p7 = pmov %p10044_p4 }
  0x67   : > { %v451_v0 = vlaneseq  ;;  %p438_p12 = scmp.lt.s32.totalorder %s8789_s20, 1  ;;  %v8712_v1 = vmov 0.0   ;;  %v482_v4 = vld [vmem:[%s10019_s2] sm:$0xf]  ;;  %vm521_vm1 = vcmask 1043456   ;;  %v8713_v39 = vmov 0  }
  0x68   : > { %8690 = vsyncadd (%p10047_p7), [#allocation5], 4294952960  ;;  %7152 = vmatprep.subr.bf16.mxu1 %v8712_v1  ;;  %v8009_v9 = vld [vmem:[#allocation2 + $0x4] ss:$16 sps:$4 sm:$0xff]   ;;  %v8011_v10 = vld [vmem:[#allocation2] ss:$16 sps:$4 sm:$0xff]   ;;  %719 = vmatprep.mubr.bf16.mxu0 %v8713_v39 }
  0x69   : > { %v8898_v2 = vand.u32 127, %v451_v0  ;;  %s439_s26 = scalar_select %p438_p12, %s8789_s20, 1  ;;  %v8012_v11 = vld [vmem:[#allocation2 + $0x8] ss:$16 sps:$4 sm:$0xff]   ;;  %v8015_v12 = vld [vmem:[#allocation2 + $0x24] ss:$16 sps:$4 sm:$0xff]   ;;  %687 = vmatprep.subr.bf16.mxu0 %v8009_v9 }
  0x6a   : > { %7153 = vmatpush3.bf16.msra.mxu1 %v8012_v11  ;;  %688 = vmatpush1.bf16.msra.mxu0 %v8011_v10  ;;  %v8017_v24 = vld [vmem:[#allocation2 + $0x20] ss:$16 sps:$4 sm:$0xff]   ;;  %v8018_v25 = vld [vmem:[#allocation2 + $0x28] ss:$16 sps:$4 sm:$0xff]   ;;  %v8021_v26 = vld [vmem:[#allocation2 + $0x44] ss:$16 sps:$4 sm:$0xff]  }
  0x6b   : > { %vm453_vm0 = vcmp.lt.s32.totalorder %v8898_v2, 32  ;;  %s8902_s29 = sshll.u32 %s439_s26, 3  ;;  %7154 = vmatprep.subr.bf16.mxu1 %v8712_v1  ;;  %689 = vmatprep.subr.bf16.mxu0 %v8015_v12  ;;  %v8023_v27 = vld [vmem:[#allocation2 + $0x40] ss:$16 sps:$4 sm:$0xff]   ;;  %v8024_v28 = vld [vmem:[#allocation2 + $0x48] ss:$16 sps:$4 sm:$0xff]  }
  0x6c   : > { %v8907_v3 = vsel %vm453_vm0, 1.0, %v8712_v1  ;;  %s8913_s14 = scalar_lea.vmem %s10017_s0, %s8902_s29  ;;  %v8027_v29 = vld [vmem:[#allocation2 + $0x64] ss:$16 sps:$4 sm:$0xff]   ;;  %v8029_v30 = vld [vmem:[#allocation2 + $0x60] ss:$16 sps:$4 sm:$0xff]   ;;  %vm8714_vm2 = vmmov 0   ;;  %s445_s13 = scalar_lea.vmem %s10018_s1, %s8902_s29 }
  0x6d   : > { %v479_v5 = vld [vmem:[%s8913_s14] sm:$0xff]  ;;  %v518_v6 = vmul.f32 %v8907_v3, %v482_v4  ;;  %v8030_v31 = vld [vmem:[#allocation2 + $0x68] ss:$16 sps:$4 sm:$0xff]   ;;  %7168 = vmatprep.mubr.msk.bf16.mxu1 %vm8714_vm2, %v8712_v1  ;;  %v8946_v51 = vshrl.u32 %v451_v0, 7  ;;  %vm468_vm3 = vcmp.ge.s32.totalorder %v8898_v2, 16  ;;  %vm469_vm4 = vcmp.lt.s32.totalorder %v8898_v2, 24 }
  0x6e   : > { %v517_v8 = vmul.f32 %v8907_v3, %v479_v5  ;;  %690 = vmatpush1.bf16.msra.mxu0 %v8017_v24  ;;  %7155 = vmatpush3.bf16.msra.mxu1 %v8018_v25  ;;  %v8033_v32 = vld [vmem:[#allocation2 + $0x84] ss:$16 sps:$4 sm:$0xff]   ;;  %v8035_v33 = vld [vmem:[#allocation2 + $0x80] ss:$16 sps:$4 sm:$0xff]   ;;  %v8036_v34 = vld [vmem:[#allocation2 + $0x88] ss:$16 sps:$4 sm:$0xff]  }
  0x6f   : > { %v522_v7 = vsel %vm521_vm1, %v518_v6, 0.0  ;;  %7156 = vmatprep.subr.bf16.mxu1 %v8712_v1  ;;  %691 = vmatprep.subr.bf16.mxu0 %v8021_v26  ;;  %v8039_v35 = vld [vmem:[#allocation2 + $0xa4] ss:$16 sps:$4 sm:$0xff]   ;;  %v8041_v36 = vld [vmem:[#allocation2 + $0xa0] ss:$16 sps:$4 sm:$0xff]   ;;  %v8949_v52 = vsub.s32 0, %v8946_v51  ;;  %vm470_vm6 = vmand %vm468_vm3, %vm469_vm4 }
  0x70   : > { %523 = vadd.xlane.f32.xlu0 %v522_v7  ;;  %v8042_v37 = vld [vmem:[#allocation2 + $0xa8] ss:$16 sps:$4 sm:$0xff]   ;;  %v8045_v38 = vld [vmem:[#allocation2 + $0xc4] ss:$16 sps:$4 sm:$0xff]   ;;  %v8047_v40 = vld [vmem:[#allocation2 + $0xc0] ss:$16 sps:$4 sm:$0xff]  }
  0x71   : > { %v8048_v41 = vld [vmem:[#allocation2 + $0xc8] ss:$16 sps:$4 sm:$0xff]   ;;  %v8051_v42 = vld [vmem:[#allocation2 + $0xe4] ss:$16 sps:$4 sm:$0xff]   ;;  %v8053_v43 = vld [vmem:[#allocation2 + $0xe0] ss:$16 sps:$4 sm:$0xff]  }
  0x72   : > { %692 = vmatpush1.bf16.msra.mxu0 %v8023_v27  ;;  %7157 = vmatpush3.bf16.msra.mxu1 %v8024_v28  ;;  %v8054_v44 = vld [vmem:[#allocation2 + $0xe8] ss:$16 sps:$4 sm:$0xff]   ;;  %v8954_v53 = vld [vmem:[%s10024_s7] sm:$0xff]  ;;  %v8960_v57 = vsub.s32 1, %v8946_v51  ;;  %v8970_v5 = vsub.s32 2, %v8946_v51  ;;  %v8976_v7 = vsub.s32 3, %v8946_v51 }
  0x73   : > { %7158 = vmatprep.subr.bf16.mxu1 %v8712_v1  ;;  %693 = vmatprep.subr.bf16.mxu0 %v8027_v29  ;;  %v549_v56 = vrot.slane %v8954_v53, %v8949_v52  ;;  %vm457_vm5 = vcmp.lt.s32.totalorder %v8898_v2, 8  ;;  %vm462_vm7 = vcmp.ge.s32.totalorder %v8898_v2, 8  ;;  %v6477_v29 = vsel %vm470_vm6, 1.0, %v8712_v1  ;;  %s435_s21 = sand.u32 1, %s8693_s17   ;;  %p10048_p9 = scmp.ne.s32.totalorder %s10038_s25, 0 }
  0x74   : > { %519 = vadd.xlane.f32.xlu0 %v517_v8  ;;  %v555_v61 = vrot.slane %v8954_v53, %v8960_v57  ;;  %v781_v12 = vrot.slane %v8954_v53, %v8976_v7  ;;  %v6475_v28 = vsel %vm457_vm5, 1.0, %v8712_v1  ;;  %vm463_vm8 = vcmp.lt.s32.totalorder %v8898_v2, 16  ;;  %s6470_s24 = sshll.u32 %s435_s21, 4  ;;  %s449_s21 = scalar_lea.vmem %s10027_s10, %s8902_s29 }
  0x75   : > { %vm474_vm9 = vcmp.ge.s32.totalorder %v8898_v2, 24  ;;  %vm464_vm10 = vmand %vm462_vm7, %vm463_vm8  ;;  %vm933_vm12 = vcmask 1045504   ;;  %vm836_vm13 = vcmask 97280   ;;  %vm840_vm14 = vcmask 93184   ;;  %s9509_s6 = scalar_lea.vmem [#allocation7], %s6470_s24  ;;  %s6837_s24 = sshll.u32 (%p10048_p9), %s8789_s20, 3 }
  0x76   : > { %694 = vmatpush1.bf16.msra.mxu0 %v8029_v30  ;;  %7159 = vmatpush3.bf16.msra.mxu1 %v8030_v31  ;;  %v8994_v30 = vpack.c.bf16 %v6475_v28, %v6475_v28  ;;  %v8997_v31 = vpack.c.bf16 %v6477_v29, %v6477_v29  ;;  %vm475_vm11 = vmand %vm474_vm9, %vm453_vm0  ;;  %vm3113_vm15 = vcmask 146432   ;;  %vm3129_vm0 = vcmask 1040384   ;;  %s6305_s22 = scalar_lea.vmem (%p10048_p9), %s10028_s11, %s6837_s24 }
  0x77   : > { %7160 = vmatprep.subr.bf16.mxu1 %v8712_v1  ;;  %695 = vmatprep.subr.bf16.mxu0 %v8033_v32  ;;  %v6476_v32 = vsel %vm464_vm10, 1.0, %v8712_v1  ;;  %vm3835_vm3 = vcmask 1044480   ;;  %vm3738_vm4 = vcmask 89088   ;;  %vm3742_vm5 = vcmask 83968  }
  0x7a   : > { %696 = vmatpush1.bf16.msra.mxu0 %v8035_v33  ;;  %7161 = vmatpush3.bf16.msra.mxu1 %v8036_v34 }
  0x7b   : > { %697 = vmatprep.subr.bf16.mxu0 %v8039_v35  ;;  %7162 = vmatprep.subr.bf16.mxu1 %v8712_v1  ;;  %v6478_v35 = vsel %vm475_vm11, 1.0, %v8712_v1 }
  0x7c   : > { %v9012_v2 = vpack.c.bf16 %v6478_v35, %v6478_v35 }
  0x7e   : > { %698 = vmatpush1.bf16.msra.mxu0 %v8041_v36  ;;  %7163 = vmatpush3.bf16.msra.mxu1 %v8042_v37  ;;  %v9006_v36 = vpack.c.bf16 %v6476_v32, %v6476_v32 }
  0x7f   : > { %699 = vmatprep.subr.bf16.mxu0 %v8045_v38  ;;  %7164 = vmatprep.subr.bf16.mxu1 %v8712_v1  ;;  %v8014_v38 = vld [vmem:[#allocation2 + $0xc] ss:$16 sps:$4 sm:$0xff]  }
  0x82   : > { %700 = vmatpush1.bf16.msra.mxu0 %v8047_v40  ;;  %7165 = vmatpush3.bf16.msra.mxu1 %v8048_v41 }
  0x83   : > { %701 = vmatprep.subr.bf16.mxu0 %v8051_v42  ;;  %7166 = vmatprep.subr.bf16.mxu1 %v8712_v1 }
  0x86   : > { %702 = vmatpush1.bf16.msra.mxu0 %v8053_v43  ;;  %7167 = vmatpush3.bf16.msra.mxu1 %v8054_v44  ;;  %v8020_v43 = vld [vmem:[#allocation2 + $0x2c] ss:$16 sps:$4 sm:$0xff]  }
  0x87   : > { %7172 = vmatprep.subr.bf16.mxu0 %v8712_v1  ;;  %7196 = vmatprep.subr.bf16.mxu1 %v8712_v1  ;;  %v8026_v44 = vld [vmem:[#allocation2 + $0x4c] ss:$16 sps:$4 sm:$0xff]  }
  0xfd   : > { %v524_v13 = vpop.xlane.xlu0 %523 }
  0xfe   : > { %v526_v14 = vmul.f32 0.03125, %v524_v13 }
 0x100   : > { %v528_v15 = vsub.f32 %v518_v6, %v526_v14  ;;  %v8973_v6 = vsub.s32 4, %v8946_v51 }
 0x101   : > { %v520_v16 = vpop.xlane.xlu0 %519 }
 0x102   : > { %v525_v17 = vmul.f32 0.03125, %v520_v16  ;;  %v8924_v19 = vmul.f32 %v8907_v3, %v528_v15  ;;  %v788_v9 = vrot.slane %v8954_v53, %v8973_v6 }
 0x104   : > { %v527_v18 = vsub.f32 %v517_v8, %v525_v17  ;;  %v532_v22 = vmul.f32 %v8924_v19, %v8924_v19  ;;  %v774_v8 = vrot.slane %v8954_v53, %v8970_v5 }
 0x106   : > { %v8927_v20 = vmul.f32 %v8907_v3, %v527_v18  ;;  %v535_v23 = vsel %vm521_vm1, %v532_v22, 0.0 }
 0x108   : > { %v531_v21 = vmul.f32 %v8927_v20, %v8927_v20 }
 0x10a   : > { %533 = vadd.xlane.f32.xlu1 %v531_v21 }
 0x10e   : > { %536 = vadd.xlane.f32.xlu1 %v535_v23 }
 0x197   : > { %v534_v45 = vpop.xlane.xlu1 %533 }
 0x198   : > { %v538_v46 = vmul.f32 0.03125, %v534_v45  ;;  %v8032_v45 = vld [vmem:[#allocation2 + $0x6c] ss:$16 sps:$4 sm:$0xff]  }
 0x19a   : > { %v540_v47 = vadd.f32 1e-05, %v538_v46  ;;  %v8038_v46 = vld [vmem:[#allocation2 + $0x8c] ss:$16 sps:$4 sm:$0xff]  }
 0x19b   : > { %v537_v48 = vpop.xlane.xlu1 %536 }
 0x19c   : > { %8377 = vrsqrt.f32 %v540_v47  ;;  %v539_v49 = vmul.f32 0.03125, %v537_v48  ;;  %v8044_v47 = vld [vmem:[#allocation2 + $0xac] ss:$16 sps:$4 sm:$0xff]  }
 0x19d   : > { %v8050_v48 = vld [vmem:[#allocation2 + $0xcc] ss:$16 sps:$4 sm:$0xff]  }
 0x19e   : > { %v541_v50 = vadd.f32 1e-05, %v539_v49  ;;  %v8056_v49 = vld [vmem:[#allocation2 + $0xec] ss:$16 sps:$4 sm:$0xff]  }
 0x1a0   : > { %8379 = vrsqrt.f32 %v541_v50 }
 0x1a6   : > { %v8378_v54 = vpop.eup %8377 }
 0x1a7   : > { %v544_v55 = vmul.f32 %v8378_v54, %v8927_v20 }
 0x1a9   : > { %v550_v60 = vmul.f32 %v549_v56, %v544_v55 }
 0x1aa   : > { %v8380_v58 = vpop.eup %8379 }
 0x1ab   : > { %v545_v59 = vmul.f32 %v8380_v58, %v8924_v19  ;;  %v556_v63 = vadd.f32 %v555_v61, %v550_v60 }
 0x1ad   : > { %v551_v62 = vmul.f32 %v549_v56, %v545_v59 }
 0x1af   : > { %v557_v0 = vadd.f32 %v555_v61, %v551_v62 }
 0x1b1   : > { %v558_v4 = vpack.c.bf16 %v557_v0, %v556_v63 }
 0x1b3   : > { %720 = vmatmul.mubr.bf16.vlgmr.msra.gmra.mrb[0].mxu0 %v558_v4  ;;  %7169 = vmatmul.mubr.bf16.vlgmr.msra.gmra.mrb[0].mxu1 %v558_v4 }
 0x1b4   : > { %7174 = vmatprep.mubr.msk.bf16.mxu0 %vm8714_vm2, %v8712_v1  ;;  %7198 = vmatprep.mubr.msk.bf16.mxu1 %vm8714_vm2, %v8712_v1 }
 0x286   : > { %v721_v10 = vpop.f32.mrb[0].mxu0  ;;  %v764_v11 = vpop.f32.mrb[0].mxu1 }
 0x287   : > { %v723_v13 = vpop.f32.mrb[1].mxu0  ;;  %v7170_v14 = vpop.f32.mrb[1].mxu1  ;;  %v775_v17 = vadd.f32 %v774_v8, %v721_v10  ;;  %v789_v18 = vadd.f32 %v788_v9, %v764_v11 }
 0x288   : > { %v725_v15 = vpop.f32.mrb[2].mxu0  ;;  %v767_v16 = vpop.f32.mrb[2].mxu1  ;;  %v782_v23 = vadd.f32 %v781_v12, %v723_v13 }
 0x289   : > { %v776_v19 = vadd.f32 %v774_v8, %v725_v15  ;;  %v790_v20 = vadd.f32 %v788_v9, %v767_v16  ;;  %v727_v21 = vpop.f32.mrb[3].mxu0  ;;  %v7171_v22 = vpop.f32.mrb[3].mxu1 }
 0x28a   : > { %v783_v24 = vadd.f32 %v781_v12, %v727_v21 }
 0x28b   : > { %v777_v25 = vpack.c.bf16 %v776_v19, %v775_v17  ;;  %v8987_v26 = vpack.c.bf16 %v790_v20, %v789_v18 }
 0x28c   : > { %v784_v27 = vpack.c.bf16 %v783_v24, %v782_v23 }
 0x28d   : > { %v792_v33 = vmul.bf16 %v777_v25, %v8994_v30  ;;  %v1025_v34 = vmul.bf16 %v777_v25, %v8997_v31  ;;  %v929_v37 = vmul.bf16 %v8987_v26, %v9006_v36  ;;  %v862_v40 = vmul.bf16 %v777_v25, %v9006_v36 }
 0x28e   : > { %7173 = vmatpush3.bf16.xpose.msra.mxu0 %v784_v27  ;;  %7197 = vmatpush3.bf16.xpose.msra.mxu1 %v784_v27  ;;  %v1142_v41 = vmul.bf16 %v777_v25, %v9012_v2 }
 0x28f   : > { %7178 = vmatprep.subr.bf16.mxu0 %v8712_v1  ;;  %7208 = vmatprep.subr.bf16.mxu1 %v8712_v1  ;;  %v935_v42 = vsel %vm933_vm12, %v929_v37, 0 }
 0x295   : > { %7175 = vmatmul.mubr.bf16.vlgmr.msra.gmra.mrb[4].mxu0 %v792_v33  ;;  %7199 = vmatmul.mubr.bf16.vlgmr.msra.gmra.mrb[4].mxu1 %v1025_v34 }
 0x296   : > { %7179 = vmatpush3.bf16.xpose.msra.mxu0 %v784_v27  ;;  %7209 = vmatpush3.bf16.xpose.msra.mxu1 %v784_v27 }
 0x297   : > { %7180 = vmatprep.mubr.msk.bf16.mxu0 %vm8714_vm2, %v8712_v1  ;;  %7210 = vmatprep.mubr.msk.bf16.mxu1 %vm8714_vm2, %v8712_v1 }
 0x298   : > { %7184 = vmatprep.subr.bf16.mxu0 %v8712_v1  ;;  %7220 = vmatprep.subr.bf16.mxu1 %v8712_v1 }
 0x29d   : > { %7181 = vmatmul.mubr.bf16.vlgmr.msra.gmra.mrb[8].mxu0 %v862_v40  ;;  %7211 = vmatmul.mubr.bf16.vlgmr.msra.gmra.mrb[8].mxu1 %v1142_v41 }
 0x29e   : > { %7185 = vmatpush3.bf16.msra.mxu0 %v935_v42  ;;  %7186 = vmatprep.mubr.msk.bf16.mxu0 %vm8714_vm2, %v8712_v1 }
 0x29f   : > { %7190 = vmatprep.subr.bf16.mxu0 %v8712_v1  ;;  %7221 = vmatpush3.bf16.msra.mxu1 %v8014_v38 }
 0x2a0   : > { %7222 = vmatprep.subr.bf16.mxu1 %v8712_v1  ;;  %7236 = vmatprep.mubr.msk.bf16.mxu1 %vm8714_vm2, %v8712_v1 }
 0x2a3   : > { %7223 = vmatpush3.bf16.msra.mxu1 %v8020_v43 }
 0x2a4   : > { %7224 = vmatprep.subr.bf16.mxu1 %v8712_v1 }
 0x2a7   : > { %7225 = vmatpush3.bf16.msra.mxu1 %v8026_v44 }
 0x2a8   : > { %7226 = vmatprep.subr.bf16.mxu1 %v8712_v1 }
 0x2ab   : > { %7227 = vmatpush3.bf16.msra.mxu1 %v8032_v45 }
 0x2ac   : > { %7228 = vmatprep.subr.bf16.mxu1 %v8712_v1 }
 0x2af   : > { %7229 = vmatpush3.bf16.msra.mxu1 %v8038_v46 }
 0x2b0   : > { %7230 = vmatprep.subr.bf16.mxu1 %v8712_v1 }
 0x2b3   : > { %7231 = vmatpush3.bf16.msra.mxu1 %v8044_v47 }
 0x2b4   : > { %7232 = vmatprep.subr.bf16.mxu1 %v8712_v1 }
 0x2b7   : > { %7233 = vmatpush3.bf16.msra.mxu1 %v8050_v48 }
 0x2b8   : > { %7234 = vmatprep.subr.bf16.mxu1 %v8712_v1 }
 0x2bb   : > { %7235 = vmatpush3.bf16.msra.mxu1 %v8056_v49 }
 0x2bc   : > { %7260 = vmatprep.subr.bf16.mxu1 %v8712_v1 }
 0x368   : > { %v827_v50 = vpop.f32.mrb[4].mxu0  ;;  %v1060_v54 = vpop.f32.mrb[4].mxu1 }
 0x369   : > { %v7176_v55 = vpop.f32.mrb[5].mxu0  ;;  %v7200_v56 = vpop.f32.mrb[5].mxu1  ;;  %v834_v14 = vmul.f32 0.35355338, %v827_v50  ;;  %v1067_v18 = vmul.f32 0.35355338, %v1060_v54 }
 0x36a   : > { %v830_v58 = vpop.f32.mrb[6].mxu0  ;;  %v1063_v59 = vpop.f32.mrb[6].mxu1 }
 0x36b   : > { %v7177_v60 = vpop.f32.mrb[7].mxu0  ;;  %v7201_v61 = vpop.f32.mrb[7].mxu1  ;;  %v835_v16 = vmul.f32 0.35355338, %v830_v58  ;;  %v837_v19 = vsel %vm836_vm13, %v834_v14, -inf  ;;  %v1069_v23 = vsel %vm836_vm13, %v1067_v18, -inf }
 0x36c   : > { %v1068_v20 = vmul.f32 0.35355338, %v1063_v59 }
 0x36d   : > { %v841_v21 = vsel %vm840_vm14, %v835_v16, -inf }
 0x36e   : > { %v1072_v25 = vsel %vm840_vm14, %v1068_v20, -inf }
 0x370   : > { %v897_v62 = vpop.f32.mrb[8].mxu0  ;;  %v1177_v63 = vpop.f32.mrb[8].mxu1 }
 0x371   : > { %v904_v0 = vmul.f32 0.35355338, %v897_v62  ;;  %v7182_v4 = vpop.f32.mrb[9].mxu0  ;;  %v7212_v8 = vpop.f32.mrb[9].mxu1  ;;  %v1184_v22 = vmul.f32 0.35355338, %v1177_v63 }
 0x372   : > { %v900_v9 = vpop.f32.mrb[10].mxu0  ;;  %v1180_v10 = vpop.f32.mrb[10].mxu1 }
 0x373   : > { %v905_v11 = vmul.f32 0.35355338, %v900_v9  ;;  %v7183_v12 = vpop.f32.mrb[11].mxu0  ;;  %v7213_v13 = vpop.f32.mrb[11].mxu1  ;;  %v906_v15 = vsel %vm836_vm13, %v904_v0, -inf  ;;  %v1186_v27 = vsel %vm836_vm13, %v1184_v22, -inf }
 0x374   : > { %907 = vmax.xlane.f32.xlu0 %v906_v15  ;;  %v1185_v24 = vmul.f32 0.35355338, %v1180_v10 }
 0x375   : > { %v909_v17 = vsel %vm840_vm14, %v905_v11, -inf }
 0x376   : > { %910 = vmax.xlane.f32.xlu1 %v909_v17  ;;  %v1189_v28 = vsel %vm840_vm14, %v1185_v24, -inf }
 0x378   : > { %838 = vmax.xlane.f32.xlu0 %v837_v19 }
 0x37a   : > { %842 = vmax.xlane.f32.xlu1 %v841_v21 }
 0x37c   : > { %1070 = vmax.xlane.f32.xlu0 %v1069_v23 }
 0x37e   : > { %1073 = vmax.xlane.f32.xlu1 %v1072_v25 }
 0x380   : > { %1187 = vmax.xlane.f32.xlu0 %v1186_v27 }
 0x382   : > { %1190 = vmax.xlane.f32.xlu1 %v1189_v28  ;;  %v861_v28 = vmul.bf16 %v8987_v26, %v8994_v30 }
 0x401   : > { %v908_v29 = vpop.xlane.xlu0 %907 }
 0x402   : > { %v912_v32 = vsub.f32 %v904_v0, %v908_v29 }
 0x403   : > { %v911_v33 = vpop.xlane.xlu1 %910 }
 0x404   : > { %v913_v34 = vsub.f32 %v905_v11, %v911_v33  ;;  %v914_v35 = vmul.f32 1.442695, %v912_v32  ;;  %v982_v32 = vsel %vm933_vm12, %v861_v28, 0 }
 0x405   : > { %v839_v38 = vpop.xlane.xlu0 %838 }
 0x406   : > { %v916_v37 = vmul.f32 1.442695, %v913_v34  ;;  %8381 = vpow2.f32 %v914_v35  ;;  %v844_v40 = vsub.f32 %v834_v14, %v839_v38 }
 0x407   : > { %v843_v41 = vpop.xlane.xlu1 %842 }
 0x408   : > { %8383 = vpow2.f32 %v916_v37  ;;  %v845_v42 = vsub.f32 %v835_v16, %v843_v41  ;;  %v846_v43 = vmul.f32 1.442695, %v844_v40  ;;  %v1092_v41 = vmul.bf16 %v8987_v26, %v8997_v31 }
 0x409   : > { %v1071_v45 = vpop.xlane.xlu0 %1070 }
 0x40a   : > { %v848_v44 = vmul.f32 1.442695, %v845_v42  ;;  %8385 = vpow2.f32 %v846_v43  ;;  %v1075_v46 = vsub.f32 %v1067_v18, %v1071_v45  ;;  %v1097_v43 = vsel %vm933_vm12, %v1092_v41, 0  ;;  %v8059_v41 = vld [vmem:[%s10022_s5 + $0x10] sm:$0xff]  }
 0x40b   : > { %v1074_v47 = vpop.xlane.xlu1 %1073 }
 0x40c   : > { %8387 = vpow2.f32 %v848_v44  ;;  %v1076_v48 = vsub.f32 %v1068_v20, %v1074_v47  ;;  %v1077_v49 = vmul.f32 1.442695, %v1075_v46 }
 0x40d   : > { %v1188_v54 = vpop.xlane.xlu0 %1187 }
 0x40e   : > { %v1079_v50 = vmul.f32 1.442695, %v1076_v48  ;;  %8389 = vpow2.f32 %v1077_v49  ;;  %v1192_v55 = vsub.f32 %v1184_v22, %v1188_v54 }
 0x40f   : > { %v1191_v56 = vpop.xlane.xlu1 %1190 }
 0x410   : > { %8391 = vpow2.f32 %v1079_v50  ;;  %v1193_v58 = vsub.f32 %v1185_v24, %v1191_v56  ;;  %v8382_v59 = vpop.eup %8381  ;;  %v1194_v60 = vmul.f32 1.442695, %v1192_v55  ;;  %v1209_v50 = vmul.bf16 %v8987_v26, %v9012_v2 }
 0x411   : > { %v918_v63 = vsel %vm836_vm13, %v8382_v59, 0.0 }
 0x412   : > { %v8384_v61 = vpop.eup %8383  ;;  %v1196_v62 = vmul.f32 1.442695, %v1193_v58  ;;  %8393 = vpow2.f32 %v1194_v60  ;;  %919 = vadd.xlane.f32.xlu0 %v918_v63  ;;  %v1214_v55 = vsel %vm933_vm12, %v1209_v50, 0 }
 0x413   : > { %v921_v0 = vsel %vm840_vm14, %v8384_v61, 0.0 }
 0x414   : > { %8395 = vpow2.f32 %v1196_v62  ;;  %922 = vadd.xlane.f32.xlu1 %v921_v0  ;;  %v8386_v4 = vpop.eup %8385 }
 0x415   : > { %v850_v9 = vsel %vm836_vm13, %v8386_v4, 0.0 }
 0x416   : > { %v8388_v8 = vpop.eup %8387  ;;  %851 = vadd.xlane.f32.xlu0 %v850_v9 }
 0x417   : > { %v853_v10 = vsel %vm840_vm14, %v8388_v8, 0.0 }
 0x418   : > { %854 = vadd.xlane.f32.xlu1 %v853_v10  ;;  %v8390_v11 = vpop.eup %8389 }
 0x419   : > { %v1081_v13 = vsel %vm836_vm13, %v8390_v11, 0.0 }
 0x41a   : > { %v8392_v12 = vpop.eup %8391  ;;  %1082 = vadd.xlane.f32.xlu0 %v1081_v13 }
 0x41b   : > { %v1084_v14 = vsel %vm840_vm14, %v8392_v12, 0.0 }
 0x41c   : > { %1085 = vadd.xlane.f32.xlu1 %v1084_v14  ;;  %v8394_v15 = vpop.eup %8393 }
 0x41d   : > { %v1198_v17 = vsel %vm836_vm13, %v8394_v15, 0.0 }
 0x41e   : > { %v8396_v16 = vpop.eup %8395  ;;  %1199 = vadd.xlane.f32.xlu0 %v1198_v17 }
 0x41f   : > { %v1201_v18 = vsel %vm840_vm14, %v8396_v16, 0.0 }
 0x420   : > { %1202 = vadd.xlane.f32.xlu1 %v1201_v18 }
 0x49f   : > { %v920_v19 = vpop.xlane.xlu0 %919 }
 0x4a0   : > { %8397 = vrcp.f32 %v920_v19 }
 0x4a1   : > { %v923_v20 = vpop.xlane.xlu1 %922 }
 0x4a2   : > { %8399 = vrcp.f32 %v923_v20 }
 0x4a3   : > { %v852_v22 = vpop.xlane.xlu0 %851 }
 0x4a5   : > { %v855_v21 = vpop.xlane.xlu1 %854 }
 0x4a6   : > { %8401 = vrcp.f32 %v855_v21 }
 0x4a7   : > { %8403 = vrcp.f32 %v852_v22  ;;  %v1083_v35 = vpop.xlane.xlu0 %1082 }
 0x4a9   : > { %v1086_v33 = vpop.xlane.xlu1 %1085 }
 0x4aa   : > { %v8398_v23 = vpop.eup %8397  ;;  %8405 = vrcp.f32 %v1086_v33 }
 0x4ab   : > { %v926_v25 = vmul.f32 %v8398_v23, %v8382_v59  ;;  %8407 = vrcp.f32 %v1083_v35  ;;  %v1200_v46 = vpop.xlane.xlu0 %1199  ;;  %v8057_v23 = vld [vmem:[%s10022_s5] sm:$0xff]  }
 0x4ac   : > { %v8400_v24 = vpop.eup %8399 }
 0x4ad   : > { %v927_v27 = vmul.f32 %v8400_v24, %v8384_v61  ;;  %v1203_v44 = vpop.xlane.xlu1 %1202 }
 0x4ae   : > { %8409 = vrcp.f32 %v1203_v44  ;;  %v8062_v44 = vld [vmem:[%s10022_s5 + $0x28] sm:$0xff]  }
 0x4af   : > { %v928_v29 = vpack.c.bf16 %v927_v27, %v926_v25  ;;  %8411 = vrcp.f32 %v1200_v46  ;;  %v8064_v46 = vld [vmem:[%s10022_s5 + $0x38] sm:$0xff]  }
 0x4b0   : > { %v8402_v34 = vpop.eup %8401 }
 0x4b1   : > { %7187 = vmatmul.mubr.msk.bf16.vlgmr.msra.gmra.mrb[12].mxu0 %vm836_vm13, %v928_v29  ;;  %v8404_v37 = vpop.eup %8403  ;;  %v859_v38 = vmul.f32 %v8402_v34, %v8388_v8  ;;  %v9077_v8 = vsub.s32 5, %v8946_v51 }
 0x4b2   : > { %7191 = vmatpush3.bf16.msra.mxu0 %v982_v32  ;;  %7192 = vmatprep.mubr.msk.bf16.mxu0 %vm8714_vm2, %v8712_v1  ;;  %v858_v40 = vmul.f32 %v8404_v37, %v8386_v4 }
 0x4b3   : > { %7202 = vmatprep.subr.bf16.mxu0 %v8712_v1  ;;  %v1338_v9 = vrot.slane %v8954_v53, %v9077_v8 }
 0x4b4   : > { %v860_v42 = vpack.c.bf16 %v859_v38, %v858_v40  ;;  %v8406_v45 = vpop.eup %8405  ;;  %v8058_v40 = vld [vmem:[%s10022_s5 + $0x8] sm:$0xff]  }
 0x4b5   : > { %v8408_v47 = vpop.eup %8407  ;;  %v1090_v48 = vmul.f32 %v8406_v45, %v8392_v12  ;;  %v8063_v45 = vld [vmem:[%s10022_s5 + $0x30] sm:$0xff]  }
 0x4b6   : > { %v1089_v49 = vmul.f32 %v8408_v47, %v8390_v11  ;;  %v8585_v11 = vld [vmem:[%s8913_s14] sm:$0xff] }
 0x4b8   : > { %v1091_v54 = vpack.c.bf16 %v1090_v48, %v1089_v49  ;;  %v8410_v56 = vpop.eup %8409 }
 0x4b9   : > { %v8412_v58 = vpop.eup %8411  ;;  %v1207_v59 = vmul.f32 %v8410_v56, %v8396_v16  ;;  %v8586_v16 = vld [vmem:[%s10019_s2] sm:$0xf]  ;;  %v9126_v56 = vsub.s32 6, %v8946_v51 }
 0x4ba   : > { %v1206_v60 = vmul.f32 %v8412_v58, %v8394_v15 }
 0x4bc   : > { %v1208_v61 = vpack.c.bf16 %v1207_v59, %v1206_v60  ;;  %v1372_v60 = vrot.slane %v8954_v53, %v9126_v56 }
 0x4bd   : > { %7193 = vmatmul.mubr.msk.bf16.vlgmr.msra.gmra.mrb[12].mxu0 %vm836_vm13, %v860_v42  ;;  %v8060_v42 = vld [vmem:[%s10022_s5 + $0x18] sm:$0xff]  }
 0x4be   : > { %7203 = vmatpush3.bf16.msra.mxu0 %v1097_v43  ;;  %7204 = vmatprep.mubr.msk.bf16.mxu0 %vm8714_vm2, %v8712_v1  ;;  %v8061_v43 = vld [vmem:[%s10022_s5 + $0x20] sm:$0xff]  }
 0x4bf   : > { %7214 = vmatprep.subr.bf16.mxu0 %v8712_v1 }
 0x4c9   : > { %7205 = vmatmul.mubr.msk.bf16.vlgmr.msra.gmra.mrb[12].mxu0 %vm836_vm13, %v1091_v54 }
 0x4ca   : > { %7215 = vmatpush3.bf16.msra.mxu0 %v1214_v55  ;;  %7216 = vmatprep.mubr.msk.bf16.mxu0 %vm8714_vm2, %v8712_v1 }
 0x4cb   : > { %7240 = vmatprep.subr.bf16.mxu0 %v8712_v1 }
 0x4d5   : > { %7217 = vmatmul.mubr.msk.bf16.vlgmr.msra.gmra.mrb[12].mxu0 %vm836_vm13, %v1208_v61  ;;  %v9131_v61 = vsub.s32 7, %v8946_v51  ;;  %v8067_v51 = vld [vmem:[#allocation4 + $0x10] sm:$0xff]  }
 0x4d6   : > { %7256 = vmatprep.mubr.msk.bf16.mxu0 %vm8714_vm2, %v8712_v1  ;;  %7241 = vmatpush3.bf16.msra.mxu0 %v8057_v23 }
 0x4d7   : > { %7242 = vmatprep.subr.bf16.mxu0 %v8712_v1 }
 0x4da   : > { %7243 = vmatpush3.bf16.msra.mxu0 %v8058_v40 }
 0x4db   : > { %7244 = vmatprep.subr.bf16.mxu0 %v8712_v1 }
 0x4de   : > { %7245 = vmatpush3.bf16.msra.mxu0 %v8059_v41 }
 0x4df   : > { %7246 = vmatprep.subr.bf16.mxu0 %v8712_v1 }
 0x4e2   : > { %7247 = vmatpush3.bf16.msra.mxu0 %v8060_v42 }
 0x4e3   : > { %7248 = vmatprep.subr.bf16.mxu0 %v8712_v1 }
 0x4e6   : > { %7249 = vmatpush3.bf16.msra.mxu0 %v8061_v43 }
 0x4e7   : > { %7250 = vmatprep.subr.bf16.mxu0 %v8712_v1 }
 0x4ea   : > { %7251 = vmatpush3.bf16.msra.mxu0 %v8062_v44 }
 0x4eb   : > { %7252 = vmatprep.subr.bf16.mxu0 %v8712_v1 }
 0x4ee   : > { %7253 = vmatpush3.bf16.msra.mxu0 %v8063_v45 }
 0x4ef   : > { %7254 = vmatprep.subr.bf16.mxu0 %v8712_v1 }
 0x4f2   : > { %7255 = vmatpush3.bf16.msra.mxu0 %v8064_v46 }
 0x5a8   : > { %v1250_v26 = vpop.f32.mrb[12].mxu0 }
 0x5a9   : > { %v7218_v62 = vpop.f32.mrb[13].mxu0 }
 0x5aa   : > { %v1253_v63 = vpop.f32.mrb[14].mxu0 }
 0x5ab   : > { %v1259_v0 = vpack.c.bf16 %v1253_v63, %v1250_v26  ;;  %v7219_v4 = vpop.f32.mrb[15].mxu0 }
 0x5ad   : > { %7237 = vmatmul.mubr.bf16.vlgmr.msra.gmra.mrb[12].mxu1 %v1259_v0  ;;  %v1378_v0 = vrot.slane %v8954_v53, %v9131_v61  ;;  %v8068_v53 = vld [vmem:[#allocation4 + $0x18] sm:$0xff]  }
 0x5ae   : > { %7276 = vmatprep.mubr.msk.bf16.mxu1 %vm8714_vm2, %v8712_v1 }
 0x680   : > { %v1326_v10 = vpop.f32.mrb[12].mxu1 }
 0x681   : > { %v1333_v12 = vadd.f32 %v8585_v11, %v1326_v10  ;;  %v7238_v13 = vpop.f32.mrb[13].mxu1 }
 0x682   : > { %v1329_v14 = vpop.f32.mrb[14].mxu1  ;;  %v8066_v13 = vld [vmem:[#allocation4 + $0x8] sm:$0xff]  }
 0x683   : > { %v9082_v15 = vadd.f32 %v1338_v9, %v1333_v12  ;;  %v1334_v17 = vadd.f32 %v8586_v16, %v1329_v14  ;;  %v7239_v18 = vpop.f32.mrb[15].mxu1  ;;  %v8065_v12 = vld [vmem:[#allocation4] sm:$0xff]   ;;  %v8070_v16 = vld [vmem:[#allocation4 + $0x28] sm:$0xff]  }
 0x684   : > { %7261 = vmatpush3.bf16.msra.mxu1 %v8065_v12  ;;  %v8069_v14 = vld [vmem:[#allocation4 + $0x20] sm:$0xff]   ;;  %v8072_v18 = vld [vmem:[#allocation4 + $0x38] sm:$0xff]  }
 0x685   : > { %v1340_v19 = vadd.f32 %v1338_v9, %v1334_v17  ;;  %v1341_v20 = vmul.f32 %v8907_v3, %v9082_v15  ;;  %7262 = vmatprep.subr.bf16.mxu1 %v8712_v1  ;;  %v8071_v17 = vld [vmem:[#allocation4 + $0x30] sm:$0xff]   ;;  %v8076_v12 = vld [vmem:[#allocation2 + $0x108] ss:$16 sps:$4 sm:$0xff]  }
 0x687   : > { %1343 = vadd.xlane.f32.xlu1 %v1341_v20  ;;  %v1342_v21 = vmul.f32 %v8907_v3, %v1340_v19  ;;  %v9146_v19 = vld [vmem:[%s10019_s2 + $0x4] sm:$0xf] }
 0x688   : > { %7263 = vmatpush3.bf16.msra.mxu1 %v8066_v13  ;;  %v8080_v13 = vld [vmem:[#allocation2 + $0x124] ss:$16 sps:$4 sm:$0xff]  }
 0x689   : > { %v1345_v22 = vsel %vm521_vm1, %v1342_v21, 0.0  ;;  %7264 = vmatprep.subr.bf16.mxu1 %v8712_v1 }
 0x68a   : > { %1346 = vadd.xlane.f32.xlu0 %v1345_v22  ;;  %v484_v22 = vld [vmem:[%s10024_s7 + $0x8] sm:$0x3] }
 0x68b   : > { %v1401_v23 = vrot.slane %v484_v22, %v8949_v52 }
 0x68c   : > { %7265 = vmatpush3.bf16.msra.mxu1 %v8067_v51  ;;  %v8078_v51 = vld [vmem:[#allocation2 + $0x120] ss:$16 sps:$4 sm:$0xff]  }
 0x68d   : > { %7266 = vmatprep.subr.bf16.mxu1 %v8712_v1 }
 0x690   : > { %7267 = vmatpush3.bf16.msra.mxu1 %v8068_v53  ;;  %v8085_v53 = vld [vmem:[#allocation2 + $0x144] ss:$16 sps:$4 sm:$0xff]  }
 0x691   : > { %7268 = vmatprep.subr.bf16.mxu1 %v8712_v1 }
 0x694   : > { %7269 = vmatpush3.bf16.msra.mxu1 %v8069_v14  ;;  %v8083_v14 = vld [vmem:[#allocation2 + $0x140] ss:$16 sps:$4 sm:$0xff]  }
 0x695   : > { %7270 = vmatprep.subr.bf16.mxu1 %v8712_v1 }
 0x698   : > { %7271 = vmatpush3.bf16.msra.mxu1 %v8070_v16 }
 0x699   : > { %7272 = vmatprep.subr.bf16.mxu1 %v8712_v1 }
 0x69c   : > { %7273 = vmatpush3.bf16.msra.mxu1 %v8071_v17 }
 0x69d   : > { %7274 = vmatprep.subr.bf16.mxu1 %v8712_v1 }
 0x6a0   : > { %7275 = vmatpush3.bf16.msra.mxu1 %v8072_v18 }
 0x6a1   : > { %7280 = vmatprep.subr.bf16.mxu1 %v8712_v1 }
 0x714   : > { %v1344_v24 = vpop.xlane.xlu1 %1343 }
 0x715   : > { %v1348_v25 = vmul.f32 0.03125, %v1344_v24 }
 0x717   : > { %v1350_v27 = vsub.f32 %v1341_v20, %v1348_v25  ;;  %v1347_v28 = vpop.xlane.xlu0 %1346  ;;  %v1657_v20 = vmul.f32 %v9146_v19, %v8907_v3 }
 0x718   : > { %v1349_v29 = vmul.f32 0.03125, %v1347_v28 }
 0x719   : > { %v1352_v32 = vmul.f32 %v8907_v3, %v1350_v27 }
 0x71a   : > { %v1351_v33 = vsub.f32 %v1342_v21, %v1349_v29  ;;  %v1660_v21 = vsel %vm521_vm1, %v1657_v20, 0.0 }
 0x71b   : > { %v1354_v34 = vmul.f32 %v1352_v32, %v1352_v32 }
 0x71c   : > { %v1353_v35 = vmul.f32 %v8907_v3, %v1351_v33 }
 0x71d   : > { %1356 = vadd.xlane.f32.xlu0 %v1354_v34 }
 0x71e   : > { %v1355_v37 = vmul.f32 %v1353_v35, %v1353_v35 }
 0x720   : > { %v1358_v38 = vsel %vm521_vm1, %v1355_v37, 0.0 }
 0x721   : > { %1359 = vadd.xlane.f32.xlu1 %v1358_v38  ;;  %1661 = vadd.xlane.f32.xlu0 %v1660_v21 }
 0x7aa   : > { %v1357_v47 = vpop.xlane.xlu0 %1356 }
 0x7ab   : > { %v1361_v48 = vmul.f32 0.03125, %v1357_v47 }
 0x7ad   : > { %v1363_v49 = vadd.f32 1e-05, %v1361_v48 }
 0x7ae   : > { %v1360_v50 = vpop.xlane.xlu1 %1359  ;;  %v1662_v48 = vpop.xlane.xlu0 %1661 }
 0x7af   : > { %8413 = vrsqrt.f32 %v1363_v49  ;;  %v1362_v54 = vmul.f32 0.03125, %v1360_v50  ;;  %v1664_v49 = vmul.f32 0.03125, %v1662_v48 }
 0x7b1   : > { %v1364_v55 = vadd.f32 1e-05, %v1362_v54  ;;  %v1666_v50 = vsub.f32 %v1657_v20, %v1664_v49  ;;  %v1616_v54 = vrot.slane %v484_v22, %v8960_v57  ;;  %v8086_v22 = vld [vmem:[#allocation2 + $0x148] ss:$16 sps:$4 sm:$0xff]  }
 0x7b3   : > { %8415 = vrsqrt.f32 %v1364_v55 }
 0x7b9   : > { %v8414_v58 = vpop.eup %8413 }
 0x7ba   : > { %v1367_v59 = vmul.f32 %v8414_v58, %v1352_v32  ;;  %v9160_v58 = vmul.f32 %v8907_v3, %v1666_v50  ;;  %v9183_v50 = vld [vmem:[%s10024_s7 + $0x10] sm:$0xff] }
 0x7bc   : > { %v1373_v63 = vmul.f32 %v1372_v60, %v1367_v59 }
 0x7bd   : > { %v8416_v26 = vpop.eup %8415 }
 0x7be   : > { %v1368_v62 = vmul.f32 %v8416_v26, %v1353_v35  ;;  %v1379_v9 = vadd.f32 %v1378_v0, %v1373_v63 }
 0x7c0   : > { %v1374_v4 = vmul.f32 %v1372_v60, %v1368_v62 }
 0x7c2   : > { %v1380_v10 = vadd.f32 %v1378_v0, %v1374_v4  ;;  %v1670_v0 = vmul.f32 %v9160_v58, %v9160_v58 }
 0x7c4   : > { %v1381_v11 = vpack.c.bf16 %v1380_v10, %v1379_v9  ;;  %v1673_v9 = vsel %vm521_vm1, %v1670_v0, 0.0  ;;  %v8073_v10 = vld [vmem:[#allocation2 + $0x100] ss:$16 sps:$4 sm:$0xff]  }
 0x7c6   : > { %7257 = vmatmul.mubr.bf16.vlgmr.msra.gmra.mrb[16].mxu0 %v1381_v11  ;;  %v8075_v11 = vld [vmem:[#allocation2 + $0x104] ss:$16 sps:$4 sm:$0xff]  }
 0x7c7   : > { %1857 = vmatprep.mubr.bf16.mxu0 %v8713_v39  ;;  %1825 = vmatprep.subr.bf16.mxu0 %v8075_v11  ;;  %v1926_v11 = vrot.slane %v9183_v50, %v8973_v6 }
 0x7c8   : > { %1826 = vmatpush1.bf16.msra.mxu0 %v8073_v10 }
 0x7c9   : > { %1827 = vmatprep.subr.bf16.mxu0 %v8080_v13 }
 0x7cc   : > { %1828 = vmatpush1.bf16.msra.mxu0 %v8078_v51 }
 0x7cd   : > { %1829 = vmatprep.subr.bf16.mxu0 %v8085_v53 }
 0x7d0   : > { %1830 = vmatpush1.bf16.msra.mxu0 %v8083_v14 }
 0x899   : > { %v1484_v24 = vpop.f32.mrb[16].mxu0 }
 0x89a   : > { %v1485_v25 = vadd.f32 %v1484_v24, %v1401_v23  ;;  %v7258_v27 = vpop.f32.mrb[17].mxu0  ;;  %v8088_v24 = vld [vmem:[#allocation2 + $0x160] ss:$16 sps:$4 sm:$0xff]  }
 0x89b   : > { %v1487_v28 = vpop.f32.mrb[18].mxu0  ;;  %v8095_v27 = vld [vmem:[#allocation2 + $0x184] ss:$16 sps:$4 sm:$0xff]  }
 0x89c   : > { %v6523_v29 = vmul.f32 -1.702, %v1485_v25  ;;  %v1488_v32 = vadd.f32 %v1487_v28, %v1401_v23  ;;  %v7259_v33 = vpop.f32.mrb[19].mxu0  ;;  %v8090_v23 = vld [vmem:[#allocation2 + $0x164] ss:$16 sps:$4 sm:$0xff]  }
 0x89d   : > { %1831 = vmatprep.subr.bf16.mxu0 %v8090_v23  ;;  %v8093_v28 = vld [vmem:[#allocation2 + $0x180] ss:$16 sps:$4 sm:$0xff]  }
 0x89e   : > { %v1495_v34 = vmul.f32 1.442695, %v6523_v29  ;;  %v6524_v35 = vmul.f32 -1.702, %v1488_v32  ;;  %1832 = vmatpush1.bf16.msra.mxu0 %v8088_v24  ;;  %v8096_v29 = vld [vmem:[#allocation2 + $0x188] ss:$16 sps:$4 sm:$0xff]  }
 0x89f   : > { %1833 = vmatprep.subr.bf16.mxu0 %v8095_v27  ;;  %v8098_v33 = vld [vmem:[#allocation2 + $0x1a0] ss:$16 sps:$4 sm:$0xff]  }
 0x8a0   : > { %8417 = vpow2.f32 %v1495_v34  ;;  %v1497_v37 = vmul.f32 1.442695, %v6524_v35  ;;  %v8101_v34 = vld [vmem:[#allocation2 + $0x1a8] ss:$16 sps:$4 sm:$0xff]   ;;  %v8103_v35 = vld [vmem:[#allocation2 + $0x1c0] ss:$16 sps:$4 sm:$0xff]  }
 0x8a2   : > { %8419 = vpow2.f32 %v1497_v37  ;;  %1834 = vmatpush1.bf16.msra.mxu0 %v8093_v28  ;;  %v8105_v37 = vld [vmem:[#allocation2 + $0x1c4] ss:$16 sps:$4 sm:$0xff]  }
 0x8aa   : > { %v8418_v38 = vpop.eup %8417 }
 0x8ab   : > { %v1499_v40 = vadd.f32 1.0, %v8418_v38  ;;  %v8106_v38 = vld [vmem:[#allocation2 + $0x1c8] ss:$16 sps:$4 sm:$0xff]  }
 0x8ac   : > { %v8420_v41 = vpop.eup %8419 }
 0x8ad   : > { %8421 = vrcp.f32 %v1499_v40  ;;  %v1500_v42 = vadd.f32 1.0, %v8420_v41  ;;  %v8110_v40 = vld [vmem:[#allocation2 + $0x1e4] ss:$16 sps:$4 sm:$0xff]   ;;  %v8108_v41 = vld [vmem:[#allocation2 + $0x1e0] ss:$16 sps:$4 sm:$0xff]  }
 0x8af   : > { %8423 = vrcp.f32 %v1500_v42  ;;  %v8111_v42 = vld [vmem:[#allocation2 + $0x1e8] ss:$16 sps:$4 sm:$0xff]  }
 0x8b7   : > { %v8422_v43 = vpop.eup %8421 }
 0x8b8   : > { %v1505_v45 = vmul.f32 %v8422_v43, %v1485_v25  ;;  %v8091_v25 = vld [vmem:[#allocation2 + $0x168] ss:$16 sps:$4 sm:$0xff]  }
 0x8b9   : > { %v8424_v44 = vpop.eup %8423 }
 0x8ba   : > { %v1506_v46 = vmul.f32 %v8424_v44, %v1488_v32  ;;  %v8100_v32 = vld [vmem:[#allocation2 + $0x1a4] ss:$16 sps:$4 sm:$0xff]  }
 0x8bb   : > { %1835 = vmatprep.subr.bf16.mxu0 %v8100_v32 }
 0x8bc   : > { %v1507_v47 = vpack.c.bf16 %v1506_v46, %v1505_v45  ;;  %1836 = vmatpush1.bf16.msra.mxu0 %v8098_v33 }
 0x8bd   : > { %1837 = vmatprep.subr.bf16.mxu0 %v8105_v37 }
 0x8be   : > { %7277 = vmatmul.mubr.bf16.vlgmr.msra.gmra.mrb[16].mxu1 %v1507_v47 }
 0x8bf   : > { %7296 = vmatprep.mubr.msk.bf16.mxu1 %vm8714_vm2, %v8712_v1  ;;  %7281 = vmatpush3.bf16.msra.mxu1 %v8076_v12 }
 0x8c0   : > { %7282 = vmatprep.subr.bf16.mxu1 %v8712_v1  ;;  %1838 = vmatpush1.bf16.msra.mxu0 %v8103_v35 }
 0x8c1   : > { %1839 = vmatprep.subr.bf16.mxu0 %v8110_v40 }
 0x8c4   : > { %1840 = vmatpush1.bf16.msra.mxu0 %v8108_v41 }
 0x8c5   : > { %7300 = vmatprep.subr.bf16.mxu0 %v8712_v1 }
 0x991   : > { %v1606_v55 = vpop.f32.mrb[16].mxu1 }
 0x992   : > { %v1612_v59 = vadd.f32 %v1606_v55, %v9082_v15  ;;  %v7278_v60 = vpop.f32.mrb[17].mxu1  ;;  %v8081_v15 = vld [vmem:[#allocation2 + $0x128] ss:$16 sps:$4 sm:$0xff]   ;;  %v1687_v55 = vrot.slane %v9183_v50, %v8949_v52 }
 0x993   : > { %v1609_v26 = vpop.f32.mrb[18].mxu1  ;;  %7283 = vmatpush3.bf16.msra.mxu1 %v8081_v15  ;;  %v1919_v15 = vrot.slane %v9183_v50, %v8976_v7 }
 0x994   : > { %v9163_v62 = vadd.f32 %v1616_v54, %v1612_v59  ;;  %v7279_v63 = vpop.f32.mrb[19].mxu1  ;;  %7284 = vmatprep.subr.bf16.mxu1 %v8712_v1 }
 0x995   : > { %v1693_v63 = vrot.slane %v9183_v50, %v8960_v57 }
 0x996   : > { %v1656_v4 = vmul.f32 %v8907_v3, %v9163_v62 }
 0x997   : > { %7285 = vmatpush3.bf16.msra.mxu1 %v8086_v22 }
 0x998   : > { %1658 = vadd.xlane.f32.xlu1 %v1656_v4  ;;  %7286 = vmatprep.subr.bf16.mxu1 %v8712_v1 }
 0x99b   : > { %7287 = vmatpush3.bf16.msra.mxu1 %v8091_v25 }
 0x99c   : > { %1674 = vadd.xlane.f32.xlu1 %v1673_v9  ;;  %7288 = vmatprep.subr.bf16.mxu1 %v8712_v1 }
 0x99f   : > { %7289 = vmatpush3.bf16.msra.mxu1 %v8096_v29 }
 0x9a0   : > { %7290 = vmatprep.subr.bf16.mxu1 %v8712_v1 }
 0x9a3   : > { %7291 = vmatpush3.bf16.msra.mxu1 %v8101_v34 }
 0x9a4   : > { %7292 = vmatprep.subr.bf16.mxu1 %v8712_v1 }
 0x9a7   : > { %7293 = vmatpush3.bf16.msra.mxu1 %v8106_v38 }
 0x9a8   : > { %7294 = vmatprep.subr.bf16.mxu1 %v8712_v1 }
 0x9ab   : > { %7295 = vmatpush3.bf16.msra.mxu1 %v8111_v42 }
 0x9ac   : > { %7324 = vmatprep.subr.bf16.mxu1 %v8712_v1 }
 0xa25   : > { %v1659_v16 = vpop.xlane.xlu1 %1658 }
 0xa26   : > { %v1663_v17 = vmul.f32 0.03125, %v1659_v16 }
 0xa28   : > { %v1665_v18 = vsub.f32 %v1656_v4, %v1663_v17 }
 0xa29   : > { %v1675_v43 = vpop.xlane.xlu1 %1674 }
 0xa2a   : > { %v1667_v20 = vmul.f32 %v8907_v3, %v1665_v18  ;;  %v1677_v44 = vmul.f32 0.03125, %v1675_v43 }
 0xa2c   : > { %v1669_v21 = vmul.f32 %v1667_v20, %v1667_v20  ;;  %v1679_v45 = vadd.f32 1e-05, %v1677_v44 }
 0xa2e   : > { %1671 = vadd.xlane.f32.xlu0 %v1669_v21  ;;  %8425 = vrsqrt.f32 %v1679_v45 }
 0xa38   : > { %v8426_v49 = vpop.eup %8425 }
 0xa39   : > { %v1683_v54 = vmul.f32 %v8426_v49, %v9160_v58  ;;  %v1912_v58 = vrot.slane %v9183_v50, %v8970_v5 }
 0xa3b   : > { %v1689_v26 = vmul.f32 %v1687_v55, %v1683_v54 }
 0xa3d   : > { %v1695_v9 = vadd.f32 %v1693_v63, %v1689_v26 }
 0xabb   : > { %v1672_v46 = vpop.xlane.xlu0 %1671 }
 0xabc   : > { %v1676_v47 = vmul.f32 0.03125, %v1672_v46 }
 0xabe   : > { %v1678_v48 = vadd.f32 1e-05, %v1676_v47 }
 0xac0   : > { %8427 = vrsqrt.f32 %v1678_v48 }
 0xaca   : > { %v8428_v59 = vpop.eup %8427 }
 0xacb   : > { %v1682_v60 = vmul.f32 %v8428_v59, %v1667_v20 }
 0xacd   : > { %v1688_v0 = vmul.f32 %v1687_v55, %v1682_v60 }
 0xacf   : > { %v1694_v4 = vadd.f32 %v1693_v63, %v1688_v0 }
 0xad1   : > { %v1696_v10 = vpack.c.bf16 %v1695_v9, %v1694_v4 }
 0xad3   : > { %1858 = vmatmul.mubr.bf16.vlgmr.msra.gmra.mrb[20].mxu0 %v1696_v10  ;;  %7297 = vmatmul.mubr.bf16.vlgmr.msra.gmra.mrb[20].mxu1 %v1696_v10 }
 0xad4   : > { %7302 = vmatprep.mubr.msk.bf16.mxu0 %vm8714_vm2, %v8712_v1  ;;  %7326 = vmatprep.mubr.msk.bf16.mxu1 %vm8714_vm2, %v8712_v1 }
 0xba6   : > { %v1859_v12 = vpop.f32.mrb[20].mxu0  ;;  %v1902_v13 = vpop.f32.mrb[20].mxu1 }
 0xba7   : > { %v1861_v51 = vpop.f32.mrb[21].mxu0  ;;  %v7298_v53 = vpop.f32.mrb[21].mxu1  ;;  %v1913_v17 = vadd.f32 %v1912_v58, %v1859_v12  ;;  %v1927_v18 = vadd.f32 %v1926_v11, %v1902_v13 }
 0xba8   : > { %v1863_v14 = vpop.f32.mrb[22].mxu0  ;;  %v1905_v16 = vpop.f32.mrb[22].mxu1  ;;  %v1920_v24 = vadd.f32 %v1919_v15, %v1861_v51 }
 0xba9   : > { %v1914_v20 = vadd.f32 %v1912_v58, %v1863_v14  ;;  %v1928_v21 = vadd.f32 %v1926_v11, %v1905_v16  ;;  %v1865_v22 = vpop.f32.mrb[23].mxu0  ;;  %v7299_v23 = vpop.f32.mrb[23].mxu1 }
 0xbaa   : > { %v1921_v25 = vadd.f32 %v1919_v15, %v1865_v22 }
 0xbab   : > { %v1915_v27 = vpack.c.bf16 %v1914_v20, %v1913_v17  ;;  %v9200_v28 = vpack.c.bf16 %v1928_v21, %v1927_v18 }
 0xbac   : > { %v1922_v29 = vpack.c.bf16 %v1921_v25, %v1920_v24 }
 0xbad   : > { %v1930_v32 = vmul.bf16 %v1915_v27, %v8994_v30  ;;  %v2160_v33 = vmul.bf16 %v1915_v27, %v8997_v31  ;;  %v2065_v34 = vmul.bf16 %v9200_v28, %v9006_v36  ;;  %v1998_v35 = vmul.bf16 %v1915_v27, %v9006_v36 }
 0xbae   : > { %7301 = vmatpush3.bf16.xpose.msra.mxu0 %v1922_v29  ;;  %7325 = vmatpush3.bf16.xpose.msra.mxu1 %v1922_v29  ;;  %v2277_v37 = vmul.bf16 %v1915_v27, %v9012_v2 }
 0xbaf   : > { %7306 = vmatprep.subr.bf16.mxu0 %v8712_v1  ;;  %7336 = vmatprep.subr.bf16.mxu1 %v8712_v1  ;;  %v2070_v38 = vsel %vm933_vm12, %v2065_v34, 0 }
 0xbb5   : > { %7303 = vmatmul.mubr.bf16.vlgmr.msra.gmra.mrb[24].mxu0 %v1930_v32  ;;  %7327 = vmatmul.mubr.bf16.vlgmr.msra.gmra.mrb[24].mxu1 %v2160_v33 }
 0xbb6   : > { %7307 = vmatpush3.bf16.xpose.msra.mxu0 %v1922_v29  ;;  %7337 = vmatpush3.bf16.xpose.msra.mxu1 %v1922_v29 }
 0xbb7   : > { %7308 = vmatprep.mubr.msk.bf16.mxu0 %vm8714_vm2, %v8712_v1  ;;  %7338 = vmatprep.mubr.msk.bf16.mxu1 %vm8714_vm2, %v8712_v1 }
 0xbb8   : > { %7312 = vmatprep.subr.bf16.mxu0 %v8712_v1  ;;  %7348 = vmatprep.subr.bf16.mxu1 %v8712_v1 }
 0xbbd   : > { %7309 = vmatmul.mubr.bf16.vlgmr.msra.gmra.mrb[28].mxu0 %v1998_v35  ;;  %7339 = vmatmul.mubr.bf16.vlgmr.msra.gmra.mrb[28].mxu1 %v2277_v37 }
 0xbbe   : > { %7313 = vmatpush3.bf16.msra.mxu0 %v2070_v38  ;;  %7314 = vmatprep.mubr.msk.bf16.mxu0 %vm8714_vm2, %v8712_v1 }
 0xbbf   : > { %7318 = vmatprep.subr.bf16.mxu0 %v8712_v1  ;;  %7364 = vmatprep.mubr.msk.bf16.mxu1 %vm8714_vm2, %v8712_v1 }
 0xc88   : > { %v1965_v40 = vpop.f32.mrb[24].mxu0  ;;  %v2195_v41 = vpop.f32.mrb[24].mxu1 }
 0xc89   : > { %v7304_v42 = vpop.f32.mrb[25].mxu0  ;;  %v7328_v43 = vpop.f32.mrb[25].mxu1  ;;  %v1972_v9 = vmul.f32 0.35355338, %v1965_v40  ;;  %v2202_v12 = vmul.f32 0.35355338, %v2195_v41 }
 0xc8a   : > { %v1968_v44 = vpop.f32.mrb[26].mxu0  ;;  %v2198_v45 = vpop.f32.mrb[26].mxu1 }
 0xc8b   : > { %v7305_v46 = vpop.f32.mrb[27].mxu0  ;;  %v7329_v47 = vpop.f32.mrb[27].mxu1  ;;  %v1973_v58 = vmul.f32 0.35355338, %v1968_v44  ;;  %v1974_v13 = vsel %vm836_vm13, %v1972_v9, -inf  ;;  %v2204_v14 = vsel %vm836_vm13, %v2202_v12, -inf }
 0xc8c   : > { %v2203_v15 = vmul.f32 0.35355338, %v2198_v45 }
 0xc8d   : > { %v1977_v51 = vsel %vm840_vm14, %v1973_v58, -inf }
 0xc8e   : > { %v2207_v17 = vsel %vm840_vm14, %v2203_v15, -inf }
 0xc90   : > { %v2033_v48 = vpop.f32.mrb[28].mxu0  ;;  %v2312_v49 = vpop.f32.mrb[28].mxu1 }
 0xc91   : > { %v2040_v54 = vmul.f32 0.35355338, %v2033_v48  ;;  %v7310_v55 = vpop.f32.mrb[29].mxu0  ;;  %v7340_v59 = vpop.f32.mrb[29].mxu1  ;;  %v2319_v53 = vmul.f32 0.35355338, %v2312_v49 }
 0xc92   : > { %v2036_v60 = vpop.f32.mrb[30].mxu0  ;;  %v2315_v26 = vpop.f32.mrb[30].mxu1 }
 0xc93   : > { %v2041_v63 = vmul.f32 0.35355338, %v2036_v60  ;;  %v7311_v0 = vpop.f32.mrb[31].mxu0  ;;  %v7341_v4 = vpop.f32.mrb[31].mxu1  ;;  %v2042_v10 = vsel %vm836_vm13, %v2040_v54, -inf  ;;  %v2321_v18 = vsel %vm836_vm13, %v2319_v53, -inf }
 0xc94   : > { %2043 = vmax.xlane.f32.xlu0 %v2042_v10  ;;  %v2320_v16 = vmul.f32 0.35355338, %v2315_v26 }
 0xc95   : > { %v2045_v11 = vsel %vm840_vm14, %v2041_v63, -inf }
 0xc96   : > { %2046 = vmax.xlane.f32.xlu1 %v2045_v11  ;;  %v2324_v20 = vsel %vm840_vm14, %v2320_v16, -inf }
 0xc98   : > { %1975 = vmax.xlane.f32.xlu0 %v1974_v13 }
 0xc9a   : > { %1978 = vmax.xlane.f32.xlu1 %v1977_v51 }
 0xc9c   : > { %2205 = vmax.xlane.f32.xlu0 %v2204_v14  ;;  %v8113_v14 = vld [vmem:[#allocation2 + $0x10c] ss:$16 sps:$4 sm:$0xff]  }
 0xc9d   : > { %7349 = vmatpush3.bf16.msra.mxu1 %v8113_v14 }
 0xc9e   : > { %2208 = vmax.xlane.f32.xlu1 %v2207_v17  ;;  %7350 = vmatprep.subr.bf16.mxu1 %v8712_v1  ;;  %v8115_v17 = vld [vmem:[#allocation2 + $0x14c] ss:$16 sps:$4 sm:$0xff]  }
 0xca0   : > { %2322 = vmax.xlane.f32.xlu0 %v2321_v18  ;;  %v8116_v18 = vld [vmem:[#allocation2 + $0x16c] ss:$16 sps:$4 sm:$0xff]  }
 0xca2   : > { %2325 = vmax.xlane.f32.xlu1 %v2324_v20  ;;  %v8117_v20 = vld [vmem:[#allocation2 + $0x18c] ss:$16 sps:$4 sm:$0xff]  }
 0xd21   : > { %v2044_v21 = vpop.xlane.xlu0 %2043 }
 0xd22   : > { %v2048_v22 = vsub.f32 %v2040_v54, %v2044_v21  ;;  %v8118_v21 = vld [vmem:[#allocation2 + $0x1ac] ss:$16 sps:$4 sm:$0xff]  }
 0xd23   : > { %v2047_v23 = vpop.xlane.xlu1 %2046 }
 0xd24   : > { %v2049_v24 = vsub.f32 %v2041_v63, %v2047_v23  ;;  %v2050_v25 = vmul.f32 1.442695, %v2048_v22  ;;  %v8119_v22 = vld [vmem:[#allocation2 + $0x1cc] ss:$16 sps:$4 sm:$0xff]  }
 0xd25   : > { %v1976_v29 = vpop.xlane.xlu0 %1975 }
 0xd26   : > { %v2052_v27 = vmul.f32 1.442695, %v2049_v24  ;;  %8429 = vpow2.f32 %v2050_v25  ;;  %v1980_v32 = vsub.f32 %v1972_v9, %v1976_v29 }
 0xd27   : > { %v1979_v33 = vpop.xlane.xlu1 %1978 }
 0xd28   : > { %8431 = vpow2.f32 %v2052_v27  ;;  %v1981_v34 = vsub.f32 %v1973_v58, %v1979_v33  ;;  %v1982_v35 = vmul.f32 1.442695, %v1980_v32 }
 0xd29   : > { %v2206_v38 = vpop.xlane.xlu0 %2205 }
 0xd2a   : > { %v1984_v37 = vmul.f32 1.442695, %v1981_v34  ;;  %8433 = vpow2.f32 %v1982_v35  ;;  %v2210_v40 = vsub.f32 %v2202_v12, %v2206_v38  ;;  %v1997_v35 = vmul.bf16 %v9200_v28, %v8994_v30 }
 0xd2b   : > { %v2209_v41 = vpop.xlane.xlu1 %2208 }
 0xd2c   : > { %8435 = vpow2.f32 %v1984_v37  ;;  %v2211_v42 = vsub.f32 %v2203_v15, %v2209_v41  ;;  %v2212_v43 = vmul.f32 1.442695, %v2210_v40  ;;  %v2117_v38 = vsel %vm933_vm12, %v1997_v35, 0 }
 0xd2d   : > { %v2323_v45 = vpop.xlane.xlu0 %2322 }
 0xd2e   : > { %v2214_v44 = vmul.f32 1.442695, %v2211_v42  ;;  %8437 = vpow2.f32 %v2212_v43  ;;  %v2327_v46 = vsub.f32 %v2319_v53, %v2323_v45 }
 0xd2f   : > { %v2326_v47 = vpop.xlane.xlu1 %2325 }
 0xd30   : > { %8439 = vpow2.f32 %v2214_v44  ;;  %v2328_v48 = vsub.f32 %v2320_v16, %v2326_v47  ;;  %v8430_v49 = vpop.eup %8429  ;;  %v2329_v54 = vmul.f32 1.442695, %v2327_v46  ;;  %v8114_v16 = vld [vmem:[#allocation2 + $0x12c] ss:$16 sps:$4 sm:$0xff]   ;;  %v2227_v46 = vmul.bf16 %v9200_v28, %v8997_v31 }
 0xd31   : > { %v2054_v60 = vsel %vm836_vm13, %v8430_v49, 0.0  ;;  %7351 = vmatpush3.bf16.msra.mxu1 %v8114_v16 }
 0xd32   : > { %v8432_v55 = vpop.eup %8431  ;;  %v2331_v59 = vmul.f32 1.442695, %v2328_v48  ;;  %8441 = vpow2.f32 %v2329_v54  ;;  %2055 = vadd.xlane.f32.xlu0 %v2054_v60  ;;  %7352 = vmatprep.subr.bf16.mxu1 %v8712_v1  ;;  %v2232_v48 = vsel %vm933_vm12, %v2227_v46, 0  ;;  %v8123_v46 = vld [vmem:[%s10022_s5 + $0x50] sm:$0xff]  }
 0xd33   : > { %v2057_v26 = vsel %vm840_vm14, %v8432_v55, 0.0 }
 0xd34   : > { %8443 = vpow2.f32 %v2331_v59  ;;  %2058 = vadd.xlane.f32.xlu1 %v2057_v26  ;;  %v9232_v63 = vpop.eup %8433 }
 0xd35   : > { %v1986_v4 = vsel %vm836_vm13, %v9232_v63, 0.0  ;;  %7353 = vmatpush3.bf16.msra.mxu1 %v8115_v17 }
 0xd36   : > { %v8436_v0 = vpop.eup %8435  ;;  %1987 = vadd.xlane.f32.xlu0 %v1986_v4  ;;  %7354 = vmatprep.subr.bf16.mxu1 %v8712_v1 }
 0xd37   : > { %v1989_v9 = vsel %vm840_vm14, %v8436_v0, 0.0 }
 0xd38   : > { %1990 = vadd.xlane.f32.xlu1 %v1989_v9  ;;  %v9237_v10 = vpop.eup %8437 }
 0xd39   : > { %v2216_v11 = vsel %vm836_vm13, %v9237_v10, 0.0  ;;  %7355 = vmatpush3.bf16.msra.mxu1 %v8116_v18 }
 0xd3a   : > { %v9239_v58 = vpop.eup %8439  ;;  %2217 = vadd.xlane.f32.xlu0 %v2216_v11  ;;  %7356 = vmatprep.subr.bf16.mxu1 %v8712_v1 }
 0xd3b   : > { %v2219_v12 = vsel %vm840_vm14, %v9239_v58, 0.0 }
 0xd3c   : > { %2220 = vadd.xlane.f32.xlu1 %v2219_v12  ;;  %v9245_v13 = vpop.eup %8441 }
 0xd3d   : > { %v2333_v51 = vsel %vm836_vm13, %v9245_v13, 0.0  ;;  %7357 = vmatpush3.bf16.msra.mxu1 %v8117_v20 }
 0xd3e   : > { %v9247_v15 = vpop.eup %8443  ;;  %2334 = vadd.xlane.f32.xlu0 %v2333_v51  ;;  %7358 = vmatprep.subr.bf16.mxu1 %v8712_v1 }
 0xd3f   : > { %v2336_v53 = vsel %vm840_vm14, %v9247_v15, 0.0 }
 0xd40   : > { %2337 = vadd.xlane.f32.xlu1 %v2336_v53 }
 0xd41   : > { %7359 = vmatpush3.bf16.msra.mxu1 %v8118_v21 }
 0xd42   : > { %7360 = vmatprep.subr.bf16.mxu1 %v8712_v1 }
 0xd45   : > { %7361 = vmatpush3.bf16.msra.mxu1 %v8119_v22 }
 0xd46   : > { %7362 = vmatprep.subr.bf16.mxu1 %v8712_v1 }
 0xdbf   : > { %v2056_v23 = vpop.xlane.xlu0 %2055 }
 0xdc0   : > { %8445 = vrcp.f32 %v2056_v23 }
 0xdc1   : > { %v2059_v24 = vpop.xlane.xlu1 %2058 }
 0xdc2   : > { %8447 = vrcp.f32 %v2059_v24 }
 0xdc3   : > { %v1988_v27 = vpop.xlane.xlu0 %1987 }
 0xdc5   : > { %v1991_v25 = vpop.xlane.xlu1 %1990 }
 0xdc6   : > { %8449 = vrcp.f32 %v1991_v25 }
 0xdc7   : > { %8451 = vrcp.f32 %v1988_v27  ;;  %v2218_v42 = vpop.xlane.xlu0 %2217 }
 0xdc9   : > { %v2221_v40 = vpop.xlane.xlu1 %2220 }
 0xdca   : > { %v8446_v29 = vpop.eup %8445  ;;  %8453 = vrcp.f32 %v2221_v40 }
 0xdcb   : > { %v2062_v33 = vmul.f32 %v8446_v29, %v8430_v49  ;;  %8455 = vrcp.f32 %v2218_v42 }
 0xdcc   : > { %v8448_v32 = vpop.eup %8447 }
 0xdcd   : > { %v2063_v34 = vmul.f32 %v8448_v32, %v8432_v55  ;;  %v2338_v49 = vpop.xlane.xlu1 %2337  ;;  %v2335_v55 = vpop.xlane.xlu0 %2334 }
 0xdce   : > { %8457 = vrcp.f32 %v2338_v49  ;;  %v8126_v49 = vld [vmem:[%s10022_s5 + $0x68] sm:$0xff]  }
 0xdcf   : > { %v2064_v37 = vpack.c.bf16 %v2063_v34, %v2062_v33  ;;  %8459 = vrcp.f32 %v2335_v55  ;;  %v8128_v55 = vld [vmem:[%s10022_s5 + $0x78] sm:$0xff]  }
 0xdd0   : > { %v8450_v41 = vpop.eup %8449 }
 0xdd1   : > { %7315 = vmatmul.mubr.msk.bf16.vlgmr.msra.gmra.mrb[32].mxu0 %vm836_vm13, %v2064_v37  ;;  %v8452_v43 = vpop.eup %8451  ;;  %v1995_v44 = vmul.f32 %v8450_v41, %v8436_v0 }
 0xdd2   : > { %7319 = vmatpush3.bf16.msra.mxu0 %v2117_v38  ;;  %7320 = vmatprep.mubr.msk.bf16.mxu0 %vm8714_vm2, %v8712_v1  ;;  %v1994_v45 = vmul.f32 %v8452_v43, %v9232_v63  ;;  %v2344_v63 = vmul.bf16 %v9200_v28, %v9012_v2  ;;  %v8120_v28 = vld [vmem:[#allocation2 + $0x1ec] ss:$16 sps:$4 sm:$0xff]  }
 0xdd3   : > { %7330 = vmatprep.subr.bf16.mxu0 %v8712_v1  ;;  %7363 = vmatpush3.bf16.msra.mxu1 %v8120_v28 }
 0xdd4   : > { %v1996_v47 = vpack.c.bf16 %v1995_v44, %v1994_v45  ;;  %v8454_v54 = vpop.eup %8453  ;;  %v2349_v4 = vsel %vm933_vm12, %v2344_v63, 0  ;;  %7388 = vmatprep.subr.bf16.mxu1 %v8712_v1  ;;  %v8122_v45 = vld [vmem:[%s10022_s5 + $0x48] sm:$0xff]  }
 0xdd5   : > { %v8456_v59 = vpop.eup %8455  ;;  %v2225_v60 = vmul.f32 %v8454_v54, %v9239_v58  ;;  %v8127_v54 = vld [vmem:[%s10022_s5 + $0x70] sm:$0xff]  }
 0xdd6   : > { %v2224_v26 = vmul.f32 %v8456_v59, %v9237_v10 }
 0xdd8   : > { %v2226_v0 = vpack.c.bf16 %v2225_v60, %v2224_v26  ;;  %v8458_v9 = vpop.eup %8457 }
 0xdd9   : > { %v8460_v11 = vpop.eup %8459  ;;  %v2342_v58 = vmul.f32 %v8458_v9, %v9247_v15 }
 0xdda   : > { %v2341_v10 = vmul.f32 %v8460_v11, %v9245_v13  ;;  %v2473_v13 = vrot.slane %v9183_v50, %v9077_v8 }
 0xddc   : > { %v2343_v12 = vpack.c.bf16 %v2342_v58, %v2341_v10  ;;  %v2507_v58 = vrot.slane %v9183_v50, %v9126_v56 }
 0xddd   : > { %7321 = vmatmul.mubr.msk.bf16.vlgmr.msra.gmra.mrb[32].mxu0 %vm836_vm13, %v1996_v47  ;;  %v8124_v47 = vld [vmem:[%s10022_s5 + $0x58] sm:$0xff]  }
 0xdde   : > { %7331 = vmatpush3.bf16.msra.mxu0 %v2232_v48  ;;  %7332 = vmatprep.mubr.msk.bf16.mxu0 %vm8714_vm2, %v8712_v1  ;;  %v8125_v48 = vld [vmem:[%s10022_s5 + $0x60] sm:$0xff]  }
 0xddf   : > { %7342 = vmatprep.subr.bf16.mxu0 %v8712_v1 }
 0xde9   : > { %7333 = vmatmul.mubr.msk.bf16.vlgmr.msra.gmra.mrb[32].mxu0 %vm836_vm13, %v2226_v0 }
 0xdea   : > { %7343 = vmatpush3.bf16.msra.mxu0 %v2349_v4  ;;  %7344 = vmatprep.mubr.msk.bf16.mxu0 %vm8714_vm2, %v8712_v1 }
 0xdeb   : > { %7368 = vmatprep.subr.bf16.mxu0 %v8712_v1 }
 0xdf5   : > { %7345 = vmatmul.mubr.msk.bf16.vlgmr.msra.gmra.mrb[32].mxu0 %vm836_vm13, %v2343_v12 }
 0xdf6   : > { %7384 = vmatprep.mubr.msk.bf16.mxu0 %vm8714_vm2, %v8712_v1 }
 0xec8   : > { %v2385_v51 = vpop.f32.mrb[32].mxu0 }
 0xec9   : > { %v7346_v53 = vpop.f32.mrb[33].mxu0 }
 0xeca   : > { %v2388_v14 = vpop.f32.mrb[34].mxu0 }
 0xecb   : > { %v2394_v16 = vpack.c.bf16 %v2388_v14, %v2385_v51  ;;  %v7347_v17 = vpop.f32.mrb[35].mxu0  ;;  %v2513_v51 = vrot.slane %v9183_v50, %v9131_v61  ;;  %v8132_v50 = vld [vmem:[#allocation4 + $0x58] sm:$0xff]  }
 0xecd   : > { %7365 = vmatmul.mubr.bf16.vlgmr.msra.gmra.mrb[32].mxu1 %v2394_v16 }
 0xece   : > { %7404 = vmatprep.mubr.msk.bf16.mxu1 %vm8714_vm2, %v8712_v1 }
 0xfa0   : > { %v2461_v15 = vpop.f32.mrb[32].mxu1 }
 0xfa1   : > { %v2468_v18 = vadd.f32 %v2461_v15, %v9163_v62  ;;  %v7366_v20 = vpop.f32.mrb[33].mxu1  ;;  %v8121_v62 = vld [vmem:[%s10022_s5 + $0x40] sm:$0xff]   ;;  %v8130_v15 = vld [vmem:[#allocation4 + $0x48] sm:$0xff]  }
 0xfa2   : > { %v2464_v21 = vpop.f32.mrb[34].mxu1  ;;  %7369 = vmatpush3.bf16.msra.mxu0 %v8121_v62  ;;  %v8133_v20 = vld [vmem:[#allocation4 + $0x60] sm:$0xff]  }
 0xfa3   : > { %v9295_v22 = vadd.f32 %v2473_v13, %v2468_v18  ;;  %v2469_v23 = vadd.f32 %v9146_v19, %v2464_v21  ;;  %v7367_v24 = vpop.f32.mrb[35].mxu1  ;;  %7370 = vmatprep.subr.bf16.mxu0 %v8712_v1  ;;  %v8131_v18 = vld [vmem:[#allocation4 + $0x50] sm:$0xff]  }
 0xfa4   : > { %v8134_v21 = vld [vmem:[#allocation6] ss:$20 sps:$4 sm:$0xff]   ;;  %v8137_v24 = vld [vmem:[#allocation6 + $0x28] ss:$20 sps:$4 sm:$0xff]  }
 0xfa5   : > { %v2475_v25 = vadd.f32 %v2473_v13, %v2469_v23  ;;  %v2476_v27 = vmul.f32 %v8907_v3, %v9295_v22  ;;  %v8129_v13 = vld [vmem:[#allocation4 + $0x40] sm:$0xff]   ;;  %v8136_v23 = vld [vmem:[#allocation4 + $0x68] sm:$0xff]  }
 0xfa6   : > { %7371 = vmatpush3.bf16.msra.mxu0 %v8122_v45  ;;  %7389 = vmatpush3.bf16.msra.mxu1 %v8129_v13  ;;  %v8145_v62 = vld [vmem:[#allocation6 + $0xa0] ss:$20 sps:$4 sm:$0xff]   ;;  %v8173_v45 = vld [vmem:[#allocation6 + $0xf8] ss:$20 sps:$4 sm:$0xff]  }
 0xfa7   : > { %2478 = vadd.xlane.f32.xlu1 %v2476_v27  ;;  %v2477_v29 = vmul.f32 %v8907_v3, %v2475_v25  ;;  %7372 = vmatprep.subr.bf16.mxu0 %v8712_v1  ;;  %v8139_v25 = vld [vmem:[#allocation4 + $0x70] sm:$0xff]  }
 0xfa8   : > { %7390 = vmatprep.subr.bf16.mxu1 %v8712_v1  ;;  %v8176_v13 = vld [vmem:[#allocation6 + $0x54] ss:$20 sps:$4 sm:$0xff]  }
 0xfa9   : > { %v2480_v32 = vsel %vm521_vm1, %v2477_v29, 0.0 }
 0xfaa   : > { %2481 = vadd.xlane.f32.xlu0 %v2480_v32  ;;  %7373 = vmatpush3.bf16.msra.mxu0 %v8123_v46  ;;  %v8143_v32 = vld [vmem:[#allocation6 + $0x78] ss:$20 sps:$4 sm:$0xff]  }
 0xfab   : > { %7374 = vmatprep.subr.bf16.mxu0 %v8712_v1  ;;  %7391 = vmatpush3.bf16.msra.mxu1 %v8130_v15  ;;  %v9368_v46 = vld [vmem:[%s10024_s7 + $0x18] sm:$0x3]  ;;  %v8177_v15 = vld [vmem:[#allocation6 + $0x120] ss:$20 sps:$4 sm:$0xff]  }
 0xfac   : > { %7392 = vmatprep.subr.bf16.mxu1 %v8712_v1 }
 0xfae   : > { %7375 = vmatpush3.bf16.msra.mxu0 %v8124_v47  ;;  %v2537_v47 = vrot.slane %v9368_v46, %v8949_v52 }
 0xfaf   : > { %7376 = vmatprep.subr.bf16.mxu0 %v8712_v1  ;;  %7393 = vmatpush3.bf16.msra.mxu1 %v8131_v18  ;;  %v8180_v18 = vld [vmem:[#allocation6 + $0x7c] ss:$20 sps:$4 sm:$0xff]  }
 0xfb0   : > { %7394 = vmatprep.subr.bf16.mxu1 %v8712_v1 }
 0xfb2   : > { %7377 = vmatpush3.bf16.msra.mxu0 %v8125_v48 }
 0xfb3   : > { %7378 = vmatprep.subr.bf16.mxu0 %v8712_v1  ;;  %7395 = vmatpush3.bf16.msra.mxu1 %v8132_v50  ;;  %v8181_v50 = vld [vmem:[#allocation6 + $0xa4] ss:$20 sps:$4 sm:$0xff]  }
 0xfb4   : > { %7396 = vmatprep.subr.bf16.mxu1 %v8712_v1 }
 0xfb6   : > { %7379 = vmatpush3.bf16.msra.mxu0 %v8126_v49 }
 0xfb7   : > { %7380 = vmatprep.subr.bf16.mxu0 %v8712_v1  ;;  %7397 = vmatpush3.bf16.msra.mxu1 %v8133_v20  ;;  %v8182_v20 = vld [vmem:[#allocation6 + $0xcc] ss:$20 sps:$4 sm:$0xff]  }
 0xfb8   : > { %7398 = vmatprep.subr.bf16.mxu1 %v8712_v1 }
 0xfba   : > { %7381 = vmatpush3.bf16.msra.mxu0 %v8127_v54 }
 0xfbb   : > { %7382 = vmatprep.subr.bf16.mxu0 %v8712_v1  ;;  %7399 = vmatpush3.bf16.msra.mxu1 %v8136_v23  ;;  %v9383_v23 = vld [vmem:[%s10026_s9] sm:$0x1f] }
 0xfbc   : > { %7400 = vmatprep.subr.bf16.mxu1 %v8712_v1 }
 0xfbe   : > { %7383 = vmatpush3.bf16.msra.mxu0 %v8128_v55 }
 0xfbf   : > { %7408 = vmatprep.subr.bf16.mxu0 %v8712_v1  ;;  %7401 = vmatpush3.bf16.msra.mxu1 %v8139_v25  ;;  %v8184_v25 = vld [vmem:[#allocation6 + $0x11c] ss:$20 sps:$4 sm:$0xff]  }
 0xfc0   : > { %7402 = vmatprep.subr.bf16.mxu1 %v8712_v1 }
0x1034   : > { %v2479_v33 = vpop.xlane.xlu1 %2478 }
0x1035   : > { %v2483_v19 = vmul.f32 0.03125, %v2479_v33  ;;  %v8147_v33 = vld [vmem:[#allocation6 + $0xc8] ss:$20 sps:$4 sm:$0xff]  }
0x1037   : > { %v2485_v34 = vsub.f32 %v2476_v27, %v2483_v19  ;;  %v2482_v35 = vpop.xlane.xlu0 %2481  ;;  %v8140_v27 = vld [vmem:[#allocation6 + $0x50] ss:$20 sps:$4 sm:$0xff]  }
0x1038   : > { %v2484_v37 = vmul.f32 0.03125, %v2482_v35  ;;  %v8149_v19 = vld [vmem:[#allocation6 + $0xf0] ss:$20 sps:$4 sm:$0xff]  }
0x1039   : > { %v2487_v38 = vmul.f32 %v8907_v3, %v2485_v34  ;;  %v8151_v34 = vld [vmem:[#allocation6 + $0x118] ss:$20 sps:$4 sm:$0xff]   ;;  %v480_v35 = vld [vmem:[%s445_s13] sm:$0xff] }
0x103a   : > { %v2486_v40 = vsub.f32 %v2477_v29, %v2484_v37  ;;  %v8142_v29 = vld [vmem:[#allocation4 + $0x78] sm:$0xff]  }
0x103b   : > { %v2489_v41 = vmul.f32 %v2487_v38, %v2487_v38  ;;  %7403 = vmatpush3.bf16.msra.mxu1 %v8142_v29  ;;  %v8153_v37 = vld [vmem:[#allocation6 + $0x8] ss:$20 sps:$4 sm:$0xff]  }
0x103c   : > { %v2488_v42 = vmul.f32 %v8907_v3, %v2486_v40  ;;  %7428 = vmatprep.subr.bf16.mxu1 %v8712_v1  ;;  %v8156_v40 = vld [vmem:[#allocation6 + $0x30] ss:$20 sps:$4 sm:$0xff]  }
0x103d   : > { %2491 = vadd.xlane.f32.xlu0 %v2489_v41  ;;  %v8159_v41 = vld [vmem:[#allocation6 + $0x58] ss:$20 sps:$4 sm:$0xff]  }
0x103e   : > { %v2490_v43 = vmul.f32 %v2488_v42, %v2488_v42 }
0x1040   : > { %v2493_v44 = vsel %vm521_vm1, %v2490_v43, 0.0  ;;  %v8165_v43 = vld [vmem:[#allocation6 + $0xa8] ss:$20 sps:$4 sm:$0xff]   ;;  %vm3423_vm1 = vcmask 1042432  }
0x1041   : > { %2494 = vadd.xlane.f32.xlu1 %v2493_v44  ;;  %v8169_v44 = vld [vmem:[#allocation6 + $0xd0] ss:$20 sps:$4 sm:$0xff]  }
0x10ca   : > { %v2492_v59 = vpop.xlane.xlu0 %2491 }
0x10cb   : > { %v2496_v60 = vmul.f32 0.03125, %v2492_v59 }
0x10cd   : > { %v2498_v26 = vadd.f32 1e-05, %v2496_v60 }
0x10ce   : > { %v2495_v63 = vpop.xlane.xlu1 %2494 }
0x10cf   : > { %8461 = vrsqrt.f32 %v2498_v26  ;;  %v2497_v0 = vmul.f32 0.03125, %v2495_v63 }
0x10d1   : > { %v2499_v4 = vadd.f32 1e-05, %v2497_v0 }
0x10d3   : > { %8463 = vrsqrt.f32 %v2499_v4 }
0x10d9   : > { %v8462_v9 = vpop.eup %8461 }
0x10da   : > { %v2502_v11 = vmul.f32 %v8462_v9, %v2487_v38  ;;  %v9362_v38 = vpack.c.bf16 %v480_v35, %v480_v35 }
0x10dc   : > { %v2508_v28 = vmul.f32 %v2507_v58, %v2502_v11 }
0x10dd   : > { %v8464_v10 = vpop.eup %8463 }
0x10de   : > { %v2503_v12 = vmul.f32 %v8464_v10, %v2488_v42  ;;  %v2514_v14 = vadd.f32 %v2513_v51, %v2508_v28  ;;  %v8162_v42 = vld [vmem:[#allocation6 + $0x80] ss:$20 sps:$4 sm:$0xff]  }
0x10e0   : > { %v2509_v53 = vmul.f32 %v2507_v58, %v2503_v12 }
0x10e2   : > { %v2515_v16 = vadd.f32 %v2513_v51, %v2509_v53 }
0x10e4   : > { %v2516_v17 = vpack.c.bf16 %v2515_v16, %v2514_v14  ;;  %v8168_v14 = vld [vmem:[#allocation6 + $0x4] ss:$20 sps:$4 sm:$0xff]  }
0x10e6   : > { %7385 = vmatmul.mubr.bf16.vlgmr.msra.gmra.mrb[36].mxu0 %v2516_v17  ;;  %v8172_v17 = vld [vmem:[#allocation6 + $0x2c] ss:$20 sps:$4 sm:$0xff]  }
0x10e7   : > { %7424 = vmatprep.mubr.msk.bf16.mxu0 %vm8714_vm2, %v8712_v1  ;;  %7409 = vmatpush3.bf16.msra.mxu0 %v8134_v21  ;;  %v8183_v21 = vld [vmem:[#allocation6 + $0xf4] ss:$20 sps:$4 sm:$0xff]  }
0x10e8   : > { %7410 = vmatprep.subr.bf16.mxu0 %v8712_v1 }
0x10eb   : > { %7411 = vmatpush3.bf16.msra.mxu0 %v8137_v24  ;;  %v2809_v24 = vrot.slane %v9383_v23, %v8949_v52 }
0x10ec   : > { %7412 = vmatprep.subr.bf16.mxu0 %v8712_v1 }
0x10ef   : > { %7413 = vmatpush3.bf16.msra.mxu0 %v8140_v27 }
0x10f0   : > { %7414 = vmatprep.subr.bf16.mxu0 %v8712_v1 }
0x10f3   : > { %7415 = vmatpush3.bf16.msra.mxu0 %v8143_v32 }
0x10f4   : > { %7416 = vmatprep.subr.bf16.mxu0 %v8712_v1 }
0x10f7   : > { %7417 = vmatpush3.bf16.msra.mxu0 %v8145_v62 }
0x10f8   : > { %7418 = vmatprep.subr.bf16.mxu0 %v8712_v1 }
0x10fb   : > { %7419 = vmatpush3.bf16.msra.mxu0 %v8147_v33 }
0x10fc   : > { %7420 = vmatprep.subr.bf16.mxu0 %v8712_v1 }
0x10ff   : > { %7421 = vmatpush3.bf16.msra.mxu0 %v8149_v19 }
0x1100   : > { %7422 = vmatprep.subr.bf16.mxu0 %v8712_v1 }
0x1103   : > { %7423 = vmatpush3.bf16.msra.mxu0 %v8151_v34  ;;  %v2753_v34 = vrot.slane %v9368_v46, %v8960_v57 }
0x1104   : > { %7448 = vmatprep.subr.bf16.mxu0 %v8153_v37 }
0x1106   : > { %7425 = vmatmul.mubr.bf16.vlgmr.msra.gmra.mrb[40].mxu0 %v9362_v38 }
0x1107   : > { %7449 = vmatpush3.bf16.msra.mxu0 %v8153_v37 }
0x1108   : > { %7450 = vmatprep.subr.bf16.mxu0 %v8156_v40 }
0x110b   : > { %7451 = vmatpush3.bf16.msra.mxu0 %v8156_v40 }
0x110c   : > { %7452 = vmatprep.subr.bf16.mxu0 %v8159_v41 }
0x110f   : > { %7453 = vmatpush3.bf16.msra.mxu0 %v8159_v41  ;;  %v2756_v41 = vld [vmem:[%s10020_s3 + $0x8] sm:$0x3] }
0x1110   : > { %7454 = vmatprep.subr.bf16.mxu0 %v8162_v42 }
0x1113   : > { %7455 = vmatpush3.bf16.msra.mxu0 %v8162_v42 }
0x1114   : > { %7456 = vmatprep.subr.bf16.mxu0 %v8165_v43 }
0x1117   : > { %7457 = vmatpush3.bf16.msra.mxu0 %v8165_v43  ;;  %v2755_v43 = vld [vmem:[%s10020_s3] sm:$0xff] }
0x1118   : > { %7458 = vmatprep.subr.bf16.mxu0 %v8169_v44 }
0x111b   : > { %7459 = vmatpush3.bf16.msra.mxu0 %v8169_v44 }
0x111c   : > { %7460 = vmatprep.subr.bf16.mxu0 %v8173_v45 }
0x111f   : > { %7461 = vmatpush3.bf16.msra.mxu0 %v8173_v45 }
0x1120   : > { %7462 = vmatprep.subr.bf16.mxu0 %v8177_v15 }
0x1123   : > { %7463 = vmatpush3.bf16.msra.mxu0 %v8177_v15 }
0x1124   : > { %7476 = vmatprep.subr.bf16.mxu0 %v8712_v1 }
0x11b9   : > { %v2620_v48 = vpop.f32.mrb[36].mxu0 }
0x11ba   : > { %v2621_v49 = vadd.f32 %v2620_v48, %v2537_v47  ;;  %v7386_v54 = vpop.f32.mrb[37].mxu0 }
0x11bb   : > { %v2623_v55 = vpop.f32.mrb[38].mxu0 }
0x11bc   : > { %v6596_v59 = vmul.f32 -1.702, %v2621_v49  ;;  %v2624_v60 = vadd.f32 %v2623_v55, %v2537_v47  ;;  %v7387_v26 = vpop.f32.mrb[39].mxu0  ;;  %v9407_v47 = vpack.c.bf16 %v2756_v41, %v2756_v41 }
0x11be   : > { %v2631_v63 = vmul.f32 1.442695, %v6596_v59  ;;  %v6597_v0 = vmul.f32 -1.702, %v2624_v60 }
0x11c0   : > { %8465 = vpow2.f32 %v2631_v63  ;;  %v2633_v4 = vmul.f32 1.442695, %v6597_v0 }
0x11c2   : > { %8467 = vpow2.f32 %v2633_v4 }
0x11ca   : > { %v8466_v9 = vpop.eup %8465 }
0x11cb   : > { %v2635_v11 = vadd.f32 1.0, %v8466_v9  ;;  %v8155_v9 = vld [vmem:[#allocation6 + $0xc] ss:$20 sps:$4 sm:$0xff]  }
0x11cc   : > { %v8468_v58 = vpop.eup %8467 }
0x11cd   : > { %8469 = vrcp.f32 %v2635_v11  ;;  %v2636_v10 = vadd.f32 1.0, %v8468_v58  ;;  %v8158_v11 = vld [vmem:[#allocation6 + $0x34] ss:$20 sps:$4 sm:$0xff]   ;;  %v8161_v58 = vld [vmem:[#allocation6 + $0x5c] ss:$20 sps:$4 sm:$0xff]  }
0x11cf   : > { %8471 = vrcp.f32 %v2636_v10  ;;  %v8164_v10 = vld [vmem:[#allocation6 + $0x84] ss:$20 sps:$4 sm:$0xff]  }
0x11d7   : > { %v8470_v12 = vpop.eup %8469 }
0x11d8   : > { %v2641_v51 = vmul.f32 %v8470_v12, %v2621_v49  ;;  %v8167_v12 = vld [vmem:[#allocation6 + $0xac] ss:$20 sps:$4 sm:$0xff]  }
0x11d9   : > { %v8472_v28 = vpop.eup %8471  ;;  %v2892_v27 = vpop.f32.mrb[40].mxu0 }
0x11da   : > { %v2642_v53 = vmul.f32 %v8472_v28, %v2624_v60  ;;  %v9389_v29 = vadd.f32 %v2892_v27, %v2809_v24  ;;  %v7426_v32 = vpop.f32.mrb[41].mxu0  ;;  %v8171_v28 = vld [vmem:[#allocation6 + $0xd4] ss:$20 sps:$4 sm:$0xff]   ;;  %v3131_v27 = vsel %vm3129_vm0, %v9407_v47, 0 }
0x11db   : > { %v2895_v62 = vpop.f32.mrb[42].mxu0 }
0x11dc   : > { %v2643_v16 = vpack.c.bf16 %v2642_v53, %v2641_v51  ;;  %v2898_v33 = vpack.c.bf16 %v9389_v29, %v9389_v29  ;;  %v7427_v19 = vpop.f32.mrb[43].mxu0  ;;  %v8175_v51 = vld [vmem:[#allocation6 + $0xfc] ss:$20 sps:$4 sm:$0xff]   ;;  %v8179_v53 = vld [vmem:[#allocation6 + $0x124] ss:$20 sps:$4 sm:$0xff]  }
0x11de   : > { %7405 = vmatmul.mubr.bf16.vlgmr.msra.gmra.mrb[36].mxu1 %v2643_v16 }
0x11df   : > { %7429 = vmatpush3.bf16.msra.mxu1 %v8168_v14  ;;  %7444 = vmatprep.mubr.msk.bf16.mxu1 %vm8714_vm2, %v8712_v1 }
0x11e0   : > { %7430 = vmatprep.subr.bf16.mxu1 %v8712_v1 }
0x11e3   : > { %7431 = vmatpush3.bf16.msra.mxu1 %v8172_v17 }
0x11e4   : > { %7432 = vmatprep.subr.bf16.mxu1 %v8712_v1 }
0x11e7   : > { %7433 = vmatpush3.bf16.msra.mxu1 %v8176_v13 }
0x11e8   : > { %7434 = vmatprep.subr.bf16.mxu1 %v8712_v1 }
0x11eb   : > { %7435 = vmatpush3.bf16.msra.mxu1 %v8180_v18 }
0x11ec   : > { %7436 = vmatprep.subr.bf16.mxu1 %v8712_v1 }
0x11ef   : > { %7437 = vmatpush3.bf16.msra.mxu1 %v8181_v50 }
0x11f0   : > { %7438 = vmatprep.subr.bf16.mxu1 %v8712_v1 }
0x11f3   : > { %7439 = vmatpush3.bf16.msra.mxu1 %v8182_v20 }
0x11f4   : > { %7440 = vmatprep.subr.bf16.mxu1 %v8712_v1 }
0x11f7   : > { %7441 = vmatpush3.bf16.msra.mxu1 %v8183_v21 }
0x11f8   : > { %7442 = vmatprep.subr.bf16.mxu1 %v8712_v1 }
0x11fb   : > { %7443 = vmatpush3.bf16.msra.mxu1 %v8184_v25 }
0x11fc   : > { %7468 = vmatprep.subr.bf16.mxu1 %v8712_v1 }
0x11fe   : > { %7445 = vmatmul.mubr.bf16.vlgmr.msra.gmra.mrb[40].mxu1 %v2898_v33 }
0x11ff   : > { %7472 = vmatprep.mubr.msk.bf16.mxu1 %vm8714_vm2, %v8712_v1 }
0x12b1   : > { %v2743_v35 = vpop.f32.mrb[36].mxu1 }
0x12b2   : > { %v2749_v37 = vadd.f32 %v2743_v35, %v9295_v22  ;;  %v7406_v40 = vpop.f32.mrb[37].mxu1 }
0x12b3   : > { %v2746_v42 = vpop.f32.mrb[38].mxu1 }
0x12b4   : > { %v9405_v44 = vadd.f32 %v2753_v34, %v2749_v37  ;;  %v7407_v45 = vpop.f32.mrb[39].mxu1 }
0x12b6   : > { %v2899_v46 = vpack.c.bf16 %v2755_v43, %v9405_v44 }
0x12b8   : > { %7464 = vmatprep.mubr.bf16.mxu0 %v2899_v46 }
0x12b9   : > { %7465 = vmatmul.mubr.bf16.vlgmr.msra.gmra.mrb[44].mxu0 %v9407_v47 }
0x12ba   : > { %7477 = vmatpush3.bf16.msra.mxu0 %v2899_v46  ;;  %7480 = vmatprep.mubr.msk.bf16.mxu0 %vm8714_vm2, %v8712_v1 }
0x12bb   : > { %7478 = vmatprep.subr.bf16.mxu0 %v8712_v1 }
0x12be   : > { %7479 = vmatpush3.bf16.msra.mxu0 %v3131_v27 }
0x12bf   : > { %7504 = vmatprep.subr.bf16.mxu0 %v8712_v1 }
0x12d1   : > { %v2967_v22 = vpop.f32.mrb[40].mxu1 }
0x12d2   : > { %v7446_v48 = vpop.f32.mrb[41].mxu1  ;;  %v2973_v4 = vpack.c.bf16 %v2967_v22, %v2967_v22 }
0x12d3   : > { %v2970_v49 = vpop.f32.mrb[42].mxu1 }
0x12d4   : > { %v7447_v54 = vpop.f32.mrb[43].mxu1 }
0x138c   : > { %v7466_v55 = vpop.f32.mrb[44].mxu0 }
0x138d   : > { %v3056_v59 = vpop.f32.mrb[45].mxu0  ;;  %v3071_v0 = vpack.c.bf16 %v7466_v55, %v7466_v55 }
0x138e   : > { %v7467_v60 = vpop.f32.mrb[46].mxu0 }
0x138f   : > { %v3059_v26 = vpop.f32.mrb[47].mxu0  ;;  %v3419_v60 = vmul.f32 %v8907_v3, %v9405_v44 }
0x1390   : > { %v3070_v63 = vpack.c.bf16 %v3059_v26, %v3056_v59 }
0x1392   : > { %7469 = vmatpush3.bf16.xpose.msra.mxu1 %v3070_v63 }
0x1393   : > { %7470 = vmatprep.subr.bf16.mxu1 %v8712_v1 }
0x139a   : > { %7471 = vmatpush3.bf16.xpose.msra.mxu1 %v3071_v0 }
0x139b   : > { %7484 = vmatprep.subr.bf16.mxu1 %v8712_v1 }
0x13a1   : > { %7473 = vmatmul.mubr.bf16.vlgmr.msra.gmra.mrb[44].mxu1 %v2973_v4  ;;  %v3375_v4 = vrot.slane %v9383_v23, %v8976_v7 }
0x13a2   : > { %7485 = vmatpush3.bf16.msra.mxu1 %v8155_v9  ;;  %7500 = vmatprep.mubr.msk.bf16.mxu1 %vm8714_vm2, %v8712_v1 }
0x13a3   : > { %7486 = vmatprep.subr.bf16.mxu1 %v8712_v1 }
0x13a6   : > { %7487 = vmatpush3.bf16.msra.mxu1 %v8158_v11 }
0x13a7   : > { %7488 = vmatprep.subr.bf16.mxu1 %v8712_v1 }
0x13aa   : > { %7489 = vmatpush3.bf16.msra.mxu1 %v8161_v58 }
0x13ab   : > { %7490 = vmatprep.subr.bf16.mxu1 %v8712_v1 }
0x13ae   : > { %7491 = vmatpush3.bf16.msra.mxu1 %v8164_v10  ;;  %v3380_v10 = vrot.slane %v9383_v23, %v8973_v6 }
0x13af   : > { %7492 = vmatprep.subr.bf16.mxu1 %v8712_v1 }
0x13b2   : > { %7493 = vmatpush3.bf16.msra.mxu1 %v8167_v12 }
0x13b3   : > { %7494 = vmatprep.subr.bf16.mxu1 %v8712_v1 }
0x13b6   : > { %7495 = vmatpush3.bf16.msra.mxu1 %v8171_v28 }
0x13b7   : > { %7496 = vmatprep.subr.bf16.mxu1 %v8712_v1 }
0x13ba   : > { %7497 = vmatpush3.bf16.msra.mxu1 %v8175_v51 }
0x13bb   : > { %7498 = vmatprep.subr.bf16.mxu1 %v8712_v1 }
0x13be   : > { %7499 = vmatpush3.bf16.msra.mxu1 %v8179_v53 }
0x1474   : > { %v3106_v14 = vpop.f32.mrb[44].mxu1 }
0x1475   : > { %v3112_v16 = vmul.f32 0.17677669, %v3106_v14  ;;  %v7474_v17 = vpop.f32.mrb[45].mxu1 }
0x1476   : > { %v3109_v13 = vpop.f32.mrb[46].mxu1 }
0x1477   : > { %v7475_v15 = vpop.f32.mrb[47].mxu1  ;;  %v3114_v18 = vsel %vm3113_vm15, %v3112_v16, -inf }
0x1478   : > { %3115 = vmax.xlane.f32.xlu0 %v3114_v18  ;;  %v8185_v15 = vld [vmem:[#allocation2 + $0x200] ss:$16 sps:$4 sm:$0xff]   ;;  %v8187_v18 = vld [vmem:[#allocation2 + $0x204] ss:$16 sps:$4 sm:$0xff]  }
0x1479   : > { %3589 = vmatprep.subr.bf16.mxu1 %v8187_v18 }
0x1505   : > { %v3116_v50 = vpop.xlane.xlu0 %3115 }
0x1506   : > { %v3117_v20 = vsub.f32 %v3112_v16, %v3116_v50  ;;  %v8190_v50 = vld [vmem:[#allocation2 + $0x224] ss:$16 sps:$4 sm:$0xff]  }
0x1508   : > { %v3118_v21 = vmul.f32 1.442695, %v3117_v20  ;;  %v8191_v20 = vld [vmem:[#allocation6 + $0x10] ss:$20 sps:$4 sm:$0xff]  }
0x150a   : > { %8473 = vpow2.f32 %v3118_v21  ;;  %v8188_v21 = vld [vmem:[#allocation2 + $0x220] ss:$16 sps:$4 sm:$0xff]  }
0x1514   : > { %v8474_v24 = vpop.eup %8473 }
0x1515   : > { %v3120_v25 = vsel %vm3113_vm15, %v8474_v24, 0.0 }
0x1516   : > { %3121 = vadd.xlane.f32.xlu1 %v3120_v25  ;;  %v8192_v25 = vld [vmem:[#allocation2 + $0x240] ss:$16 sps:$4 sm:$0xff]  }
0x15a3   : > { %v3122_v32 = vpop.xlane.xlu1 %3121 }
0x15a4   : > { %8475 = vrcp.f32 %v3122_v32 }
0x15ae   : > { %v8476_v62 = vpop.eup %8475 }
0x15af   : > { %v3124_v33 = vmul.f32 %v8476_v62, %v8474_v24  ;;  %v8194_v24 = vld [vmem:[#allocation2 + $0x244] ss:$16 sps:$4 sm:$0xff]  }
0x15b1   : > { %v3125_v19 = vpack.c.bf16 %v3124_v33, %v3124_v33 }
0x15b3   : > { %7481 = vmatmul.mubr.msk.bf16.vlgmr.msra.gmra.mrb[48].mxu0 %vm3113_vm15, %v3125_v19 }
0x15b4   : > { %7520 = vmatprep.mubr.msk.bf16.mxu0 %vm8714_vm2, %v8712_v1  ;;  %7505 = vmatpush3.bf16.msra.mxu0 %v8191_v20 }
0x15b5   : > { %7506 = vmatprep.subr.bf16.mxu0 %v8712_v1 }
0x1686   : > { %v3167_v34 = vpop.f32.mrb[48].mxu0 }
0x1687   : > { %v3173_v35 = vpack.c.bf16 %v3167_v34, %v3167_v34  ;;  %v7482_v37 = vpop.f32.mrb[49].mxu0 }
0x1688   : > { %v3170_v40 = vpop.f32.mrb[50].mxu0 }
0x1689   : > { %v7483_v41 = vpop.f32.mrb[51].mxu0  ;;  %7501 = vmatmul.mubr.bf16.vlgmr.msra.gmra.mrb[48].mxu1 %v3173_v35 }
0x168a   : > { %3621 = vmatprep.mubr.bf16.mxu1 %v8713_v39  ;;  %3590 = vmatpush1.bf16.msra.mxu1 %v8185_v15  ;;  %v9477_v15 = vld [vmem:[%s10024_s7 + $0x20] sm:$0xff] }
0x168b   : > { %3591 = vmatprep.subr.bf16.mxu1 %v8190_v50  ;;  %v3451_v20 = vrot.slane %v9477_v15, %v8949_v52 }
0x168e   : > { %3592 = vmatpush1.bf16.msra.mxu1 %v8188_v21 }
0x168f   : > { %3593 = vmatprep.subr.bf16.mxu1 %v8194_v24 }
0x1692   : > { %3594 = vmatpush1.bf16.msra.mxu1 %v8192_v25 }
0x175c   : > { %v3240_v42 = vpop.f32.mrb[48].mxu1 }
0x175d   : > { %v3358_v43 = vadd.f32 %v3240_v42, %v9389_v29  ;;  %v7502_v45 = vpop.f32.mrb[49].mxu1  ;;  %v3246_v13 = vmul.f32 %v8907_v3, %v3240_v42 }
0x175e   : > { %v3243_v47 = vpop.f32.mrb[50].mxu1  ;;  %v8195_v45 = vld [vmem:[#allocation6 + $0x38] ss:$20 sps:$4 sm:$0xff]  }
0x175f   : > { %v7503_v46 = vpop.f32.mrb[51].mxu1  ;;  %v3359_v22 = vmul.f32 %v8907_v3, %v3358_v43  ;;  %v8198_v47 = vld [vmem:[#allocation2 + $0x264] ss:$16 sps:$4 sm:$0xff]   ;;  %7507 = vmatpush3.bf16.msra.mxu0 %v8195_v45 }
0x1760   : > { %v8196_v46 = vld [vmem:[#allocation2 + $0x260] ss:$16 sps:$4 sm:$0xff]   ;;  %3595 = vmatprep.subr.bf16.mxu1 %v8198_v47  ;;  %7508 = vmatprep.subr.bf16.mxu0 %v8712_v1  ;;  %v8219_v47 = vld [vmem:[#allocation2 + $0x228] ss:$16 sps:$4 sm:$0xff]  }
0x1761   : > { %3360 = vadd.xlane.f32.xlu0 %v3359_v22  ;;  %3596 = vmatpush1.bf16.msra.mxu1 %v8196_v46  ;;  %v8225_v46 = vld [vmem:[#allocation2 + $0x288] ss:$16 sps:$4 sm:$0xff]  }
0x17ee   : > { %v3361_v48 = vpop.xlane.xlu0 %3360 }
0x17ef   : > { %v3362_v49 = vmul.f32 0.03125, %v3361_v48  ;;  %v8202_v48 = vld [vmem:[#allocation2 + $0x284] ss:$16 sps:$4 sm:$0xff]  }
0x17f0   : > { %3597 = vmatprep.subr.bf16.mxu1 %v8202_v48  ;;  %v8229_v48 = vld [vmem:[#allocation2 + $0x2c8] ss:$16 sps:$4 sm:$0xff]  }
0x17f1   : > { %v3363_v54 = vsub.f32 %v3359_v22, %v3362_v49  ;;  %v8199_v22 = vld [vmem:[#allocation6 + $0x60] ss:$20 sps:$4 sm:$0xff]  }
0x17f2   : > { %7509 = vmatpush3.bf16.msra.mxu0 %v8199_v22  ;;  %v8200_v49 = vld [vmem:[#allocation2 + $0x280] ss:$16 sps:$4 sm:$0xff]   ;;  %v8227_v22 = vld [vmem:[#allocation2 + $0x2a8] ss:$16 sps:$4 sm:$0xff]  }
0x17f3   : > { %v3364_v55 = vmul.f32 %v8907_v3, %v3363_v54  ;;  %7510 = vmatprep.subr.bf16.mxu0 %v8712_v1  ;;  %3598 = vmatpush1.bf16.msra.mxu1 %v8200_v49  ;;  %v8203_v54 = vld [vmem:[#allocation6 + $0x88] ss:$20 sps:$4 sm:$0xff]  }
0x17f4   : > { %v8231_v49 = vld [vmem:[#allocation2 + $0x2e8] ss:$16 sps:$4 sm:$0xff]  }
0x17f5   : > { %v3365_v59 = vmul.f32 %v3364_v55, %v3364_v55 }
0x17f6   : > { %7511 = vmatpush3.bf16.msra.mxu0 %v8203_v54  ;;  %v3676_v54 = vrot.slane %v9477_v15, %v8970_v5 }
0x17f7   : > { %3366 = vadd.xlane.f32.xlu1 %v3365_v59  ;;  %v8204_v59 = vld [vmem:[#allocation2 + $0x2a0] ss:$16 sps:$4 sm:$0xff]   ;;  %7512 = vmatprep.subr.bf16.mxu0 %v8712_v1 }
0x17fb   : > { %3421 = vadd.xlane.f32.xlu1 %v3419_v60 }
0x1884   : > { %v3367_v26 = vpop.xlane.xlu1 %3366 }
0x1885   : > { %v3368_v63 = vmul.f32 0.03125, %v3367_v26  ;;  %v8208_v26 = vld [vmem:[#allocation2 + $0x2c0] ss:$16 sps:$4 sm:$0xff]  }
0x1887   : > { %v3369_v29 = vadd.f32 1e-05, %v3368_v63  ;;  %v8210_v63 = vld [vmem:[#allocation2 + $0x2c4] ss:$16 sps:$4 sm:$0xff]  }
0x1888   : > { %v3422_v0 = vpop.xlane.xlu1 %3421 }
0x1889   : > { %8477 = vrsqrt.f32 %v3369_v29  ;;  %v3427_v11 = vmul.f32 0.03125, %v3422_v0  ;;  %v8211_v29 = vld [vmem:[#allocation6 + $0xd8] ss:$20 sps:$4 sm:$0xff]   ;;  %v8214_v0 = vld [vmem:[#allocation2 + $0x2e4] ss:$16 sps:$4 sm:$0xff]  }
0x188b   : > { %v3429_v28 = vsub.f32 %v3419_v60, %v3427_v11  ;;  %v8207_v60 = vld [vmem:[#allocation6 + $0xb0] ss:$20 sps:$4 sm:$0xff]   ;;  %v8216_v11 = vld [vmem:[#allocation6 + $0x128] ss:$20 sps:$4 sm:$0xff]  }
0x188c   : > { %7513 = vmatpush3.bf16.msra.mxu0 %v8207_v60 }
0x188d   : > { %v9448_v14 = vmul.f32 %v8907_v3, %v3429_v28  ;;  %7514 = vmatprep.subr.bf16.mxu0 %v8712_v1 }
0x188f   : > { %v3433_v17 = vmul.f32 %v9448_v14, %v9448_v14 }
0x1890   : > { %7515 = vmatpush3.bf16.msra.mxu0 %v8211_v29 }
0x1891   : > { %7516 = vmatprep.subr.bf16.mxu0 %v8712_v1 }
0x1893   : > { %v8478_v9 = vpop.eup %8477 }
0x1894   : > { %v3371_v58 = vmul.f32 %v8478_v9, %v3364_v55  ;;  %v8206_v55 = vld [vmem:[#allocation2 + $0x2a4] ss:$16 sps:$4 sm:$0xff]  }
0x1895   : > { %3599 = vmatprep.subr.bf16.mxu1 %v8206_v55  ;;  %v8215_v9 = vld [vmem:[#allocation6 + $0x100] ss:$20 sps:$4 sm:$0xff]  }
0x1896   : > { %v3376_v12 = vmul.f32 %v3375_v4, %v3371_v58  ;;  %3600 = vmatpush1.bf16.msra.mxu1 %v8204_v59  ;;  %v8212_v4 = vld [vmem:[#allocation2 + $0x2e0] ss:$16 sps:$4 sm:$0xff]   ;;  %7517 = vmatpush3.bf16.msra.mxu0 %v8215_v9  ;;  %v3683_v59 = vrot.slane %v9477_v15, %v8976_v7 }
0x1897   : > { %3601 = vmatprep.subr.bf16.mxu1 %v8210_v63  ;;  %7518 = vmatprep.subr.bf16.mxu0 %v8712_v1 }
0x1898   : > { %v9443_v51 = vadd.f32 %v3380_v10, %v3376_v12 }
0x189a   : > { %v3420_v53 = vmul.f32 %v8907_v3, %v9443_v51  ;;  %3602 = vmatpush1.bf16.msra.mxu1 %v8208_v26  ;;  %7519 = vmatpush3.bf16.msra.mxu0 %v8216_v11 }
0x189b   : > { %3603 = vmatprep.subr.bf16.mxu1 %v8214_v0  ;;  %7524 = vmatprep.subr.bf16.mxu0 %v8712_v1 }
0x189c   : > { %v3424_v16 = vsel %vm3423_vm1, %v3420_v53, 0.0 }
0x189d   : > { %3425 = vadd.xlane.f32.xlu0 %v3424_v16 }
0x189e   : > { %3604 = vmatpush1.bf16.msra.mxu1 %v8212_v4 }
0x189f   : > { %7544 = vmatprep.subr.bf16.mxu1 %v8712_v1 }
0x18a1   : > { %3435 = vadd.xlane.f32.xlu0 %v3433_v17 }
0x18a5   : > { %3247 = vadd.xlane.f32.xlu0 %v3246_v13 }
0x192a   : > { %v3426_v27 = vpop.xlane.xlu0 %3425 }
0x192b   : > { %v3428_v32 = vmul.f32 0.03125, %v3426_v27  ;;  %v3457_v27 = vrot.slane %v9477_v15, %v8960_v57 }
0x192d   : > { %v3430_v62 = vsub.f32 %v3420_v53, %v3428_v32 }
0x192e   : > { %v3436_v33 = vpop.xlane.xlu0 %3435 }
0x192f   : > { %v9456_v19 = vmul.f32 %v8907_v3, %v3430_v62  ;;  %v3440_v58 = vmul.f32 0.03125, %v3436_v33 }
0x1931   : > { %v3434_v34 = vmul.f32 %v9456_v19, %v9456_v19  ;;  %v3442_v10 = vadd.f32 1e-05, %v3440_v58 }
0x1932   : > { %v3248_v35 = vpop.xlane.xlu0 %3247 }
0x1933   : > { %v3249_v37 = vmul.f32 0.03125, %v3248_v35  ;;  %v3437_v40 = vsel %vm3423_vm1, %v3434_v34, 0.0  ;;  %8479 = vrsqrt.f32 %v3442_v10  ;;  %v3262_v34 = vrot.slane %v9383_v23, %v8960_v57 }
0x1934   : > { %3438 = vadd.xlane.f32.xlu1 %v3437_v40  ;;  %v3267_v40 = vrot.slane %v9383_v23, %v8970_v5  ;;  %v8223_v23 = vld [vmem:[#allocation2 + $0x268] ss:$16 sps:$4 sm:$0xff]  }
0x1935   : > { %v3250_v41 = vsub.f32 %v3246_v13, %v3249_v37 }
0x1937   : > { %v9462_v42 = vmul.f32 %v8907_v3, %v3250_v41 }
0x1939   : > { %v3252_v43 = vmul.f32 %v9462_v42, %v9462_v42 }
0x193b   : > { %3253 = vadd.xlane.f32.xlu1 %v3252_v43  ;;  %v8217_v43 = vld [vmem:[#allocation2 + $0x208] ss:$16 sps:$4 sm:$0xff]  }
0x193d   : > { %v8480_v13 = vpop.eup %8479 }
0x193e   : > { %v3446_v50 = vmul.f32 %v8480_v13, %v9448_v14 }
0x1940   : > { %v3452_v25 = vmul.f32 %v3451_v20, %v3446_v50  ;;  %v3690_v50 = vrot.slane %v9477_v15, %v8973_v6 }
0x1942   : > { %v3458_v62 = vadd.f32 %v3457_v27, %v3452_v25 }
0x19c1   : > { %v3439_v12 = vpop.xlane.xlu1 %3438 }
0x19c2   : > { %v3441_v28 = vmul.f32 0.03125, %v3439_v12 }
0x19c4   : > { %v3443_v53 = vadd.f32 1e-05, %v3441_v28 }
0x19c6   : > { %8481 = vrsqrt.f32 %v3443_v53 }
0x19c8   : > { %v3254_v16 = vpop.xlane.xlu1 %3253 }
0x19c9   : > { %v3255_v17 = vmul.f32 0.03125, %v3254_v16 }
0x19cb   : > { %v3256_v18 = vadd.f32 1e-05, %v3255_v17 }
0x19cd   : > { %8483 = vrsqrt.f32 %v3256_v18 }
0x19d0   : > { %v8482_v21 = vpop.eup %8481 }
0x19d1   : > { %v3447_v24 = vmul.f32 %v8482_v21, %v9456_v19 }
0x19d3   : > { %v3453_v32 = vmul.f32 %v3451_v20, %v3447_v24 }
0x19d5   : > { %v3459_v33 = vadd.f32 %v3457_v27, %v3453_v32 }
0x19d7   : > { %v8484_v35 = vpop.eup %8483  ;;  %v3460_v37 = vpack.c.bf16 %v3459_v33, %v3458_v62  ;;  %v8715_v62 = vmov 65535  }
0x19d8   : > { %v3258_v14 = vmul.f32 %v8484_v35, %v9462_v42  ;;  %v8221_v42 = vld [vmem:[#allocation2 + $0x248] ss:$16 sps:$4 sm:$0xff]   ;;  %v3836_v33 = vsel %vm3835_vm3, 4294967295, %v8715_v62 }
0x19d9   : > { %3622 = vmatmul.mubr.bf16.vlgmr.msra.gmra.mrb[52].mxu1 %v3460_v37  ;;  %v9533_v35 = vsel %vm933_vm12, %v3836_v33, 0 }
0x19da   : > { %v3263_v41 = vmul.f32 %v3262_v34, %v3258_v14  ;;  %7546 = vmatprep.mubr.msk.bf16.mxu1 %vm8714_vm2, %v8712_v1 }
0x19dc   : > { %v3268_v19 = vadd.f32 %v3267_v40, %v3263_v41 }
0x19de   : > { %v3269_v45 = vpack.c.bf16 %v3268_v19, %v3268_v19 }
0x19e0   : > { %7521 = vmatmul.mubr.bf16.vlgmr.msra.gmra.mrb[52].mxu0 %v3269_v45 }
0x19e1   : > { %7525 = vmatpush3.bf16.msra.mxu0 %v8217_v43  ;;  %7540 = vmatprep.mubr.msk.bf16.mxu0 %vm8714_vm2, %v8712_v1 }
0x19e2   : > { %7526 = vmatprep.subr.bf16.mxu0 %v8712_v1 }
0x19e5   : > { %7527 = vmatpush3.bf16.msra.mxu0 %v8219_v47 }
0x19e6   : > { %7528 = vmatprep.subr.bf16.mxu0 %v8712_v1 }
0x19e9   : > { %7529 = vmatpush3.bf16.msra.mxu0 %v8221_v42 }
0x19ea   : > { %7530 = vmatprep.subr.bf16.mxu0 %v8712_v1 }
0x19ed   : > { %7531 = vmatpush3.bf16.msra.mxu0 %v8223_v23 }
0x19ee   : > { %7532 = vmatprep.subr.bf16.mxu0 %v8712_v1 }
0x19f1   : > { %7533 = vmatpush3.bf16.msra.mxu0 %v8225_v46 }
0x19f2   : > { %7534 = vmatprep.subr.bf16.mxu0 %v8712_v1 }
0x19f5   : > { %7535 = vmatpush3.bf16.msra.mxu0 %v8227_v22 }
0x19f6   : > { %7536 = vmatprep.subr.bf16.mxu0 %v8712_v1 }
0x19f9   : > { %7537 = vmatpush3.bf16.msra.mxu0 %v8229_v48 }
0x19fa   : > { %7538 = vmatprep.subr.bf16.mxu0 %v8712_v1 }
0x19fd   : > { %7539 = vmatpush3.bf16.msra.mxu0 %v8231_v49 }
0x19fe   : > { %7550 = vmatprep.subr.bf16.mxu0 %v8712_v1 }
0x1a00   : > { %7541 = vmatmul.mubr.bf16.vlgmr.msra.gmra.mrb[56].mxu0 %v3460_v37 }
0x1a01   : > { %7552 = vmatprep.mubr.msk.bf16.mxu0 %vm8714_vm2, %v8712_v1 }
0x1aac   : > { %v3623_v55 = vpop.f32.mrb[52].mxu1 }
0x1aad   : > { %v3625_v60 = vpop.f32.mrb[53].mxu1  ;;  %v3677_v63 = vadd.f32 %v3676_v54, %v3623_v55 }
0x1aae   : > { %v3627_v26 = vpop.f32.mrb[54].mxu1  ;;  %v3684_v4 = vadd.f32 %v3683_v59, %v3625_v60 }
0x1aaf   : > { %v3678_v29 = vadd.f32 %v3676_v54, %v3627_v26  ;;  %v3629_v0 = vpop.f32.mrb[55].mxu1 }
0x1ab0   : > { %v3685_v9 = vadd.f32 %v3683_v59, %v3629_v0 }
0x1ab1   : > { %v3679_v11 = vpack.c.bf16 %v3678_v29, %v3677_v63 }
0x1ab2   : > { %v3686_v58 = vpack.c.bf16 %v3685_v9, %v3684_v4 }
0x1ab3   : > { %v3352_v10 = vpop.f32.mrb[52].mxu0  ;;  %v3694_v16 = vmul.bf16 %v3679_v11, %v8994_v30  ;;  %v3764_v17 = vmul.bf16 %v3679_v11, %v9006_v36  ;;  %v3929_v13 = vmul.bf16 %v3679_v11, %v8997_v31  ;;  %v4046_v18 = vmul.bf16 %v3679_v11, %v9012_v2 }
0x1ab4   : > { %3382 = vst [vmem:[%s9509_s6] sm:$0xff] %v3352_v10  ;;  %v7522_v12 = vpop.f32.mrb[53].mxu0  ;;  %7545 = vmatpush3.bf16.xpose.msra.mxu1 %v3686_v58  ;;  %7551 = vmatpush3.bf16.xpose.msra.mxu0 %v3686_v58 }
0x1ab5   : > { %v3355_v28 = vpop.f32.mrb[54].mxu0  ;;  %7568 = vmatprep.subr.bf16.mxu0 %v8712_v1  ;;  %7556 = vmatprep.subr.bf16.mxu1 %v8712_v1 }
0x1ab6   : > { %v7523_v53 = vpop.f32.mrb[55].mxu0 }
0x1abb   : > { %7547 = vmatmul.mubr.bf16.vlgmr.msra.gmra.mrb[56].mxu1 %v3694_v16  ;;  %7553 = vmatmul.mubr.bf16.vlgmr.msra.gmra.mrb[60].mxu0 %v3764_v17 }
0x1abc   : > { %7569 = vmatpush3.bf16.xpose.msra.mxu0 %v3686_v58  ;;  %7570 = vmatprep.mubr.msk.bf16.mxu0 %vm8714_vm2, %v8712_v1 }
0x1abd   : > { %7580 = vmatprep.subr.bf16.mxu0 %v8712_v1  ;;  %7558 = vmatprep.mubr.msk.bf16.mxu1 %vm8714_vm2, %v8712_v1 }
0x1ac3   : > { %7571 = vmatmul.mubr.bf16.vlgmr.msra.gmra.mrb[64].mxu0 %v3929_v13 }
0x1ac4   : > { %7581 = vmatpush3.bf16.xpose.msra.mxu0 %v3686_v58  ;;  %7582 = vmatprep.mubr.msk.bf16.mxu0 %vm8714_vm2, %v8712_v1 }
0x1ac5   : > { %7592 = vmatprep.subr.bf16.mxu0 %v8712_v1 }
0x1acb   : > { %7583 = vmatmul.mubr.bf16.vlgmr.msra.gmra.mrb[68].mxu0 %v4046_v18 }
0x1acc   : > { %7608 = vmatprep.mubr.msk.bf16.mxu0 %vm8714_vm2, %v8712_v1 }
0x1ad3   : > { %v3666_v20 = vpop.f32.mrb[56].mxu0 }
0x1ad4   : > { %v7542_v21 = vpop.f32.mrb[57].mxu0  ;;  %v3691_v25 = vadd.f32 %v3690_v50, %v3666_v20 }
0x1ad5   : > { %v3669_v24 = vpop.f32.mrb[58].mxu0 }
0x1ad6   : > { %v3692_v27 = vadd.f32 %v3690_v50, %v3669_v24  ;;  %v7543_v32 = vpop.f32.mrb[59].mxu0 }
0x1ad8   : > { %v9530_v34 = vpack.c.bf16 %v3692_v27, %v3691_v25 }
0x1ada   : > { %v3831_v37 = vmul.bf16 %v9530_v34, %v9006_v36 }
0x1adc   : > { %v3839_v14 = vand.u32 %v9533_v35, %v3831_v37 }
0x1ade   : > { %7557 = vmatpush3.bf16.msra.mxu1 %v3839_v14 }
0x1adf   : > { %7562 = vmatprep.subr.bf16.mxu1 %v8712_v1 }
0x1b8e   : > { %v3729_v40 = vpop.f32.mrb[56].mxu1  ;;  %v3799_v41 = vpop.f32.mrb[60].mxu0 }
0x1b8f   : > { %v3806_v19 = vmul.f32 0.35355338, %v3799_v41  ;;  %v7548_v43 = vpop.f32.mrb[57].mxu1  ;;  %v7554_v45 = vpop.f32.mrb[61].mxu0  ;;  %v3736_v48 = vmul.f32 0.35355338, %v3729_v40 }
0x1b90   : > { %v3732_v47 = vpop.f32.mrb[58].mxu1  ;;  %v3802_v42 = vpop.f32.mrb[62].mxu0 }
0x1b91   : > { %v3807_v23 = vmul.f32 0.35355338, %v3802_v42  ;;  %v7549_v46 = vpop.f32.mrb[59].mxu1  ;;  %v7555_v22 = vpop.f32.mrb[63].mxu0  ;;  %v3808_v49 = vsel %vm3738_vm4, %v3806_v19, -inf  ;;  %v3739_v60 = vsel %vm3738_vm4, %v3736_v48, -inf }
0x1b92   : > { %v3737_v54 = vmul.f32 0.35355338, %v3732_v47  ;;  %3809 = vmax.xlane.f32.xlu0 %v3808_v49 }
0x1b93   : > { %v3811_v55 = vsel %vm3742_vm5, %v3807_v23, -inf }
0x1b94   : > { %3812 = vmax.xlane.f32.xlu1 %v3811_v55  ;;  %v3743_v29 = vsel %vm3742_vm5, %v3737_v54, -inf }
0x1b96   : > { %v3964_v59 = vpop.f32.mrb[64].mxu0  ;;  %3740 = vmax.xlane.f32.xlu0 %v3739_v60 }
0x1b97   : > { %v3971_v26 = vmul.f32 0.35355338, %v3964_v59  ;;  %v7572_v63 = vpop.f32.mrb[65].mxu0 }
0x1b98   : > { %v3967_v0 = vpop.f32.mrb[66].mxu0  ;;  %3744 = vmax.xlane.f32.xlu1 %v3743_v29 }
0x1b99   : > { %v3972_v4 = vmul.f32 0.35355338, %v3967_v0  ;;  %v7573_v9 = vpop.f32.mrb[67].mxu0  ;;  %v3973_v11 = vsel %vm3738_vm4, %v3971_v26, -inf }
0x1b9a   : > { %3974 = vmax.xlane.f32.xlu0 %v3973_v11 }
0x1b9b   : > { %v3976_v58 = vsel %vm3742_vm5, %v3972_v4, -inf }
0x1b9c   : > { %3977 = vmax.xlane.f32.xlu1 %v3976_v58 }
0x1b9e   : > { %v4081_v10 = vpop.f32.mrb[68].mxu0 }
0x1b9f   : > { %v4088_v12 = vmul.f32 0.35355338, %v4081_v10  ;;  %v7584_v28 = vpop.f32.mrb[69].mxu0 }
0x1ba0   : > { %v4084_v53 = vpop.f32.mrb[70].mxu0 }
0x1ba1   : > { %v4089_v16 = vmul.f32 0.35355338, %v4084_v53  ;;  %v7585_v17 = vpop.f32.mrb[71].mxu0  ;;  %v4090_v13 = vsel %vm3738_vm4, %v4088_v12, -inf }
0x1ba2   : > { %4091 = vmax.xlane.f32.xlu0 %v4090_v13  ;;  %v8233_v17 = vld [vmem:[#allocation2 + $0x20c] ss:$16 sps:$4 sm:$0xff]  }
0x1ba3   : > { %v4093_v18 = vsel %vm3742_vm5, %v4089_v16, -inf  ;;  %7593 = vmatpush3.bf16.msra.mxu0 %v8233_v17  ;;  %v8234_v13 = vld [vmem:[#allocation2 + $0x22c] ss:$16 sps:$4 sm:$0xff]  }
0x1ba4   : > { %4094 = vmax.xlane.f32.xlu1 %v4093_v18  ;;  %7594 = vmatprep.subr.bf16.mxu0 %v8712_v1  ;;  %v8235_v18 = vld [vmem:[#allocation2 + $0x24c] ss:$16 sps:$4 sm:$0xff]  }
0x1ba7   : > { %7595 = vmatpush3.bf16.msra.mxu0 %v8234_v13 }
0x1ba8   : > { %7596 = vmatprep.subr.bf16.mxu0 %v8712_v1 }
0x1bab   : > { %7597 = vmatpush3.bf16.msra.mxu0 %v8235_v18 }
0x1bac   : > { %7598 = vmatprep.subr.bf16.mxu0 %v8712_v1 }
0x1c1f   : > { %v3810_v50 = vpop.xlane.xlu0 %3809 }
0x1c20   : > { %v3814_v20 = vsub.f32 %v3806_v19, %v3810_v50  ;;  %v8236_v50 = vld [vmem:[#allocation2 + $0x26c] ss:$16 sps:$4 sm:$0xff]  }
0x1c21   : > { %v3813_v21 = vpop.xlane.xlu1 %3812  ;;  %7599 = vmatpush3.bf16.msra.mxu0 %v8236_v50 }
0x1c22   : > { %v3815_v24 = vsub.f32 %v3807_v23, %v3813_v21  ;;  %v3816_v25 = vmul.f32 1.442695, %v3814_v20  ;;  %v8237_v20 = vld [vmem:[#allocation2 + $0x28c] ss:$16 sps:$4 sm:$0xff]   ;;  %7600 = vmatprep.subr.bf16.mxu0 %v8712_v1 }
0x1c23   : > { %v3741_v32 = vpop.xlane.xlu0 %3740  ;;  %v8238_v21 = vld [vmem:[#allocation2 + $0x2ac] ss:$16 sps:$4 sm:$0xff]  }
0x1c24   : > { %v3818_v27 = vmul.f32 1.442695, %v3815_v24  ;;  %8485 = vpow2.f32 %v3816_v25  ;;  %v3746_v62 = vsub.f32 %v3736_v48, %v3741_v32  ;;  %v8239_v24 = vld [vmem:[#allocation2 + $0x2cc] ss:$16 sps:$4 sm:$0xff]  }
0x1c25   : > { %v3745_v33 = vpop.xlane.xlu1 %3744  ;;  %7601 = vmatpush3.bf16.msra.mxu0 %v8237_v20 }
0x1c26   : > { %8487 = vpow2.f32 %v3818_v27  ;;  %v3747_v37 = vsub.f32 %v3737_v54, %v3745_v33  ;;  %v3748_v14 = vmul.f32 1.442695, %v3746_v62  ;;  %7602 = vmatprep.subr.bf16.mxu0 %v8712_v1 }
0x1c27   : > { %v3975_v41 = vpop.xlane.xlu0 %3974 }
0x1c28   : > { %v3750_v40 = vmul.f32 1.442695, %v3747_v37  ;;  %8489 = vpow2.f32 %v3748_v14  ;;  %v3979_v43 = vsub.f32 %v3971_v26, %v3975_v41  ;;  %v3763_v14 = vmul.bf16 %v9530_v34, %v8994_v30 }
0x1c29   : > { %v3978_v45 = vpop.xlane.xlu1 %3977  ;;  %7603 = vmatpush3.bf16.msra.mxu0 %v8238_v21 }
0x1c2a   : > { %8491 = vpow2.f32 %v3750_v40  ;;  %v3980_v47 = vsub.f32 %v3972_v4, %v3978_v45  ;;  %v3981_v42 = vmul.f32 1.442695, %v3979_v43  ;;  %7604 = vmatprep.subr.bf16.mxu0 %v8712_v1  ;;  %v3886_v45 = vand.u32 %v9533_v35, %v3763_v14 }
0x1c2c   : > { %v3983_v19 = vmul.f32 1.442695, %v3980_v47  ;;  %8493 = vpow2.f32 %v3981_v42 }
0x1c2d   : > { %7605 = vmatpush3.bf16.msra.mxu0 %v8239_v24 }
0x1c2e   : > { %8495 = vpow2.f32 %v3983_v19  ;;  %v9547_v23 = vpop.eup %8485  ;;  %7606 = vmatprep.subr.bf16.mxu0 %v8712_v1 }
0x1c2f   : > { %v4092_v46 = vpop.xlane.xlu0 %4091  ;;  %v3820_v49 = vsel %vm3738_vm4, %v9547_v23, 0.0 }
0x1c30   : > { %v9549_v22 = vpop.eup %8487  ;;  %v4096_v48 = vsub.f32 %v4088_v12, %v4092_v46  ;;  %3821 = vadd.xlane.f32.xlu0 %v3820_v49 }
0x1c31   : > { %v4095_v54 = vpop.xlane.xlu1 %4094  ;;  %v3823_v55 = vsel %vm3742_vm5, %v9549_v22, 0.0 }
0x1c32   : > { %v4098_v59 = vmul.f32 1.442695, %v4096_v48  ;;  %v4097_v60 = vsub.f32 %v4089_v16, %v4095_v54  ;;  %3824 = vadd.xlane.f32.xlu1 %v3823_v55  ;;  %v9555_v26 = vpop.eup %8489 }
0x1c33   : > { %v3752_v0 = vsel %vm3738_vm4, %v9555_v26, 0.0 }
0x1c34   : > { %v9557_v63 = vpop.eup %8491  ;;  %8497 = vpow2.f32 %v4098_v59  ;;  %v4100_v29 = vmul.f32 1.442695, %v4097_v60  ;;  %3753 = vadd.xlane.f32.xlu0 %v3752_v0 }
0x1c35   : > { %v3755_v4 = vsel %vm3742_vm5, %v9557_v63, 0.0 }
0x1c36   : > { %8499 = vpow2.f32 %v4100_v29  ;;  %3756 = vadd.xlane.f32.xlu1 %v3755_v4  ;;  %v9563_v9 = vpop.eup %8493 }
0x1c37   : > { %v3985_v58 = vsel %vm3738_vm4, %v9563_v9, 0.0 }
0x1c38   : > { %v9565_v11 = vpop.eup %8495  ;;  %3986 = vadd.xlane.f32.xlu0 %v3985_v58 }
0x1c39   : > { %v3988_v10 = vsel %vm3742_vm5, %v9565_v11, 0.0 }
0x1c3a   : > { %3989 = vadd.xlane.f32.xlu1 %v3988_v10 }
0x1c3e   : > { %v9571_v12 = vpop.eup %8497 }
0x1c3f   : > { %v4102_v28 = vsel %vm3738_vm4, %v9571_v12, 0.0 }
0x1c40   : > { %v9575_v53 = vpop.eup %8499  ;;  %4103 = vadd.xlane.f32.xlu0 %v4102_v28 }
0x1c41   : > { %v4105_v16 = vsel %vm3742_vm5, %v9575_v53, 0.0 }
0x1c42   : > { %4106 = vadd.xlane.f32.xlu1 %v4105_v16 }
0x1cbd   : > { %v3822_v25 = vpop.xlane.xlu0 %3821 }
0x1cbe   : > { %8501 = vrcp.f32 %v3822_v25 }
0x1cbf   : > { %v3825_v27 = vpop.xlane.xlu1 %3824 }
0x1cc0   : > { %8503 = vrcp.f32 %v3825_v27 }
0x1cc1   : > { %v3754_v62 = vpop.xlane.xlu0 %3753 }
0x1cc3   : > { %v3757_v32 = vpop.xlane.xlu1 %3756 }
0x1cc4   : > { %8505 = vrcp.f32 %v3757_v32 }
0x1cc5   : > { %8507 = vrcp.f32 %v3754_v62  ;;  %v3987_v19 = vpop.xlane.xlu0 %3986 }
0x1cc7   : > { %v3990_v47 = vpop.xlane.xlu1 %3989 }
0x1cc8   : > { %v8502_v33 = vpop.eup %8501  ;;  %8509 = vrcp.f32 %v3990_v47 }
0x1cc9   : > { %v3828_v40 = vmul.f32 %v8502_v33, %v9547_v23  ;;  %8511 = vrcp.f32 %v3987_v19 }
0x1cca   : > { %v8504_v37 = vpop.eup %8503 }
0x1ccb   : > { %v3829_v41 = vmul.f32 %v8504_v37, %v9549_v22  ;;  %v3996_v22 = vmul.bf16 %v9530_v34, %v8997_v31 }
0x1ccd   : > { %v3830_v43 = vpack.c.bf16 %v3829_v41, %v3828_v40  ;;  %v4001_v54 = vand.u32 %v3996_v22, %v9533_v35  ;;  %v4104_v60 = vpop.xlane.xlu0 %4103 }
0x1cce   : > { %v8506_v42 = vpop.eup %8505 }
0x1ccf   : > { %7559 = vmatmul.mubr.msk.bf16.vlgmr.msra.gmra.mrb[60].mxu1 %vm3738_vm4, %v3830_v43  ;;  %v8508_v46 = vpop.eup %8507  ;;  %v3761_v23 = vmul.f32 %v8506_v42, %v9557_v63  ;;  %v4107_v55 = vpop.xlane.xlu1 %4106 }
0x1cd0   : > { %7563 = vmatpush3.bf16.msra.mxu1 %v3886_v45  ;;  %7564 = vmatprep.mubr.msk.bf16.mxu1 %vm8714_vm2, %v8712_v1  ;;  %v3760_v48 = vmul.f32 %v8508_v46, %v9555_v26  ;;  %8513 = vrcp.f32 %v4107_v55  ;;  %v4113_v26 = vmul.bf16 %v9530_v34, %v9012_v2  ;;  %v8244_v55 = vld [vmem:[%s10022_s5 + $0x98] sm:$0xff]  }
0x1cd1   : > { %7574 = vmatprep.subr.bf16.mxu1 %v8712_v1  ;;  %8515 = vrcp.f32 %v4104_v60  ;;  %v8246_v60 = vld [vmem:[%s10022_s5 + $0xa8] sm:$0xff]  }
0x1cd2   : > { %v3762_v49 = vpack.c.bf16 %v3761_v23, %v3760_v48  ;;  %v8510_v59 = vpop.eup %8509  ;;  %v4118_v58 = vand.u32 %v4113_v26, %v9533_v35 }
0x1cd3   : > { %v8512_v63 = vpop.eup %8511  ;;  %v3994_v29 = vmul.f32 %v8510_v59, %v9565_v11  ;;  %v8245_v59 = vld [vmem:[%s10022_s5 + $0xa0] sm:$0xff]  }
0x1cd4   : > { %v3993_v0 = vmul.f32 %v8512_v63, %v9563_v9  ;;  %v8240_v9 = vld [vmem:[#allocation2 + $0x2ec] ss:$16 sps:$4 sm:$0xff]   ;;  %v8247_v63 = vld [vmem:[%s10022_s5 + $0xb0] sm:$0xff]  }
0x1cd5   : > { %7607 = vmatpush3.bf16.msra.mxu0 %v8240_v9 }
0x1cd6   : > { %v3995_v4 = vpack.c.bf16 %v3994_v29, %v3993_v0  ;;  %7632 = vmatprep.subr.bf16.mxu0 %v8712_v1  ;;  %v8248_v29 = vld [vmem:[%s10022_s5 + $0xb8] sm:$0xff]  }
0x1cda   : > { %v8514_v10 = vpop.eup %8513 }
0x1cdb   : > { %7565 = vmatmul.mubr.msk.bf16.vlgmr.msra.gmra.mrb[60].mxu1 %vm3738_vm4, %v3762_v49  ;;  %v8516_v28 = vpop.eup %8515  ;;  %v4111_v11 = vmul.f32 %v8514_v10, %v9575_v53  ;;  %v8242_v49 = vld [vmem:[%s10022_s5 + $0x88] sm:$0xff]  }
0x1cdc   : > { %7575 = vmatpush3.bf16.msra.mxu1 %v4001_v54  ;;  %7576 = vmatprep.mubr.msk.bf16.mxu1 %vm8714_vm2, %v8712_v1  ;;  %v4110_v16 = vmul.f32 %v8516_v28, %v9571_v12  ;;  %v4242_v12 = vrot.slane %v9477_v15, %v9077_v8  ;;  %v8243_v54 = vld [vmem:[%s10022_s5 + $0x90] sm:$0xff]  }
0x1cdd   : > { %7586 = vmatprep.subr.bf16.mxu1 %v8712_v1 }
0x1cde   : > { %v4112_v34 = vpack.c.bf16 %v4111_v11, %v4110_v16 }
0x1ce7   : > { %7577 = vmatmul.mubr.msk.bf16.vlgmr.msra.gmra.mrb[60].mxu1 %vm3738_vm4, %v3995_v4 }
0x1ce8   : > { %7587 = vmatpush3.bf16.msra.mxu1 %v4118_v58  ;;  %7588 = vmatprep.mubr.msk.bf16.mxu1 %vm8714_vm2, %v8712_v1 }
0x1ce9   : > { %7612 = vmatprep.subr.bf16.mxu1 %v8712_v1 }
0x1cf3   : > { %7589 = vmatmul.mubr.msk.bf16.vlgmr.msra.gmra.mrb[60].mxu1 %vm3738_vm4, %v4112_v34  ;;  %v4276_v34 = vrot.slane %v9477_v15, %v9126_v56 }
0x1cf4   : > { %7628 = vmatprep.mubr.msk.bf16.mxu1 %vm8714_vm2, %v8712_v1 }
0x1dc6   : > { %v4154_v17 = vpop.f32.mrb[60].mxu1 }
0x1dc7   : > { %v7590_v13 = vpop.f32.mrb[61].mxu1 }
0x1dc8   : > { %v4157_v18 = vpop.f32.mrb[62].mxu1 }
0x1dc9   : > { %v4163_v50 = vpack.c.bf16 %v4157_v18, %v4154_v17  ;;  %v7591_v20 = vpop.f32.mrb[63].mxu1  ;;  %v4282_v18 = vrot.slane %v9477_v15, %v9131_v61  ;;  %v8252_v15 = vld [vmem:[#allocation4 + $0x98] sm:$0xff]  }
0x1dcb   : > { %7609 = vmatmul.mubr.bf16.vlgmr.msra.gmra.mrb[72].mxu0 %v4163_v50 }
0x1dcc   : > { %7648 = vmatprep.mubr.msk.bf16.mxu0 %vm8714_vm2, %v8712_v1 }
0x1e9e   : > { %v4230_v53 = vpop.f32.mrb[72].mxu0 }
0x1e9f   : > { %v4237_v21 = vadd.f32 %v4230_v53, %v9405_v44  ;;  %v7610_v24 = vpop.f32.mrb[73].mxu0  ;;  %v8241_v44 = vld [vmem:[%s10022_s5 + $0x80] sm:$0xff]  }
0x1ea0   : > { %v4233_v25 = vpop.f32.mrb[74].mxu0  ;;  %7613 = vmatpush3.bf16.msra.mxu1 %v8241_v44  ;;  %v8250_v24 = vld [vmem:[#allocation4 + $0x88] sm:$0xff]   ;;  %v8262_v44 = vld [vmem:[#allocation4 + $0xb8] sm:$0xff]  }
0x1ea1   : > { %v9624_v27 = vadd.f32 %v4242_v12, %v4237_v21  ;;  %v4238_v32 = vadd.f32 %v4233_v25, %v9443_v51  ;;  %v7611_v62 = vpop.f32.mrb[75].mxu0  ;;  %7614 = vmatprep.subr.bf16.mxu1 %v8712_v1  ;;  %v8249_v21 = vld [vmem:[#allocation4 + $0x80] sm:$0xff]   ;;  %v8251_v25 = vld [vmem:[#allocation4 + $0x90] sm:$0xff]  }
0x1ea2   : > { %7633 = vmatpush3.bf16.msra.mxu0 %v8249_v21  ;;  %v8254_v62 = vld [vmem:[#allocation6 + $0x140] ss:$20 sps:$4 sm:$0xff]  }
0x1ea3   : > { %v4244_v33 = vadd.f32 %v4242_v12, %v4238_v32  ;;  %v4245_v37 = vmul.f32 %v8907_v3, %v9624_v27  ;;  %7634 = vmatprep.subr.bf16.mxu0 %v8712_v1  ;;  %v8253_v32 = vld [vmem:[#allocation4 + $0xa0] sm:$0xff]  }
0x1ea4   : > { %7615 = vmatpush3.bf16.msra.mxu1 %v8242_v49  ;;  %v8293_v49 = vld [vmem:[#allocation6 + $0x238] ss:$20 sps:$4 sm:$0xff]   ;;  %v8297_v21 = vld [vmem:[#allocation6 + $0x260] ss:$20 sps:$4 sm:$0xff]  }
0x1ea5   : > { %4247 = vadd.xlane.f32.xlu1 %v4245_v37  ;;  %v4246_v14 = vmul.f32 %v8907_v3, %v4244_v33  ;;  %7616 = vmatprep.subr.bf16.mxu1 %v8712_v1  ;;  %v8256_v33 = vld [vmem:[#allocation4 + $0xa8] sm:$0xff]  }
0x1ea6   : > { %7635 = vmatpush3.bf16.msra.mxu0 %v8250_v24  ;;  %v8300_v24 = vld [vmem:[#allocation6 + $0x1bc] ss:$20 sps:$4 sm:$0xff]  }
0x1ea7   : > { %v4249_v40 = vsel %vm3423_vm1, %v4246_v14, 0.0  ;;  %7636 = vmatprep.subr.bf16.mxu0 %v8712_v1 }
0x1ea8   : > { %4250 = vadd.xlane.f32.xlu0 %v4249_v40  ;;  %7617 = vmatpush3.bf16.msra.mxu1 %v8243_v54  ;;  %v8260_v40 = vld [vmem:[#allocation6 + $0x190] ss:$20 sps:$4 sm:$0xff]  }
0x1ea9   : > { %7618 = vmatprep.subr.bf16.mxu1 %v8712_v1 }
0x1eaa   : > { %7637 = vmatpush3.bf16.msra.mxu0 %v8251_v25  ;;  %v8301_v25 = vld [vmem:[#allocation6 + $0x1e4] ss:$20 sps:$4 sm:$0xff]  }
0x1eab   : > { %7638 = vmatprep.subr.bf16.mxu0 %v8712_v1 }
0x1eac   : > { %7619 = vmatpush3.bf16.msra.mxu1 %v8244_v55 }
0x1ead   : > { %7620 = vmatprep.subr.bf16.mxu1 %v8712_v1 }
0x1eae   : > { %7639 = vmatpush3.bf16.msra.mxu0 %v8252_v15  ;;  %v8302_v15 = vld [vmem:[#allocation6 + $0x20c] ss:$20 sps:$4 sm:$0xff]  }
0x1eaf   : > { %7640 = vmatprep.subr.bf16.mxu0 %v8712_v1 }
0x1eb0   : > { %7621 = vmatpush3.bf16.msra.mxu1 %v8245_v59 }
0x1eb1   : > { %7622 = vmatprep.subr.bf16.mxu1 %v8712_v1 }
0x1eb2   : > { %7641 = vmatpush3.bf16.msra.mxu0 %v8253_v32  ;;  %v8303_v32 = vld [vmem:[#allocation6 + $0x234] ss:$20 sps:$4 sm:$0xff]  }
0x1eb3   : > { %7642 = vmatprep.subr.bf16.mxu0 %v8712_v1 }
0x1eb4   : > { %7623 = vmatpush3.bf16.msra.mxu1 %v8246_v60 }
0x1eb5   : > { %7624 = vmatprep.subr.bf16.mxu1 %v8712_v1 }
0x1eb6   : > { %7643 = vmatpush3.bf16.msra.mxu0 %v8256_v33 }
0x1eb7   : > { %7644 = vmatprep.subr.bf16.mxu0 %v8712_v1 }
0x1eb8   : > { %7625 = vmatpush3.bf16.msra.mxu1 %v8247_v63 }
0x1eb9   : > { %7626 = vmatprep.subr.bf16.mxu1 %v8712_v1 }
0x1ebc   : > { %7627 = vmatpush3.bf16.msra.mxu1 %v8248_v29 }
0x1ebd   : > { %7652 = vmatprep.subr.bf16.mxu1 %v8712_v1 }
0x1f32   : > { %v4248_v41 = vpop.xlane.xlu1 %4247 }
0x1f33   : > { %v4252_v51 = vmul.f32 0.03125, %v4248_v41  ;;  %v8263_v41 = vld [vmem:[#allocation6 + $0x1b8] ss:$20 sps:$4 sm:$0xff]  }
0x1f35   : > { %v4254_v43 = vsub.f32 %v4245_v37, %v4252_v51  ;;  %v4251_v45 = vpop.xlane.xlu0 %4250  ;;  %v8257_v37 = vld [vmem:[#allocation6 + $0x168] ss:$20 sps:$4 sm:$0xff]   ;;  %v8265_v51 = vld [vmem:[#allocation6 + $0x1e0] ss:$20 sps:$4 sm:$0xff]  }
0x1f36   : > { %v4253_v47 = vmul.f32 0.03125, %v4251_v45  ;;  %v8269_v45 = vld [vmem:[#allocation6 + $0x230] ss:$20 sps:$4 sm:$0xff]  }
0x1f37   : > { %v4256_v42 = vmul.f32 %v8907_v3, %v4254_v43  ;;  %v8267_v43 = vld [vmem:[#allocation6 + $0x208] ss:$20 sps:$4 sm:$0xff]  }
0x1f38   : > { %v4255_v19 = vsub.f32 %v4246_v14, %v4253_v47  ;;  %v8259_v14 = vld [vmem:[#allocation4 + $0xb0] sm:$0xff]   ;;  %v8271_v47 = vld [vmem:[#allocation6 + $0x258] ss:$20 sps:$4 sm:$0xff]  }
0x1f39   : > { %v4258_v46 = vmul.f32 %v4256_v42, %v4256_v42  ;;  %7645 = vmatpush3.bf16.msra.mxu0 %v8259_v14 }
0x1f3a   : > { %v4257_v23 = vmul.f32 %v8907_v3, %v4255_v19  ;;  %7646 = vmatprep.subr.bf16.mxu0 %v8712_v1  ;;  %v8276_v19 = vld [vmem:[#allocation6 + $0x170] ss:$20 sps:$4 sm:$0xff]  }
0x1f3b   : > { %4260 = vadd.xlane.f32.xlu0 %v4258_v46  ;;  %v8279_v46 = vld [vmem:[#allocation6 + $0x198] ss:$20 sps:$4 sm:$0xff]  }
0x1f3c   : > { %v4259_v22 = vmul.f32 %v4257_v23, %v4257_v23 }
0x1f3d   : > { %7647 = vmatpush3.bf16.msra.mxu0 %v8262_v44 }
0x1f3e   : > { %v4262_v48 = vsel %vm3423_vm1, %v4259_v22, 0.0  ;;  %7672 = vmatprep.subr.bf16.mxu0 %v8712_v1  ;;  %v8285_v22 = vld [vmem:[#allocation6 + $0x1e8] ss:$20 sps:$4 sm:$0xff]  }
0x1f3f   : > { %4263 = vadd.xlane.f32.xlu1 %v4262_v48  ;;  %v8289_v48 = vld [vmem:[#allocation6 + $0x210] ss:$20 sps:$4 sm:$0xff]  }
0x1fc8   : > { %v4261_v26 = vpop.xlane.xlu0 %4260 }
0x1fc9   : > { %v4265_v0 = vmul.f32 0.03125, %v4261_v26 }
0x1fcb   : > { %v4267_v4 = vadd.f32 1e-05, %v4265_v0 }
0x1fcc   : > { %v4264_v58 = vpop.xlane.xlu1 %4263 }
0x1fcd   : > { %8517 = vrsqrt.f32 %v4267_v4  ;;  %v4266_v10 = vmul.f32 0.03125, %v4264_v58 }
0x1fcf   : > { %v4268_v28 = vadd.f32 1e-05, %v4266_v10 }
0x1fd1   : > { %8519 = vrsqrt.f32 %v4268_v28 }
0x1fd7   : > { %v8518_v11 = vpop.eup %8517 }
0x1fd8   : > { %v4271_v16 = vmul.f32 %v8518_v11, %v4256_v42  ;;  %v8273_v42 = vld [vmem:[#allocation6 + $0x148] ss:$20 sps:$4 sm:$0xff]  }
0x1fda   : > { %v4277_v13 = vmul.f32 %v4276_v34, %v4271_v16 }
0x1fdb   : > { %v8520_v9 = vpop.eup %8519 }
0x1fdc   : > { %v4272_v17 = vmul.f32 %v8520_v9, %v4257_v23  ;;  %v4283_v20 = vadd.f32 %v4282_v18, %v4277_v13  ;;  %v8282_v23 = vld [vmem:[#allocation6 + $0x1c0] ss:$20 sps:$4 sm:$0xff]  }
0x1fde   : > { %v4278_v50 = vmul.f32 %v4276_v34, %v4272_v17 }
0x1fe0   : > { %v4284_v12 = vadd.f32 %v4282_v18, %v4278_v50  ;;  %v8288_v50 = vld [vmem:[#allocation6 + $0x144] ss:$20 sps:$4 sm:$0xff]  }
0x1fe2   : > { %v4285_v53 = vpack.c.bf16 %v4284_v12, %v4283_v20  ;;  %v8292_v12 = vld [vmem:[#allocation6 + $0x16c] ss:$20 sps:$4 sm:$0xff]  }
0x1fe4   : > { %7629 = vmatmul.mubr.bf16.vlgmr.msra.gmra.mrb[64].mxu1 %v4285_v53  ;;  %v8296_v53 = vld [vmem:[#allocation6 + $0x194] ss:$20 sps:$4 sm:$0xff]  }
0x1fe5   : > { %7668 = vmatprep.mubr.msk.bf16.mxu1 %vm8714_vm2, %v8712_v1  ;;  %7653 = vmatpush3.bf16.msra.mxu1 %v8254_v62  ;;  %v9706_v62 = vld [vmem:[%s10026_s9 + $0x8] sm:$0x1f] }
0x1fe6   : > { %7654 = vmatprep.subr.bf16.mxu1 %v8712_v1  ;;  %v4581_v33 = vrot.slane %v9706_v62, %v8949_v52 }
0x1fe9   : > { %7655 = vmatpush3.bf16.msra.mxu1 %v8257_v37  ;;  %v8304_v37 = vld [vmem:[#allocation6 + $0x25c] ss:$20 sps:$4 sm:$0xff]  }
0x1fea   : > { %7656 = vmatprep.subr.bf16.mxu1 %v8712_v1 }
0x1fed   : > { %7657 = vmatpush3.bf16.msra.mxu1 %v8260_v40 }
0x1fee   : > { %7658 = vmatprep.subr.bf16.mxu1 %v8712_v1 }
0x1ff1   : > { %7659 = vmatpush3.bf16.msra.mxu1 %v8263_v41 }
0x1ff2   : > { %7660 = vmatprep.subr.bf16.mxu1 %v8712_v1 }
0x1ff5   : > { %7661 = vmatpush3.bf16.msra.mxu1 %v8265_v51 }
0x1ff6   : > { %7662 = vmatprep.subr.bf16.mxu1 %v8712_v1 }
0x1ff9   : > { %7663 = vmatpush3.bf16.msra.mxu1 %v8267_v43 }
0x1ffa   : > { %7664 = vmatprep.subr.bf16.mxu1 %v8712_v1 }
0x1ffd   : > { %7665 = vmatpush3.bf16.msra.mxu1 %v8269_v45 }
0x1ffe   : > { %7666 = vmatprep.subr.bf16.mxu1 %v8712_v1 }
0x2001   : > { %7667 = vmatpush3.bf16.msra.mxu1 %v8271_v47 }
0x2002   : > { %7692 = vmatprep.subr.bf16.mxu1 %v8273_v42 }
0x2004   : > { %7669 = vmatmul.mubr.bf16.vlgmr.msra.gmra.mrb[68].mxu1 %v9362_v38  ;;  %v9691_v38 = vld [vmem:[%s10024_s7 + $0x28] sm:$0x3] }
0x2005   : > { %7693 = vmatpush3.bf16.msra.mxu1 %v8273_v42  ;;  %v4306_v54 = vrot.slane %v9691_v38, %v8949_v52  ;;  %v4522_v45 = vrot.slane %v9691_v38, %v8960_v57 }
0x2006   : > { %7694 = vmatprep.subr.bf16.mxu1 %v8276_v19 }
0x2009   : > { %7695 = vmatpush3.bf16.msra.mxu1 %v8276_v19 }
0x200a   : > { %7696 = vmatprep.subr.bf16.mxu1 %v8279_v46 }
0x200d   : > { %7697 = vmatpush3.bf16.msra.mxu1 %v8279_v46  ;;  %v6720_v46 = vld [vmem:[%s10020_s3 + $0x18] sm:$0x3] }
0x200e   : > { %7698 = vmatprep.subr.bf16.mxu1 %v8282_v23 }
0x2011   : > { %7699 = vmatpush3.bf16.msra.mxu1 %v8282_v23 }
0x2012   : > { %7700 = vmatprep.subr.bf16.mxu1 %v8285_v22 }
0x2015   : > { %7701 = vmatpush3.bf16.msra.mxu1 %v8285_v22  ;;  %v6719_v22 = vld [vmem:[%s10020_s3 + $0x10] sm:$0xff] }
0x2016   : > { %7702 = vmatprep.subr.bf16.mxu1 %v8289_v48 }
0x2019   : > { %7703 = vmatpush3.bf16.msra.mxu1 %v8289_v48 }
0x201a   : > { %7704 = vmatprep.subr.bf16.mxu1 %v8293_v49 }
0x201d   : > { %7705 = vmatpush3.bf16.msra.mxu1 %v8293_v49 }
0x201e   : > { %7706 = vmatprep.subr.bf16.mxu1 %v8297_v21 }
0x2021   : > { %7707 = vmatpush3.bf16.msra.mxu1 %v8297_v21 }
0x2022   : > { %7720 = vmatprep.subr.bf16.mxu1 %v8712_v1 }
0x20b7   : > { %v4389_v55 = vpop.f32.mrb[64].mxu1 }
0x20b8   : > { %v4390_v59 = vadd.f32 %v4389_v55, %v4306_v54  ;;  %v7630_v60 = vpop.f32.mrb[65].mxu1 }
0x20b9   : > { %v4392_v63 = vpop.f32.mrb[66].mxu1 }
0x20ba   : > { %v6709_v29 = vmul.f32 -1.702, %v4390_v59  ;;  %v4393_v26 = vadd.f32 %v4392_v63, %v4306_v54  ;;  %v7631_v0 = vpop.f32.mrb[67].mxu1  ;;  %v4672_v54 = vpack.c.bf16 %v6720_v46, %v6720_v46 }
0x20bc   : > { %v4400_v4 = vmul.f32 1.442695, %v6709_v29  ;;  %v6710_v58 = vmul.f32 -1.702, %v4393_v26 }
0x20be   : > { %8521 = vpow2.f32 %v4400_v4  ;;  %v4402_v10 = vmul.f32 1.442695, %v6710_v58 }
0x20c0   : > { %8523 = vpow2.f32 %v4402_v10 }
0x20c8   : > { %v8522_v28 = vpop.eup %8521 }
0x20c9   : > { %v4404_v11 = vadd.f32 1.0, %v8522_v28  ;;  %v8275_v28 = vld [vmem:[#allocation6 + $0x14c] ss:$20 sps:$4 sm:$0xff]  }
0x20ca   : > { %v8524_v16 = vpop.eup %8523 }
0x20cb   : > { %8525 = vrcp.f32 %v4404_v11  ;;  %v4405_v34 = vadd.f32 1.0, %v8524_v16  ;;  %v8278_v11 = vld [vmem:[#allocation6 + $0x174] ss:$20 sps:$4 sm:$0xff]   ;;  %v8281_v16 = vld [vmem:[#allocation6 + $0x19c] ss:$20 sps:$4 sm:$0xff]  }
0x20cd   : > { %8527 = vrcp.f32 %v4405_v34  ;;  %v8284_v34 = vld [vmem:[#allocation6 + $0x1c4] ss:$20 sps:$4 sm:$0xff]  }
0x20d5   : > { %v8526_v9 = vpop.eup %8525 }
0x20d6   : > { %v4410_v13 = vmul.f32 %v8526_v9, %v4390_v59  ;;  %v8287_v9 = vld [vmem:[#allocation6 + $0x1ec] ss:$20 sps:$4 sm:$0xff]  }
0x20d7   : > { %v8528_v17 = vpop.eup %8527  ;;  %v4664_v14 = vpop.f32.mrb[68].mxu1 }
0x20d8   : > { %v4411_v18 = vmul.f32 %v8528_v17, %v4393_v26  ;;  %v9712_v40 = vadd.f32 %v4664_v14, %v4581_v33  ;;  %v7670_v44 = vpop.f32.mrb[69].mxu1  ;;  %v8291_v17 = vld [vmem:[#allocation6 + $0x214] ss:$20 sps:$4 sm:$0xff]   ;;  %v4901_v14 = vsel %vm3129_vm0, %v4672_v54, 0 }
0x20d9   : > { %v4667_v41 = vpop.f32.mrb[70].mxu1 }
0x20da   : > { %v4412_v20 = vpack.c.bf16 %v4411_v18, %v4410_v13  ;;  %v4670_v51 = vpack.c.bf16 %v9712_v40, %v9712_v40  ;;  %v7671_v43 = vpop.f32.mrb[71].mxu1  ;;  %v8295_v13 = vld [vmem:[#allocation6 + $0x23c] ss:$20 sps:$4 sm:$0xff]   ;;  %v8299_v18 = vld [vmem:[#allocation6 + $0x264] ss:$20 sps:$4 sm:$0xff]  }
0x20dc   : > { %7649 = vmatmul.mubr.bf16.vlgmr.msra.gmra.mrb[76].mxu0 %v4412_v20 }
0x20dd   : > { %7673 = vmatpush3.bf16.msra.mxu0 %v8288_v50  ;;  %7688 = vmatprep.mubr.msk.bf16.mxu0 %vm8714_vm2, %v8712_v1 }
0x20de   : > { %7674 = vmatprep.subr.bf16.mxu0 %v8712_v1 }
0x20e1   : > { %7675 = vmatpush3.bf16.msra.mxu0 %v8292_v12 }
0x20e2   : > { %7676 = vmatprep.subr.bf16.mxu0 %v8712_v1 }
0x20e5   : > { %7677 = vmatpush3.bf16.msra.mxu0 %v8296_v53 }
0x20e6   : > { %7678 = vmatprep.subr.bf16.mxu0 %v8712_v1 }
0x20e9   : > { %7679 = vmatpush3.bf16.msra.mxu0 %v8300_v24 }
0x20ea   : > { %7680 = vmatprep.subr.bf16.mxu0 %v8712_v1 }
0x20ed   : > { %7681 = vmatpush3.bf16.msra.mxu0 %v8301_v25 }
0x20ee   : > { %7682 = vmatprep.subr.bf16.mxu0 %v8712_v1 }
0x20f1   : > { %7683 = vmatpush3.bf16.msra.mxu0 %v8302_v15 }
0x20f2   : > { %7684 = vmatprep.subr.bf16.mxu0 %v8712_v1 }
0x20f5   : > { %7685 = vmatpush3.bf16.msra.mxu0 %v8303_v32 }
0x20f6   : > { %7686 = vmatprep.subr.bf16.mxu0 %v8712_v1 }
0x20f9   : > { %7687 = vmatpush3.bf16.msra.mxu0 %v8304_v37 }
0x20fa   : > { %7712 = vmatprep.subr.bf16.mxu0 %v8712_v1 }
0x20fc   : > { %7689 = vmatmul.mubr.bf16.vlgmr.msra.gmra.mrb[80].mxu0 %v4670_v51 }
0x20fd   : > { %7716 = vmatprep.mubr.msk.bf16.mxu0 %vm8714_vm2, %v8712_v1 }
0x21af   : > { %v4512_v47 = vpop.f32.mrb[76].mxu0 }
0x21b0   : > { %v4518_v42 = vadd.f32 %v4512_v47, %v9624_v27  ;;  %v7650_v19 = vpop.f32.mrb[77].mxu0 }
0x21b1   : > { %v4515_v23 = vpop.f32.mrb[78].mxu0 }
0x21b2   : > { %v9728_v48 = vadd.f32 %v4522_v45, %v4518_v42  ;;  %v7651_v49 = vpop.f32.mrb[79].mxu0 }
0x21b4   : > { %v4671_v55 = vpack.c.bf16 %v6719_v22, %v9728_v48 }
0x21b6   : > { %7708 = vmatprep.mubr.bf16.mxu1 %v4671_v55 }
0x21b7   : > { %7709 = vmatmul.mubr.bf16.vlgmr.msra.gmra.mrb[72].mxu1 %v4672_v54 }
0x21b8   : > { %7721 = vmatpush3.bf16.msra.mxu1 %v4671_v55  ;;  %7724 = vmatprep.mubr.msk.bf16.mxu1 %vm8714_vm2, %v8712_v1 }
0x21b9   : > { %7722 = vmatprep.subr.bf16.mxu1 %v8712_v1 }
0x21bc   : > { %7723 = vmatpush3.bf16.msra.mxu1 %v4901_v14 }
0x21bd   : > { %7748 = vmatprep.subr.bf16.mxu1 %v8712_v1 }
0x21cf   : > { %v4739_v27 = vpop.f32.mrb[80].mxu0 }
0x21d0   : > { %v7690_v38 = vpop.f32.mrb[81].mxu0  ;;  %v4745_v10 = vpack.c.bf16 %v4739_v27, %v4739_v27 }
0x21d1   : > { %v4742_v59 = vpop.f32.mrb[82].mxu0 }
0x21d2   : > { %v7691_v60 = vpop.f32.mrb[83].mxu0 }
0x228a   : > { %v7710_v63 = vpop.f32.mrb[72].mxu1 }
0x228b   : > { %v4828_v29 = vpop.f32.mrb[73].mxu1  ;;  %v4843_v58 = vpack.c.bf16 %v7710_v63, %v7710_v63 }
0x228c   : > { %v7711_v26 = vpop.f32.mrb[74].mxu1 }
0x228d   : > { %v4831_v0 = vpop.f32.mrb[75].mxu1  ;;  %v5190_v26 = vmul.f32 %v8907_v3, %v9728_v48 }
0x228e   : > { %v4842_v4 = vpack.c.bf16 %v4831_v0, %v4828_v29 }
0x2290   : > { %7713 = vmatpush3.bf16.xpose.msra.mxu0 %v4842_v4 }
0x2291   : > { %7714 = vmatprep.subr.bf16.mxu0 %v8712_v1 }
0x2298   : > { %7715 = vmatpush3.bf16.xpose.msra.mxu0 %v4843_v58  ;;  %v5145_v58 = vrot.slane %v9706_v62, %v8976_v7 }
0x2299   : > { %7728 = vmatprep.subr.bf16.mxu0 %v8712_v1 }
0x229f   : > { %7717 = vmatmul.mubr.bf16.vlgmr.msra.gmra.mrb[84].mxu0 %v4745_v10 }
0x22a0   : > { %7729 = vmatpush3.bf16.msra.mxu0 %v8275_v28  ;;  %7744 = vmatprep.mubr.msk.bf16.mxu0 %vm8714_vm2, %v8712_v1 }
0x22a1   : > { %7730 = vmatprep.subr.bf16.mxu0 %v8712_v1 }
0x22a4   : > { %7731 = vmatpush3.bf16.msra.mxu0 %v8278_v11 }
0x22a5   : > { %7732 = vmatprep.subr.bf16.mxu0 %v8712_v1 }
0x22a8   : > { %7733 = vmatpush3.bf16.msra.mxu0 %v8281_v16  ;;  %v5150_v16 = vrot.slane %v9706_v62, %v8973_v6 }
0x22a9   : > { %7734 = vmatprep.subr.bf16.mxu0 %v8712_v1 }
0x22ac   : > { %7735 = vmatpush3.bf16.msra.mxu0 %v8284_v34 }
0x22ad   : > { %7736 = vmatprep.subr.bf16.mxu0 %v8712_v1 }
0x22b0   : > { %7737 = vmatpush3.bf16.msra.mxu0 %v8287_v9 }
0x22b1   : > { %7738 = vmatprep.subr.bf16.mxu0 %v8712_v1 }
0x22b4   : > { %7739 = vmatpush3.bf16.msra.mxu0 %v8291_v17 }
0x22b5   : > { %7740 = vmatprep.subr.bf16.mxu0 %v8712_v1 }
0x22b8   : > { %7741 = vmatpush3.bf16.msra.mxu0 %v8295_v13 }
0x22b9   : > { %7742 = vmatprep.subr.bf16.mxu0 %v8712_v1 }
0x22bc   : > { %7743 = vmatpush3.bf16.msra.mxu0 %v8299_v18 }
0x2372   : > { %v4878_v50 = vpop.f32.mrb[84].mxu0 }
0x2373   : > { %v4884_v20 = vmul.f32 0.17677669, %v4878_v50  ;;  %v7718_v12 = vpop.f32.mrb[85].mxu0 }
0x2374   : > { %v4881_v53 = vpop.f32.mrb[86].mxu0 }
0x2375   : > { %v7719_v21 = vpop.f32.mrb[87].mxu0  ;;  %v4885_v24 = vsel %vm3113_vm15, %v4884_v20, -inf  ;;  %v8305_v53 = vld [vmem:[#allocation2 + $0x300] ss:$16 sps:$4 sm:$0xff]  }
0x2376   : > { %4886 = vmax.xlane.f32.xlu0 %v4885_v24  ;;  %v8307_v21 = vld [vmem:[#allocation2 + $0x304] ss:$16 sps:$4 sm:$0xff]  }
0x2377   : > { %v8310_v24 = vld [vmem:[#allocation2 + $0x324] ss:$16 sps:$4 sm:$0xff]   ;;  %5359 = vmatprep.subr.bf16.mxu0 %v8307_v21 }
0x2403   : > { %v4887_v25 = vpop.xlane.xlu0 %4886 }
0x2404   : > { %v4888_v15 = vsub.f32 %v4884_v20, %v4887_v25  ;;  %v8311_v25 = vld [vmem:[#allocation6 + $0x150] ss:$20 sps:$4 sm:$0xff]  }
0x2406   : > { %v4889_v32 = vmul.f32 1.442695, %v4888_v15  ;;  %v8308_v15 = vld [vmem:[#allocation2 + $0x320] ss:$16 sps:$4 sm:$0xff]  }
0x2408   : > { %8529 = vpow2.f32 %v4889_v32  ;;  %v8314_v32 = vld [vmem:[#allocation2 + $0x344] ss:$16 sps:$4 sm:$0xff]  }
0x2412   : > { %v8530_v33 = vpop.eup %8529 }
0x2413   : > { %v4891_v37 = vsel %vm3113_vm15, %v8530_v33, 0.0 }
0x2414   : > { %4892 = vadd.xlane.f32.xlu1 %v4891_v37 }
0x24a1   : > { %v4893_v44 = vpop.xlane.xlu1 %4892 }
0x24a2   : > { %8531 = vrcp.f32 %v4893_v44 }
0x24ac   : > { %v8532_v41 = vpop.eup %8531 }
0x24ad   : > { %v4895_v51 = vmul.f32 %v8532_v41, %v8530_v33  ;;  %v8312_v33 = vld [vmem:[#allocation2 + $0x340] ss:$16 sps:$4 sm:$0xff]  }
0x24af   : > { %v4896_v43 = vpack.c.bf16 %v4895_v51, %v4895_v51 }
0x24b1   : > { %7725 = vmatmul.mubr.msk.bf16.vlgmr.msra.gmra.mrb[76].mxu1 %vm3113_vm15, %v4896_v43 }
0x24b2   : > { %7764 = vmatprep.mubr.msk.bf16.mxu1 %vm8714_vm2, %v8712_v1  ;;  %7749 = vmatpush3.bf16.msra.mxu1 %v8311_v25 }
0x24b3   : > { %7750 = vmatprep.subr.bf16.mxu1 %v8712_v1 }
0x2584   : > { %v4937_v45 = vpop.f32.mrb[76].mxu1 }
0x2585   : > { %v4943_v47 = vpack.c.bf16 %v4937_v45, %v4937_v45  ;;  %v7726_v42 = vpop.f32.mrb[77].mxu1 }
0x2586   : > { %v4940_v19 = vpop.f32.mrb[78].mxu1 }
0x2587   : > { %v7727_v46 = vpop.f32.mrb[79].mxu1  ;;  %7745 = vmatmul.mubr.bf16.vlgmr.msra.gmra.mrb[88].mxu0 %v4943_v47 }
0x2588   : > { %5391 = vmatprep.mubr.bf16.mxu0 %v8713_v39  ;;  %5360 = vmatpush1.bf16.msra.mxu0 %v8305_v53 }
0x2589   : > { %5361 = vmatprep.subr.bf16.mxu0 %v8310_v24 }
0x258c   : > { %5362 = vmatpush1.bf16.msra.mxu0 %v8308_v15 }
0x258d   : > { %5363 = vmatprep.subr.bf16.mxu0 %v8314_v32 }
0x2590   : > { %5364 = vmatpush1.bf16.msra.mxu0 %v8312_v33 }
0x265a   : > { %v5010_v23 = vpop.f32.mrb[88].mxu0 }
0x265b   : > { %v5128_v22 = vadd.f32 %v5010_v23, %v9712_v40  ;;  %v7746_v49 = vpop.f32.mrb[89].mxu0  ;;  %v5016_v12 = vmul.f32 %v8907_v3, %v5010_v23 }
0x265c   : > { %v5013_v54 = vpop.f32.mrb[90].mxu0  ;;  %v8318_v49 = vld [vmem:[#allocation2 + $0x364] ss:$16 sps:$4 sm:$0xff]  }
0x265d   : > { %v7747_v55 = vpop.f32.mrb[91].mxu0  ;;  %v5129_v27 = vmul.f32 %v8907_v3, %v5128_v22  ;;  %v8315_v22 = vld [vmem:[#allocation6 + $0x178] ss:$20 sps:$4 sm:$0xff]   ;;  %v8316_v54 = vld [vmem:[#allocation2 + $0x360] ss:$16 sps:$4 sm:$0xff]   ;;  %5365 = vmatprep.subr.bf16.mxu0 %v8318_v49 }
0x265e   : > { %7751 = vmatpush3.bf16.msra.mxu1 %v8315_v22  ;;  %5366 = vmatpush1.bf16.msra.mxu0 %v8316_v54  ;;  %v8319_v55 = vld [vmem:[#allocation6 + $0x1a0] ss:$20 sps:$4 sm:$0xff]   ;;  %v8339_v22 = vld [vmem:[#allocation2 + $0x328] ss:$16 sps:$4 sm:$0xff]  }
0x265f   : > { %5130 = vadd.xlane.f32.xlu0 %v5129_v27  ;;  %7752 = vmatprep.subr.bf16.mxu1 %v8712_v1  ;;  %v8345_v49 = vld [vmem:[#allocation2 + $0x388] ss:$16 sps:$4 sm:$0xff]  }
0x2660   : > { %v8347_v54 = vld [vmem:[#allocation2 + $0x3a8] ss:$16 sps:$4 sm:$0xff]  }
0x2662   : > { %7753 = vmatpush3.bf16.msra.mxu1 %v8319_v55  ;;  %v8349_v55 = vld [vmem:[#allocation2 + $0x3c8] ss:$16 sps:$4 sm:$0xff]  }
0x2663   : > { %7754 = vmatprep.subr.bf16.mxu1 %v8712_v1 }
0x26ec   : > { %v5131_v38 = vpop.xlane.xlu0 %5130 }
0x26ed   : > { %v5132_v59 = vmul.f32 0.03125, %v5131_v38  ;;  %v8320_v38 = vld [vmem:[#allocation2 + $0x380] ss:$16 sps:$4 sm:$0xff]  }
0x26ef   : > { %v5133_v60 = vsub.f32 %v5129_v27, %v5132_v59  ;;  %v8322_v27 = vld [vmem:[#allocation2 + $0x384] ss:$16 sps:$4 sm:$0xff]   ;;  %v8323_v59 = vld [vmem:[#allocation6 + $0x1c8] ss:$20 sps:$4 sm:$0xff]  }
0x26f0   : > { %5367 = vmatprep.subr.bf16.mxu0 %v8322_v27  ;;  %7755 = vmatpush3.bf16.msra.mxu1 %v8323_v59  ;;  %v8351_v27 = vld [vmem:[#allocation2 + $0x3e8] ss:$16 sps:$4 sm:$0xff]  }
0x26f1   : > { %v5134_v63 = vmul.f32 %v8907_v3, %v5133_v60  ;;  %5368 = vmatpush1.bf16.msra.mxu0 %v8320_v38  ;;  %v8326_v60 = vld [vmem:[#allocation2 + $0x3a4] ss:$16 sps:$4 sm:$0xff]   ;;  %7756 = vmatprep.subr.bf16.mxu1 %v8712_v1 }
0x26f2   : > { %5369 = vmatprep.subr.bf16.mxu0 %v8326_v60 }
0x26f3   : > { %v5135_v29 = vmul.f32 %v5134_v63, %v5134_v63 }
0x26f5   : > { %5136 = vadd.xlane.f32.xlu1 %v5135_v29  ;;  %v8327_v29 = vld [vmem:[#allocation6 + $0x1f0] ss:$20 sps:$4 sm:$0xff]  }
0x26f6   : > { %7757 = vmatpush3.bf16.msra.mxu1 %v8327_v29 }
0x26f7   : > { %7758 = vmatprep.subr.bf16.mxu1 %v8712_v1 }
0x26f9   : > { %5192 = vadd.xlane.f32.xlu1 %v5190_v26 }
0x2782   : > { %v5137_v39 = vpop.xlane.xlu1 %5136 }
0x2783   : > { %v5138_v0 = vmul.f32 0.03125, %v5137_v39  ;;  %v8330_v39 = vld [vmem:[#allocation2 + $0x3c4] ss:$16 sps:$4 sm:$0xff]  }
0x2785   : > { %v5139_v40 = vadd.f32 1e-05, %v5138_v0  ;;  %v8331_v0 = vld [vmem:[#allocation6 + $0x218] ss:$20 sps:$4 sm:$0xff]  }
0x2786   : > { %v5193_v4 = vpop.xlane.xlu1 %5192  ;;  %7759 = vmatpush3.bf16.msra.mxu1 %v8331_v0 }
0x2787   : > { %8533 = vrsqrt.f32 %v5139_v40  ;;  %v5197_v28 = vmul.f32 0.03125, %v5193_v4  ;;  %v8334_v40 = vld [vmem:[#allocation2 + $0x3e4] ss:$16 sps:$4 sm:$0xff]   ;;  %v8332_v4 = vld [vmem:[#allocation2 + $0x3e0] ss:$16 sps:$4 sm:$0xff]   ;;  %7760 = vmatprep.subr.bf16.mxu1 %v8712_v1 }
0x2789   : > { %v5199_v9 = vsub.f32 %v5190_v26, %v5197_v28  ;;  %v8328_v26 = vld [vmem:[#allocation2 + $0x3c0] ss:$16 sps:$4 sm:$0xff]  }
0x278b   : > { %v9767_v18 = vmul.f32 %v8907_v3, %v5199_v9 }
0x278d   : > { %v5203_v20 = vmul.f32 %v9767_v18, %v9767_v18 }
0x2791   : > { %v8534_v10 = vpop.eup %8533 }
0x2792   : > { %v5141_v11 = vmul.f32 %v8534_v10, %v5134_v63  ;;  %v8324_v63 = vld [vmem:[#allocation2 + $0x3a0] ss:$16 sps:$4 sm:$0xff]   ;;  %v8336_v10 = vld [vmem:[#allocation6 + $0x268] ss:$20 sps:$4 sm:$0xff]  }
0x2793   : > { %5370 = vmatpush1.bf16.msra.mxu0 %v8324_v63 }
0x2794   : > { %v5146_v34 = vmul.f32 %v5145_v58, %v5141_v11  ;;  %5371 = vmatprep.subr.bf16.mxu0 %v8330_v39  ;;  %v8335_v58 = vld [vmem:[#allocation6 + $0x240] ss:$20 sps:$4 sm:$0xff]  }
0x2795   : > { %7761 = vmatpush3.bf16.msra.mxu1 %v8335_v58 }
0x2796   : > { %v9762_v17 = vadd.f32 %v5150_v16, %v5146_v34  ;;  %7762 = vmatprep.subr.bf16.mxu1 %v8712_v1 }
0x2797   : > { %5372 = vmatpush1.bf16.msra.mxu0 %v8328_v26 }
0x2798   : > { %v5191_v13 = vmul.f32 %v8907_v3, %v9762_v17  ;;  %5373 = vmatprep.subr.bf16.mxu0 %v8334_v40 }
0x2799   : > { %7763 = vmatpush3.bf16.msra.mxu1 %v8336_v10 }
0x279a   : > { %v5194_v50 = vsel %vm3423_vm1, %v5191_v13, 0.0  ;;  %7768 = vmatprep.subr.bf16.mxu1 %v8712_v1 }
0x279b   : > { %5195 = vadd.xlane.f32.xlu0 %v5194_v50  ;;  %5374 = vmatpush1.bf16.msra.mxu0 %v8332_v4 }
0x279c   : > { %7788 = vmatprep.subr.bf16.mxu0 %v8712_v1 }
0x279f   : > { %5205 = vadd.xlane.f32.xlu0 %v5203_v20 }
0x27a3   : > { %5017 = vadd.xlane.f32.xlu0 %v5016_v12 }
0x2828   : > { %v5196_v37 = vpop.xlane.xlu0 %5195 }
0x2829   : > { %v5198_v14 = vmul.f32 0.03125, %v5196_v37 }
0x282b   : > { %v5200_v44 = vsub.f32 %v5191_v13, %v5198_v14 }
0x282c   : > { %v5206_v41 = vpop.xlane.xlu0 %5205 }
0x282d   : > { %v9775_v51 = vmul.f32 %v8907_v3, %v5200_v44  ;;  %v5210_v28 = vmul.f32 0.03125, %v5206_v41  ;;  %v5032_v41 = vrot.slane %v9706_v62, %v8960_v57 }
0x282f   : > { %v5204_v43 = vmul.f32 %v9775_v51, %v9775_v51  ;;  %v5212_v11 = vadd.f32 1e-05, %v5210_v28 }
0x2830   : > { %v5018_v45 = vpop.xlane.xlu0 %5017 }
0x2831   : > { %v5019_v47 = vmul.f32 0.03125, %v5018_v45  ;;  %v5207_v42 = vsel %vm3423_vm1, %v5204_v43, 0.0  ;;  %8535 = vrsqrt.f32 %v5212_v11 }
0x2832   : > { %5208 = vadd.xlane.f32.xlu1 %v5207_v42 }
0x2833   : > { %v5020_v19 = vsub.f32 %v5016_v12, %v5019_v47  ;;  %v9796_v12 = vld [vmem:[%s10024_s7 + $0x30] sm:$0xff]  ;;  %v5037_v47 = vrot.slane %v9706_v62, %v8970_v5  ;;  %v8343_v62 = vld [vmem:[#allocation2 + $0x368] ss:$16 sps:$4 sm:$0xff]  }
0x2834   : > { %v5221_v24 = vrot.slane %v9796_v12, %v8949_v52  ;;  %v5227_v33 = vrot.slane %v9796_v12, %v8960_v57  ;;  %v5446_v38 = vrot.slane %v9796_v12, %v8970_v5  ;;  %v5453_v60 = vrot.slane %v9796_v12, %v8976_v7 }
0x2835   : > { %v9781_v46 = vmul.f32 %v8907_v3, %v5020_v19  ;;  %v8337_v19 = vld [vmem:[#allocation2 + $0x308] ss:$16 sps:$4 sm:$0xff]  }
0x2837   : > { %v5022_v23 = vmul.f32 %v9781_v46, %v9781_v46 }
0x2839   : > { %5023 = vadd.xlane.f32.xlu1 %v5022_v23 }
0x283b   : > { %v8536_v20 = vpop.eup %8535 }
0x283c   : > { %v5216_v21 = vmul.f32 %v8536_v20, %v9767_v18 }
0x283e   : > { %v5222_v32 = vmul.f32 %v5221_v24, %v5216_v21 }
0x2840   : > { %v5228_v14 = vadd.f32 %v5227_v33, %v5222_v32 }
0x28bf   : > { %v5209_v16 = vpop.xlane.xlu1 %5208 }
0x28c0   : > { %v5211_v34 = vmul.f32 0.03125, %v5209_v16 }
0x28c2   : > { %v5213_v9 = vadd.f32 1e-05, %v5211_v34 }
0x28c4   : > { %8537 = vrsqrt.f32 %v5213_v9 }
0x28c6   : > { %v5024_v13 = vpop.xlane.xlu1 %5023 }
0x28c7   : > { %v5025_v50 = vmul.f32 0.03125, %v5024_v13 }
0x28c9   : > { %v5026_v53 = vadd.f32 1e-05, %v5025_v50  ;;  %v5460_v50 = vrot.slane %v9796_v12, %v8973_v6 }
0x28cb   : > { %8539 = vrsqrt.f32 %v5026_v53 }
0x28ce   : > { %v8538_v25 = vpop.eup %8537 }
0x28cf   : > { %v5217_v15 = vmul.f32 %v8538_v25, %v9775_v51 }
0x28d1   : > { %v5223_v37 = vmul.f32 %v5221_v24, %v5217_v15 }
0x28d3   : > { %v5229_v44 = vadd.f32 %v5227_v33, %v5223_v37 }
0x28d5   : > { %v8540_v43 = vpop.eup %8539  ;;  %v5230_v45 = vpack.c.bf16 %v5229_v44, %v5228_v14 }
0x28d6   : > { %v5028_v18 = vmul.f32 %v8540_v43, %v9781_v46  ;;  %v8341_v46 = vld [vmem:[#allocation2 + $0x348] ss:$16 sps:$4 sm:$0xff]  }
0x28d7   : > { %5392 = vmatmul.mubr.bf16.vlgmr.msra.gmra.mrb[92].mxu0 %v5230_v45 }
0x28d8   : > { %v5033_v42 = vmul.f32 %v5032_v41, %v5028_v18  ;;  %7790 = vmatprep.mubr.msk.bf16.mxu0 %vm8714_vm2, %v8712_v1 }
0x28da   : > { %v5038_v51 = vadd.f32 %v5037_v47, %v5033_v42 }
0x28dc   : > { %v5039_v23 = vpack.c.bf16 %v5038_v51, %v5038_v51 }
0x28de   : > { %7765 = vmatmul.mubr.bf16.vlgmr.msra.gmra.mrb[80].mxu1 %v5039_v23 }
0x28df   : > { %7769 = vmatpush3.bf16.msra.mxu1 %v8337_v19  ;;  %7784 = vmatprep.mubr.msk.bf16.mxu1 %vm8714_vm2, %v8712_v1 }
0x28e0   : > { %7770 = vmatprep.subr.bf16.mxu1 %v8712_v1 }
0x28e3   : > { %7771 = vmatpush3.bf16.msra.mxu1 %v8339_v22 }
0x28e4   : > { %7772 = vmatprep.subr.bf16.mxu1 %v8712_v1 }
0x28e7   : > { %7773 = vmatpush3.bf16.msra.mxu1 %v8341_v46 }
0x28e8   : > { %7774 = vmatprep.subr.bf16.mxu1 %v8712_v1 }
0x28eb   : > { %7775 = vmatpush3.bf16.msra.mxu1 %v8343_v62 }
0x28ec   : > { %7776 = vmatprep.subr.bf16.mxu1 %v8712_v1 }
0x28ef   : > { %7777 = vmatpush3.bf16.msra.mxu1 %v8345_v49 }
0x28f0   : > { %7778 = vmatprep.subr.bf16.mxu1 %v8712_v1 }
0x28f3   : > { %7779 = vmatpush3.bf16.msra.mxu1 %v8347_v54 }
0x28f4   : > { %7780 = vmatprep.subr.bf16.mxu1 %v8712_v1 }
0x28f7   : > { %7781 = vmatpush3.bf16.msra.mxu1 %v8349_v55 }
0x28f8   : > { %7782 = vmatprep.subr.bf16.mxu1 %v8712_v1 }
0x28fb   : > { %7783 = vmatpush3.bf16.msra.mxu1 %v8351_v27 }
0x28fc   : > { %7794 = vmatprep.subr.bf16.mxu1 %v8712_v1 }
0x28fe   : > { %7785 = vmatmul.mubr.bf16.vlgmr.msra.gmra.mrb[84].mxu1 %v5230_v45 }
0x28ff   : > { %7796 = vmatprep.mubr.msk.bf16.mxu1 %vm8714_vm2, %v8712_v1 }
0x29aa   : > { %v5393_v59 = vpop.f32.mrb[92].mxu0 }
0x29ab   : > { %v5395_v63 = vpop.f32.mrb[93].mxu0  ;;  %v5447_v26 = vadd.f32 %v5446_v38, %v5393_v59 }
0x29ac   : > { %v5397_v29 = vpop.f32.mrb[94].mxu0  ;;  %v5454_v40 = vadd.f32 %v5453_v60, %v5395_v63 }
0x29ad   : > { %v5448_v39 = vadd.f32 %v5446_v38, %v5397_v29  ;;  %v5399_v0 = vpop.f32.mrb[95].mxu0 }
0x29ae   : > { %v5455_v4 = vadd.f32 %v5453_v60, %v5399_v0 }
0x29af   : > { %v5449_v58 = vpack.c.bf16 %v5448_v39, %v5447_v26 }
0x29b0   : > { %v5456_v10 = vpack.c.bf16 %v5455_v4, %v5454_v40 }
0x29b1   : > { %v5122_v28 = vpop.f32.mrb[80].mxu1  ;;  %v5464_v7 = vmul.bf16 %v5449_v58, %v8994_v30  ;;  %v5532_v34 = vmul.bf16 %v5449_v58, %v9006_v36  ;;  %v5694_v9 = vmul.bf16 %v5449_v58, %v8997_v31  ;;  %v5811_v13 = vmul.bf16 %v5449_v58, %v9012_v2 }
0x29b2   : > { %6763 = vst [vmem:[%s9509_s6 + $0x8] sm:$0xff] %v5122_v28  ;;  %v7766_v11 = vpop.f32.mrb[81].mxu1  ;;  %7789 = vmatpush3.bf16.xpose.msra.mxu0 %v5456_v10  ;;  %7795 = vmatpush3.bf16.xpose.msra.mxu1 %v5456_v10 }
0x29b3   : > { %v5125_v16 = vpop.f32.mrb[82].mxu1  ;;  %7812 = vmatprep.subr.bf16.mxu1 %v8712_v1  ;;  %7800 = vmatprep.subr.bf16.mxu0 %v8712_v1 }
0x29b4   : > { %v7767_v5 = vpop.f32.mrb[83].mxu1 }
0x29b9   : > { %7791 = vmatmul.mubr.bf16.vlgmr.msra.gmra.mrb[96].mxu0 %v5464_v7  ;;  %7797 = vmatmul.mubr.bf16.vlgmr.msra.gmra.mrb[88].mxu1 %v5532_v34 }
0x29ba   : > { %7813 = vmatpush3.bf16.xpose.msra.mxu1 %v5456_v10  ;;  %7814 = vmatprep.mubr.msk.bf16.mxu1 %vm8714_vm2, %v8712_v1 }
0x29bb   : > { %7824 = vmatprep.subr.bf16.mxu1 %v8712_v1  ;;  %7802 = vmatprep.mubr.msk.bf16.mxu0 %vm8714_vm2, %v8712_v1 }
0x29c1   : > { %7815 = vmatmul.mubr.bf16.vlgmr.msra.gmra.mrb[92].mxu1 %v5694_v9 }
0x29c2   : > { %7825 = vmatpush3.bf16.xpose.msra.mxu1 %v5456_v10  ;;  %7826 = vmatprep.mubr.msk.bf16.mxu1 %vm8714_vm2, %v8712_v1 }
0x29c3   : > { %7836 = vmatprep.subr.bf16.mxu1 %v8712_v1 }
0x29c9   : > { %7827 = vmatmul.mubr.bf16.vlgmr.msra.gmra.mrb[96].mxu1 %v5811_v13 }
0x29ca   : > { %7852 = vmatprep.mubr.msk.bf16.mxu1 %vm8714_vm2, %v8712_v1 }
0x29d1   : > { %v5436_v20 = vpop.f32.mrb[84].mxu1 }
0x29d2   : > { %v7786_v53 = vpop.f32.mrb[85].mxu1  ;;  %v5461_v24 = vadd.f32 %v5460_v50, %v5436_v20 }
0x29d3   : > { %v5439_v21 = vpop.f32.mrb[86].mxu1 }
0x29d4   : > { %v5462_v25 = vadd.f32 %v5460_v50, %v5439_v21  ;;  %v7787_v15 = vpop.f32.mrb[87].mxu1 }
0x29d6   : > { %v9846_v32 = vpack.c.bf16 %v5462_v25, %v5461_v24 }
0x29d8   : > { %v5599_v33 = vmul.bf16 %v9846_v32, %v9006_v36 }
0x29da   : > { %v5604_v37 = vand.u32 %v5599_v33, %v9533_v35 }
0x29dc   : > { %7801 = vmatpush3.bf16.msra.mxu0 %v5604_v37 }
0x29dd   : > { %7806 = vmatprep.subr.bf16.mxu0 %v8712_v1 }
0x2a8c   : > { %v5499_v14 = vpop.f32.mrb[96].mxu0  ;;  %v5567_v44 = vpop.f32.mrb[88].mxu1 }
0x2a8d   : > { %v5574_v41 = vmul.f32 0.35355338, %v5567_v44  ;;  %v7792_v6 = vpop.f32.mrb[97].mxu0  ;;  %v7798_v43 = vpop.f32.mrb[89].mxu1  ;;  %v5506_v19 = vmul.f32 0.35355338, %v5499_v14 }
0x2a8e   : > { %v5502_v45 = vpop.f32.mrb[98].mxu0  ;;  %v5570_v18 = vpop.f32.mrb[90].mxu1 }
0x2a8f   : > { %v5575_v47 = vmul.f32 0.35355338, %v5570_v18  ;;  %v7793_v42 = vpop.f32.mrb[99].mxu0  ;;  %v7799_v51 = vpop.f32.mrb[91].mxu1  ;;  %v5576_v23 = vsel %vm3738_vm4, %v5574_v41, -inf  ;;  %v5508_v62 = vsel %vm3738_vm4, %v5506_v19, -inf }
0x2a90   : > { %v5507_v22 = vmul.f32 0.35355338, %v5502_v45  ;;  %5577 = vmax.xlane.f32.xlu0 %v5576_v23 }
0x2a91   : > { %v5579_v36 = vsel %vm3742_vm5, %v5575_v47, -inf }
0x2a92   : > { %5580 = vmax.xlane.f32.xlu1 %v5579_v36  ;;  %v5511_v55 = vsel %vm3742_vm5, %v5507_v22, -inf }
0x2a94   : > { %v5729_v46 = vpop.f32.mrb[92].mxu1  ;;  %5509 = vmax.xlane.f32.xlu0 %v5508_v62 }
0x2a95   : > { %v5736_v49 = vmul.f32 0.35355338, %v5729_v46  ;;  %v7816_v54 = vpop.f32.mrb[93].mxu1 }
0x2a96   : > { %v5732_v27 = vpop.f32.mrb[94].mxu1  ;;  %5512 = vmax.xlane.f32.xlu1 %v5511_v55 }
0x2a97   : > { %v5737_v38 = vmul.f32 0.35355338, %v5732_v27  ;;  %v7817_v59 = vpop.f32.mrb[95].mxu1  ;;  %v5738_v60 = vsel %vm3738_vm4, %v5736_v49, -inf }
0x2a98   : > { %5739 = vmax.xlane.f32.xlu0 %v5738_v60 }
0x2a99   : > { %v5741_v63 = vsel %vm3742_vm5, %v5737_v38, -inf }
0x2a9a   : > { %5742 = vmax.xlane.f32.xlu1 %v5741_v63  ;;  %v8353_v63 = vld [vmem:[#allocation2 + $0x30c] ss:$16 sps:$4 sm:$0xff]  }
0x2a9b   : > { %7837 = vmatpush3.bf16.msra.mxu1 %v8353_v63 }
0x2a9c   : > { %v5846_v29 = vpop.f32.mrb[96].mxu1  ;;  %7838 = vmatprep.subr.bf16.mxu1 %v8712_v1 }
0x2a9d   : > { %v5853_v26 = vmul.f32 0.35355338, %v5846_v29  ;;  %v7828_v39 = vpop.f32.mrb[97].mxu1  ;;  %v8354_v29 = vld [vmem:[#allocation2 + $0x32c] ss:$16 sps:$4 sm:$0xff]  }
0x2a9e   : > { %v5849_v0 = vpop.f32.mrb[98].mxu1  ;;  %v8356_v39 = vld [vmem:[#allocation2 + $0x36c] ss:$16 sps:$4 sm:$0xff]  }
0x2a9f   : > { %v5854_v40 = vmul.f32 0.35355338, %v5849_v0  ;;  %v7829_v4 = vpop.f32.mrb[99].mxu1  ;;  %v5855_v58 = vsel %vm3738_vm4, %v5853_v26, -inf  ;;  %7839 = vmatpush3.bf16.msra.mxu1 %v8354_v29  ;;  %v8357_v0 = vld [vmem:[#allocation2 + $0x38c] ss:$16 sps:$4 sm:$0xff]  }
0x2aa0   : > { %5856 = vmax.xlane.f32.xlu0 %v5855_v58  ;;  %7840 = vmatprep.subr.bf16.mxu1 %v8712_v1  ;;  %v8359_v4 = vld [vmem:[#allocation2 + $0x3cc] ss:$16 sps:$4 sm:$0xff]  }
0x2aa1   : > { %v5858_v10 = vsel %vm3742_vm5, %v5854_v40, -inf }
0x2aa2   : > { %5859 = vmax.xlane.f32.xlu1 %v5858_v10 }
0x2b1d   : > { %v5578_v28 = vpop.xlane.xlu0 %5577 }
0x2b1e   : > { %v5582_v11 = vsub.f32 %v5574_v41, %v5578_v28 }
0x2b1f   : > { %v5581_v16 = vpop.xlane.xlu1 %5580 }
0x2b20   : > { %v5583_v5 = vsub.f32 %v5575_v47, %v5581_v16  ;;  %v5584_v7 = vmul.f32 1.442695, %v5582_v11 }
0x2b21   : > { %v5510_v9 = vpop.xlane.xlu0 %5509 }
0x2b22   : > { %v5586_v34 = vmul.f32 1.442695, %v5583_v5  ;;  %8541 = vpow2.f32 %v5584_v7  ;;  %v5514_v13 = vsub.f32 %v5506_v19, %v5510_v9  ;;  %v5531_v7 = vmul.bf16 %v9846_v32, %v8994_v30 }
0x2b23   : > { %v5513_v50 = vpop.xlane.xlu1 %5512 }
0x2b24   : > { %8543 = vpow2.f32 %v5586_v34  ;;  %v5515_v20 = vsub.f32 %v5507_v22, %v5513_v50  ;;  %v5516_v53 = vmul.f32 1.442695, %v5514_v13  ;;  %v5651_v50 = vand.u32 %v5531_v7, %v9533_v35 }
0x2b25   : > { %v5740_v24 = vpop.xlane.xlu0 %5739 }
0x2b26   : > { %v5518_v21 = vmul.f32 1.442695, %v5515_v20  ;;  %8545 = vpow2.f32 %v5516_v53  ;;  %v5744_v25 = vsub.f32 %v5736_v49, %v5740_v24 }
0x2b27   : > { %v5743_v15 = vpop.xlane.xlu1 %5742 }
0x2b28   : > { %8547 = vpow2.f32 %v5518_v21  ;;  %v5745_v33 = vsub.f32 %v5737_v38, %v5743_v15  ;;  %v5746_v37 = vmul.f32 1.442695, %v5744_v25  ;;  %v5761_v25 = vmul.bf16 %v9846_v32, %v8997_v31 }
0x2b2a   : > { %v5748_v14 = vmul.f32 1.442695, %v5745_v33  ;;  %8549 = vpow2.f32 %v5746_v37  ;;  %v5766_v37 = vand.u32 %v5761_v25, %v9533_v35 }
0x2b2c   : > { %8551 = vpow2.f32 %v5748_v14  ;;  %v9860_v44 = vpop.eup %8541 }
0x2b2d   : > { %v5857_v41 = vpop.xlane.xlu0 %5856  ;;  %v5588_v45 = vsel %vm3738_vm4, %v9860_v44, 0.0 }
0x2b2e   : > { %v9862_v6 = vpop.eup %8543  ;;  %v5861_v43 = vsub.f32 %v5853_v26, %v5857_v41  ;;  %5589 = vadd.xlane.f32.xlu0 %v5588_v45  ;;  %v8355_v26 = vld [vmem:[#allocation2 + $0x34c] ss:$16 sps:$4 sm:$0xff]  }
0x2b2f   : > { %v5860_v18 = vpop.xlane.xlu1 %5859  ;;  %v5591_v47 = vsel %vm3742_vm5, %v9862_v6, 0.0  ;;  %7841 = vmatpush3.bf16.msra.mxu1 %v8355_v26 }
0x2b30   : > { %v5863_v42 = vmul.f32 1.442695, %v5861_v43  ;;  %v5862_v51 = vsub.f32 %v5854_v40, %v5860_v18  ;;  %5592 = vadd.xlane.f32.xlu1 %v5591_v47  ;;  %v9868_v19 = vpop.eup %8545  ;;  %7842 = vmatprep.subr.bf16.mxu1 %v8712_v1  ;;  %v8358_v40 = vld [vmem:[#allocation2 + $0x3ac] ss:$16 sps:$4 sm:$0xff]   ;;  %v5878_v43 = vmul.bf16 %v9846_v32, %v9012_v2 }
0x2b31   : > { %v5520_v36 = vsel %vm3738_vm4, %v9868_v19, 0.0 }
0x2b32   : > { %v9870_v23 = vpop.eup %8547  ;;  %8553 = vpow2.f32 %v5863_v42  ;;  %v5865_v22 = vmul.f32 1.442695, %v5862_v51  ;;  %5521 = vadd.xlane.f32.xlu0 %v5520_v36  ;;  %v5883_v47 = vand.u32 %v5878_v43, %v9533_v35  ;;  %v8360_v35 = vld [vmem:[#allocation2 + $0x3ec] ss:$16 sps:$4 sm:$0xff]   ;;  %v6047_v43 = vrot.slane %v9796_v12, %v9131_v61  ;;  %v8373_v61 = vld [vmem:[#allocation4 + $0xe0] sm:$0xff]  }
0x2b33   : > { %v5523_v46 = vsel %vm3742_vm5, %v9870_v23, 0.0  ;;  %7843 = vmatpush3.bf16.msra.mxu1 %v8356_v39 }
0x2b34   : > { %8555 = vpow2.f32 %v5865_v22  ;;  %5524 = vadd.xlane.f32.xlu1 %v5523_v46  ;;  %v9876_v62 = vpop.eup %8549  ;;  %7844 = vmatprep.subr.bf16.mxu1 %v8712_v1 }
0x2b35   : > { %v5750_v54 = vsel %vm3738_vm4, %v9876_v62, 0.0 }
0x2b36   : > { %v9878_v49 = vpop.eup %8551  ;;  %5751 = vadd.xlane.f32.xlu0 %v5750_v54 }
0x2b37   : > { %v5753_v55 = vsel %vm3742_vm5, %v9878_v49, 0.0  ;;  %7845 = vmatpush3.bf16.msra.mxu1 %v8357_v0 }
0x2b38   : > { %5754 = vadd.xlane.f32.xlu1 %v5753_v55  ;;  %7846 = vmatprep.subr.bf16.mxu1 %v8712_v1 }
0x2b3b   : > { %7847 = vmatpush3.bf16.msra.mxu1 %v8358_v40 }
0x2b3c   : > { %v9884_v27 = vpop.eup %8553  ;;  %7848 = vmatprep.subr.bf16.mxu1 %v8712_v1 }
0x2b3d   : > { %v5867_v38 = vsel %vm3738_vm4, %v9884_v27, 0.0 }
0x2b3e   : > { %v9888_v59 = vpop.eup %8555  ;;  %5868 = vadd.xlane.f32.xlu0 %v5867_v38 }
0x2b3f   : > { %v5870_v60 = vsel %vm3742_vm5, %v9888_v59, 0.0  ;;  %7849 = vmatpush3.bf16.msra.mxu1 %v8359_v4 }
0x2b40   : > { %5871 = vadd.xlane.f32.xlu1 %v5870_v60  ;;  %7850 = vmatprep.subr.bf16.mxu1 %v8712_v1 }
0x2b43   : > { %7851 = vmatpush3.bf16.msra.mxu1 %v8360_v35  ;;  %v8376_v35 = vld [vmem:[#allocation4 + $0xf8] sm:$0xff]  }
0x2b44   : > { %7876 = vmatprep.subr.bf16.mxu1 %v8712_v1 }
0x2bbb   : > { %v5590_v58 = vpop.xlane.xlu0 %5589 }
0x2bbc   : > { %8557 = vrcp.f32 %v5590_v58 }
0x2bbd   : > { %v5593_v10 = vpop.xlane.xlu1 %5592 }
0x2bbe   : > { %8559 = vrcp.f32 %v5593_v10 }
0x2bbf   : > { %v5522_v11 = vpop.xlane.xlu0 %5521 }
0x2bc1   : > { %v5525_v28 = vpop.xlane.xlu1 %5524 }
0x2bc2   : > { %8561 = vrcp.f32 %v5525_v28 }
0x2bc3   : > { %8563 = vrcp.f32 %v5522_v11  ;;  %v5752_v21 = vpop.xlane.xlu0 %5751 }
0x2bc5   : > { %v5755_v20 = vpop.xlane.xlu1 %5754 }
0x2bc6   : > { %v8558_v16 = vpop.eup %8557  ;;  %8565 = vrcp.f32 %v5755_v20  ;;  %v8367_v20 = vld [vmem:[%s10022_s5 + $0xf0] sm:$0xff]  }
0x2bc7   : > { %v5596_v34 = vmul.f32 %v8558_v16, %v9860_v44  ;;  %8567 = vrcp.f32 %v5752_v21 }
0x2bc8   : > { %v8560_v5 = vpop.eup %8559 }
0x2bc9   : > { %v5597_v9 = vmul.f32 %v8560_v5, %v9862_v6 }
0x2bcb   : > { %v5598_v13 = vpack.c.bf16 %v5597_v9, %v5596_v34  ;;  %v5869_v41 = vpop.xlane.xlu0 %5868  ;;  %v8362_v34 = vld [vmem:[%s10022_s5 + $0xc8] sm:$0xff]   ;;  %v8363_v9 = vld [vmem:[%s10022_s5 + $0xd0] sm:$0xff]  }
0x2bcc   : > { %v8562_v53 = vpop.eup %8561 }
0x2bcd   : > { %7803 = vmatmul.mubr.msk.bf16.vlgmr.msra.gmra.mrb[100].mxu0 %vm3738_vm4, %v5598_v13  ;;  %v8564_v24 = vpop.eup %8563  ;;  %v5529_v30 = vmul.f32 %v8562_v53, %v9870_v23  ;;  %v5872_v14 = vpop.xlane.xlu1 %5871  ;;  %v8365_v13 = vld [vmem:[%s10022_s5 + $0xe0] sm:$0xff]   ;;  %v8368_v53 = vld [vmem:[%s10022_s5 + $0xf8] sm:$0xff]  }
0x2bce   : > { %7807 = vmatpush3.bf16.msra.mxu0 %v5651_v50  ;;  %7808 = vmatprep.mubr.msk.bf16.mxu0 %vm8714_vm2, %v8712_v1  ;;  %v5528_v15 = vmul.f32 %v8564_v24, %v9868_v19  ;;  %8569 = vrcp.f32 %v5872_v14  ;;  %v8366_v50 = vld [vmem:[%s10022_s5 + $0xe8] sm:$0xff]  }
0x2bcf   : > { %7818 = vmatprep.subr.bf16.mxu0 %v8712_v1  ;;  %8571 = vrcp.f32 %v5869_v41 }
0x2bd0   : > { %v5530_v33 = vpack.c.bf16 %v5529_v30, %v5528_v15  ;;  %v8566_v44 = vpop.eup %8565 }
0x2bd1   : > { %v8568_v6 = vpop.eup %8567  ;;  %v5759_v31 = vmul.f32 %v8566_v44, %v9878_v49  ;;  %v6007_v49 = vrot.slane %v9796_v12, %v9077_v8  ;;  %v8361_v8 = vld [vmem:[%s10022_s5 + $0xc0] sm:$0xff]   ;;  %v6041_v44 = vrot.slane %v9796_v12, %v9126_v56  ;;  %v8371_v56 = vld [vmem:[#allocation4 + $0xd0] sm:$0xff]   ;;  %v8374_v12 = vld [vmem:[#allocation4 + $0xe8] sm:$0xff]  }
0x2bd2   : > { %v5758_v45 = vmul.f32 %v8568_v6, %v9876_v62 }
0x2bd4   : > { %v5760_v18 = vpack.c.bf16 %v5759_v31, %v5758_v45 }
0x2bd8   : > { %v8570_v42 = vpop.eup %8569 }
0x2bd9   : > { %7809 = vmatmul.mubr.msk.bf16.vlgmr.msra.gmra.mrb[100].mxu0 %vm3738_vm4, %v5530_v33  ;;  %v8572_v51 = vpop.eup %8571  ;;  %v5876_v19 = vmul.f32 %v8570_v42, %v9888_v59 }
0x2bda   : > { %7819 = vmatpush3.bf16.msra.mxu0 %v5766_v37  ;;  %7820 = vmatprep.mubr.msk.bf16.mxu0 %vm8714_vm2, %v8712_v1  ;;  %v5875_v23 = vmul.f32 %v8572_v51, %v9884_v27  ;;  %v8369_v51 = vld [vmem:[#allocation4 + $0xc0] sm:$0xff]  }
0x2bdb   : > { %7830 = vmatprep.subr.bf16.mxu0 %v8712_v1 }
0x2bdc   : > { %v5877_v2 = vpack.c.bf16 %v5876_v19, %v5875_v23  ;;  %v8370_v19 = vld [vmem:[#allocation4 + $0xc8] sm:$0xff]   ;;  %v8372_v23 = vld [vmem:[#allocation4 + $0xd8] sm:$0xff]  }
0x2be5   : > { %7821 = vmatmul.mubr.msk.bf16.vlgmr.msra.gmra.mrb[100].mxu0 %vm3738_vm4, %v5760_v18 }
0x2be6   : > { %7831 = vmatpush3.bf16.msra.mxu0 %v5883_v47  ;;  %7832 = vmatprep.mubr.msk.bf16.mxu0 %vm8714_vm2, %v8712_v1 }
0x2be7   : > { %7856 = vmatprep.subr.bf16.mxu0 %v8712_v1 }
0x2bf1   : > { %7833 = vmatmul.mubr.msk.bf16.vlgmr.msra.gmra.mrb[100].mxu0 %vm3738_vm4, %v5877_v2  ;;  %v8375_v2 = vld [vmem:[#allocation4 + $0xf0] sm:$0xff]  }
0x2bf2   : > { %7872 = vmatprep.mubr.msk.bf16.mxu0 %vm8714_vm2, %v8712_v1  ;;  %7857 = vmatpush3.bf16.msra.mxu0 %v8361_v8 }
0x2bf3   : > { %7858 = vmatprep.subr.bf16.mxu0 %v8712_v1 }
0x2bf6   : > { %7859 = vmatpush3.bf16.msra.mxu0 %v8362_v34 }
0x2bf7   : > { %7860 = vmatprep.subr.bf16.mxu0 %v8712_v1 }
0x2bfa   : > { %7861 = vmatpush3.bf16.msra.mxu0 %v8363_v9 }
0x2bfb   : > { %7862 = vmatprep.subr.bf16.mxu0 %v8712_v1 }
0x2cc4   : > { %v5919_v32 = vpop.f32.mrb[100].mxu0 }
0x2cc5   : > { %v7834_v22 = vpop.f32.mrb[101].mxu0 }
0x2cc6   : > { %v5922_v36 = vpop.f32.mrb[102].mxu0 }
0x2cc7   : > { %v5928_v46 = vpack.c.bf16 %v5922_v36, %v5919_v32  ;;  %v7835_v62 = vpop.f32.mrb[103].mxu0  ;;  %v6765_v32 = vld [vmem:[%s10024_s7 + $0x38] sm:$0x3] }
0x2cc8   : > { %v6071_v22 = vrot.slane %v6765_v32, %v8949_v52 }
0x2cc9   : > { %7853 = vmatmul.mubr.bf16.vlgmr.msra.gmra.mrb[100].mxu1 %v5928_v46 }
0x2cca   : > { %7892 = vmatprep.mubr.msk.bf16.mxu1 %vm8714_vm2, %v8712_v1  ;;  %7877 = vmatpush3.bf16.msra.mxu1 %v8369_v51 }
0x2ccb   : > { %7878 = vmatprep.subr.bf16.mxu1 %v8712_v1 }
0x2cce   : > { %7879 = vmatpush3.bf16.msra.mxu1 %v8370_v19 }
0x2ccf   : > { %7880 = vmatprep.subr.bf16.mxu1 %v8712_v1 }
0x2cd2   : > { %7881 = vmatpush3.bf16.msra.mxu1 %v8371_v56 }
0x2cd3   : > { %7882 = vmatprep.subr.bf16.mxu1 %v8712_v1 }
0x2cd6   : > { %7883 = vmatpush3.bf16.msra.mxu1 %v8372_v23 }
0x2cd7   : > { %7884 = vmatprep.subr.bf16.mxu1 %v8712_v1 }
0x2cda   : > { %7885 = vmatpush3.bf16.msra.mxu1 %v8373_v61 }
0x2cdb   : > { %7886 = vmatprep.subr.bf16.mxu1 %v8712_v1 }
0x2cde   : > { %7887 = vmatpush3.bf16.msra.mxu1 %v8374_v12 }
0x2cdf   : > { %7888 = vmatprep.subr.bf16.mxu1 %v8712_v1 }
0x2ce2   : > { %7889 = vmatpush3.bf16.msra.mxu1 %v8375_v2 }
0x2ce3   : > { %7890 = vmatprep.subr.bf16.mxu1 %v8712_v1 }
0x2ce6   : > { %7891 = vmatpush3.bf16.msra.mxu1 %v8376_v35 }
0x2d9c   : > { %v5995_v54 = vpop.f32.mrb[100].mxu1 }
0x2d9d   : > { %v6002_v55 = vadd.f32 %v5995_v54, %v9728_v48  ;;  %v7854_v27 = vpop.f32.mrb[101].mxu1 }
0x2d9e   : > { %v5998_v38 = vpop.f32.mrb[102].mxu1 }
0x2d9f   : > { %v9937_v59 = vadd.f32 %v6007_v49, %v6002_v55  ;;  %v6003_v60 = vadd.f32 %v5998_v38, %v9762_v17  ;;  %v7855_v63 = vpop.f32.mrb[103].mxu1 }
0x2da1   : > { %v6009_v29 = vadd.f32 %v6007_v49, %v6003_v60  ;;  %v6010_v26 = vmul.f32 %v8907_v3, %v9937_v59 }
0x2da3   : > { %6012 = vadd.xlane.f32.xlu1 %v6010_v26  ;;  %v6011_v39 = vmul.f32 %v8907_v3, %v6009_v29 }
0x2da5   : > { %v6014_v0 = vsel %vm3423_vm1, %v6011_v39, 0.0 }
0x2da6   : > { %6015 = vadd.xlane.f32.xlu0 %v6014_v0 }
0x2e30   : > { %v6013_v48 = vpop.xlane.xlu1 %6012 }
0x2e31   : > { %v6017_v17 = vmul.f32 0.03125, %v6013_v48 }
0x2e33   : > { %v6019_v40 = vsub.f32 %v6010_v26, %v6017_v17  ;;  %v6016_v4 = vpop.xlane.xlu0 %6015 }
0x2e34   : > { %v6018_v58 = vmul.f32 0.03125, %v6016_v4 }
0x2e35   : > { %v6021_v10 = vmul.f32 %v8907_v3, %v6019_v40  ;;  %v6287_v40 = vrot.slane %v6765_v32, %v8960_v57  ;;  %v6335_v57 = vld [vmem:[%s9509_s6] sm:$0xff] (%p10048_p9) }
0x2e36   : > { %v6020_v28 = vsub.f32 %v6011_v39, %v6018_v58  ;;  %6336 = vst [vmem:[%s6305_s22] sm:$0xff] (%p10048_p9), %v6335_v57 }
0x2e37   : > { %v6023_v11 = vmul.f32 %v6021_v10, %v6021_v10 }
0x2e38   : > { %v6022_v16 = vmul.f32 %v8907_v3, %v6020_v28  ;;  %v8364_v3 = vld [vmem:[%s10022_s5 + $0xd8] sm:$0xff]  }
0x2e39   : > { %6025 = vadd.xlane.f32.xlu0 %v6023_v11  ;;  %7863 = vmatpush3.bf16.msra.mxu0 %v8364_v3 }
0x2e3a   : > { %v6024_v5 = vmul.f32 %v6022_v16, %v6022_v16  ;;  %7864 = vmatprep.subr.bf16.mxu0 %v8712_v1 }
0x2e3c   : > { %v6027_v7 = vsel %vm3423_vm1, %v6024_v5, 0.0  ;;  %v6337_v5 = vld [vmem:[%s9509_s6 + $0x8] sm:$0xff] (%p10048_p9) }
0x2e3d   : > { %6028 = vadd.xlane.f32.xlu1 %v6027_v7  ;;  %7865 = vmatpush3.bf16.msra.mxu0 %v8365_v13  ;;  %6338 = vst [vmem:[%s6305_s22 + $0x10] sm:$0xff] (%p10048_p9), %v6337_v5 }
0x2e3e   : > { %7866 = vmatprep.subr.bf16.mxu0 %v8712_v1 }
0x2e41   : > { %7867 = vmatpush3.bf16.msra.mxu0 %v8366_v50 }
0x2e42   : > { %7868 = vmatprep.subr.bf16.mxu0 %v8712_v1 }
0x2e45   : > { %7869 = vmatpush3.bf16.msra.mxu0 %v8367_v20 }
0x2e46   : > { %7870 = vmatprep.subr.bf16.mxu0 %v8712_v1 }
0x2e49   : > { %7871 = vmatpush3.bf16.msra.mxu0 %v8368_v53 }
0x2ec6   : > { %v6026_v21 = vpop.xlane.xlu0 %6025 }
0x2ec7   : > { %v6030_v24 = vmul.f32 0.03125, %v6026_v21 }
0x2ec9   : > { %v6032_v30 = vadd.f32 1e-05, %v6030_v24 }
0x2eca   : > { %v6029_v25 = vpop.xlane.xlu1 %6028 }
0x2ecb   : > { %8573 = vrsqrt.f32 %v6032_v30  ;;  %v6031_v15 = vmul.f32 0.03125, %v6029_v25 }
0x2ecd   : > { %v6033_v33 = vadd.f32 1e-05, %v6031_v15 }
0x2ecf   : > { %8575 = vrsqrt.f32 %v6033_v33 }
0x2ed5   : > { %v8574_v37 = vpop.eup %8573 }
0x2ed6   : > { %v6036_v14 = vmul.f32 %v8574_v37, %v6021_v10 }
0x2ed8   : > { %v6042_v31 = vmul.f32 %v6041_v44, %v6036_v14 }
0x2ed9   : > { %v8576_v41 = vpop.eup %8575 }
0x2eda   : > { %v6037_v6 = vmul.f32 %v8576_v41, %v6022_v16  ;;  %v6048_v18 = vadd.f32 %v6047_v43, %v6042_v31 }
0x2edc   : > { %v6043_v45 = vmul.f32 %v6041_v44, %v6037_v6 }
0x2ede   : > { %v6049_v47 = vadd.f32 %v6047_v43, %v6043_v45 }
0x2ee0   : > { %v6050_v42 = vpack.c.bf16 %v6049_v47, %v6048_v18 }
0x2ee2   : > { %7873 = vmatmul.mubr.bf16.vlgmr.msra.gmra.mrb[104].mxu0 %v6050_v42 }
0x2fb5   : > { %v6154_v36 = vpop.f32.mrb[104].mxu0 }
0x2fb6   : > { %v6155_v46 = vadd.f32 %v6154_v36, %v6071_v22  ;;  %v7874_v62 = vpop.f32.mrb[105].mxu0 }
0x2fb7   : > { %v6157_v49 = vpop.f32.mrb[106].mxu0 }
0x2fb8   : > { %v6826_v54 = vmul.f32 -1.702, %v6155_v46  ;;  %v6158_v55 = vadd.f32 %v6157_v49, %v6071_v22  ;;  %v7875_v27 = vpop.f32.mrb[107].mxu0 }
0x2fba   : > { %v6165_v38 = vmul.f32 1.442695, %v6826_v54  ;;  %v6827_v60 = vmul.f32 -1.702, %v6158_v55 }
0x2fbc   : > { %8577 = vpow2.f32 %v6165_v38  ;;  %v6167_v63 = vmul.f32 1.442695, %v6827_v60 }
0x2fbe   : > { %8579 = vpow2.f32 %v6167_v63 }
0x2fc6   : > { %v8578_v1 = vpop.eup %8577 }
0x2fc7   : > { %v6169_v29 = vadd.f32 1.0, %v8578_v1 }
0x2fc8   : > { %v8580_v26 = vpop.eup %8579 }
0x2fc9   : > { %8581 = vrcp.f32 %v6169_v29  ;;  %v6170_v39 = vadd.f32 1.0, %v8580_v26 }
0x2fcb   : > { %8583 = vrcp.f32 %v6170_v39 }
0x2fd3   : > { %v8582_v52 = vpop.eup %8581 }
0x2fd4   : > { %v6175_v8 = vmul.f32 %v8582_v52, %v6155_v46 }
0x2fd5   : > { %v8584_v0 = vpop.eup %8583 }
0x2fd6   : > { %v6176_v48 = vmul.f32 %v8584_v0, %v6158_v55 }
0x2fd8   : > { %v6177_v17 = vpack.c.bf16 %v6176_v48, %v6175_v8 }
0x2fda   : > { %7893 = vmatmul.mubr.bf16.vlgmr.msra.gmra.mrb[104].mxu1 %v6177_v17 }
0x30ac   : > { %6303 = sbr.rel (!%p10048_p9) target bundleno = 12467 (0x30b3), region = 80 }
0x30ad   : > { %v6277_v4 = vpop.f32.mrb[104].mxu1 }
0x30ae   : > { %v6283_v58 = vadd.f32 %v6277_v4, %v9937_v59  ;;  %v7894_v10 = vpop.f32.mrb[105].mxu1 }
0x30af   : > { %v6280_v28 = vpop.f32.mrb[106].mxu1 }
0x30b0   : > { %v6288_v11 = vadd.f32 %v6287_v40, %v6283_v58  ;;  %v7895_v16 = vpop.f32.mrb[107].mxu1 }
0x30b2   : > { %6289 = vst [vmem:[%s449_s21] sm:$0xff] %v6288_v11 }
0x30b3 PF: > { %s10049_s19 = sld [smem:[#allocation11_spill]]  ;;  %s10050_s17 = sld [smem:[#allocation10_spill]] }
0x30b4   : > { %s10051_s18 = sld [smem:[#allocation12_spill]] }
0x30b9   : > { %p21_p13 = scmp.ge.s32.totalorder %s10049_s19, 4  }
0x30bb   :  { %23 = sbr.rel (!%p21_p13) target bundleno = 5 (0x5), region = 173 }
0x30c2   :  { %6361 = vsyncpa [#allocation3], 1 }
0x30c3   :  { %6363 = vsyncpa [#allocation3 + $0x1], 1 }
0x30c4   :  { %6364 = vsyncpa [#allocation5], 1 }

</bundles_post_ra>
